<compile_context>
chip_gen: v7x
topology: tpu7x:2x2x1
jax: 0.10.0
libtpu: 0.0.40
codegen_flags: <defaults>
</compile_context>

<pallas_src>
import jax
import jax.numpy as jnp
from jax.experimental import pallas as pl
from jax.experimental.pallas import tpu as pltpu


# ---------------------------------------------------------------------------
# Fused kernel: grid = (num_layers,), one grid step == one bidirectional layer
# ---------------------------------------------------------------------------

def _bilstm_stack_kernel(x_ref, wih_ref, whh_ref, b_ref, h0_ref, c0_ref,
                         y_ref, hn_ref, cn_ref,
                         act_scr, gx_scr):
    layer = pl.program_id(0)
    n_layers = pl.num_programs(0)

    TB, Dmax = act_scr.shape          # T*B, padded input width
    G2 = gx_scr.shape[1]              # 2 * 4H (both directions)
    G = G2 // 2                       # 4H
    H = G // 4
    B = h0_ref.shape[2]               # h0 block: [1, 2, B, H]
    T = TB // B

    # Layer 0 input comes from HBM; later layers read the previous layer's
    # output already sitting in act_scr (never leaves VMEM).
    @pl.when(layer == 0)
    def _():
        act_scr[...] = x_ref[...]

    # ---- Hoisted input projection (all timesteps, both directions, MXU) ----
    # Exact-ish f32 via bf16x3 split; bias folded in here (out of the loop).
    x_all = act_scr[...]                                    # [T*B, Dmax] f32
    w_all = wih_ref[0]                                      # [Dmax, 2*4H] f32
    x_hi = x_all.astype(jnp.bfloat16)
    x_lo = (x_all - x_hi.astype(jnp.float32)).astype(jnp.bfloat16)
    w_hi = w_all.astype(jnp.bfloat16)
    w_lo = (w_all - w_hi.astype(jnp.float32)).astype(jnp.bfloat16)
    gx = (jnp.dot(x_hi, w_hi, preferred_element_type=jnp.float32)
          + jnp.dot(x_hi, w_lo, preferred_element_type=jnp.float32)
          + jnp.dot(x_lo, w_hi, preferred_element_type=jnp.float32))
    gx_scr[...] = gx + b_ref[0]                             # [T*B, 2*4H]

    # Hoisted weight broadcasts for the recurrent term (exact f32 VPU path).
    whh_f = jnp.broadcast_to(whh_ref[0, 0][None, :, :], (B, H, G))
    whh_b = jnp.broadcast_to(whh_ref[0, 1][None, :, :], (B, H, G))

    h_f = h0_ref[0, 0]
    c_f = c0_ref[0, 0]
    h_b = h0_ref[0, 1]
    c_b = c0_ref[0, 1]

    def cell(gx_t, h, c, whh_bcast):
        # Gate lanes pre-ordered (i, f, o, g): one sigmoid (via EUP tanh) over
        # 3H lanes + one tanh over H lanes = 2 EUP pushes per call.
        g = gx_t + jnp.sum(h[:, :, None] * whh_bcast, axis=1)
        sg = 0.5 * (jnp.tanh(0.5 * g[:, 0:3 * H]) + 1.0)
        gg = jnp.tanh(g[:, 3 * H:4 * H])
        i_g = sg[:, 0:H]
        f_g = sg[:, H:2 * H]
        o_g = sg[:, 2 * H:3 * H]
        c_new = f_g * c + i_g * gg
        h_new = o_g * jnp.tanh(c_new)
        return h_new, c_new

    # Both directions advance every step; T is small and static, so the loop
    # is unrolled at trace time (all VMEM offsets static).
    # TODO(synk): for long sequences switch to lax.fori_loop + pl.ds offsets.
    for t in range(T):
        tb = T - 1 - t
        gx_f = gx_scr[t * B:(t + 1) * B, 0:G]
        gx_b = gx_scr[tb * B:(tb + 1) * B, G:2 * G]
        h_f, c_f = cell(gx_f, h_f, c_f, whh_f)
        h_b, c_b = cell(gx_b, h_b, c_b, whh_b)
        # This layer's output overwrites act_scr (its input was already consumed
        # by the hoisted matmul). Columns >= 2H keep stale values, but the next
        # layer's padded W_ih rows there are zero, so they contribute nothing.
        act_scr[t * B:(t + 1) * B, 0:H] = h_f
        act_scr[tb * B:(tb + 1) * B, H:2 * H] = h_b

    hn_ref[0, 0] = h_f
    hn_ref[0, 1] = h_b
    cn_ref[0, 0] = c_f
    cn_ref[0, 1] = c_b

    # Single lane-dense writeback of the full output slab, last layer only.
    @pl.when(layer == n_layers - 1)
    def _():
        y_ref[...] = act_scr[:, 0:2 * H]


# ---------------------------------------------------------------------------
# JAX wrapper: weight prep (gate reorder, transpose, pad, stack) + pallas_call
# ---------------------------------------------------------------------------

def bidirectional_lstm(inputs, params, h0, c0):
    """Matches BidirectionalLSTM.forward: returns (output [T,B,2H], hn, cn).

    params: list over layers of (w_ih [2,4H,Din_l], w_hh [2,4H,H],
                                 b_ih [2,4H], b_hh [2,4H]) in PyTorch gate
            order (i, f, g, o); direction 0 = forward, 1 = backward.
    h0, c0: [2*num_layers, B, H] ordered (layer0_fwd, layer0_bwd, layer1_fwd, ...).
    """
    T, B, Din0 = inputs.shape
    L = len(params)
    H = params[0][1].shape[-1]
    G = 4 * H
    Dmax = max(Din0, 2 * H)

    # Gate reorder (i,f,g,o) -> (i,f,o,g) along the 4H axis.
    perm = jnp.concatenate([jnp.arange(0, 2 * H),
                            jnp.arange(3 * H, 4 * H),
                            jnp.arange(2 * H, 3 * H)])

    wih_layers, whh_layers, b_layers = [], [], []
    for (w_ih, w_hh, b_ih, b_hh) in params:
        w_ih = w_ih[:, perm, :]                       # [2, 4H, Din_l]
        w_hh = w_hh[:, perm, :]                       # [2, 4H, H]
        b = (b_ih + b_hh)[:, perm]                    # [2, 4H]
        w_ih_t = jnp.transpose(w_ih, (0, 2, 1))       # [2, Din_l, 4H]
        din = w_ih_t.shape[1]
        if din < Dmax:                                # zero-pad contracted dim
            w_ih_t = jnp.pad(w_ih_t, ((0, 0), (0, Dmax - din), (0, 0)))
        wih_layers.append(jnp.concatenate([w_ih_t[0], w_ih_t[1]], axis=-1))  # [Dmax, 2*4H]
        whh_layers.append(jnp.transpose(w_hh, (0, 2, 1)))                    # [2, H, 4H]
        b_layers.append(jnp.concatenate([b[0], b[1]], axis=-1)[None, :])     # [1, 2*4H]

    wih_all = jnp.stack(wih_layers, axis=0)           # [L, Dmax, 2*4H]
    whh_all = jnp.stack(whh_layers, axis=0)           # [L, 2, H, 4H]
    b_all = jnp.stack(b_layers, axis=0)               # [L, 1, 2*4H]

    x_pad = inputs
    if Din0 < Dmax:
        x_pad = jnp.pad(inputs, ((0, 0), (0, 0), (0, Dmax - Din0)))
    x_flat = x_pad.reshape(T * B, Dmax)

    h0r = h0.reshape(L, 2, B, H)
    c0r = c0.reshape(L, 2, B, H)

    y_flat, hn, cn = pl.pallas_call(
        _bilstm_stack_kernel,
        out_shape=(
            jax.ShapeDtypeStruct((T * B, 2 * H), jnp.float32),   # output slab
            jax.ShapeDtypeStruct((L, 2, B, H), jnp.float32),     # hn
            jax.ShapeDtypeStruct((L, 2, B, H), jnp.float32),     # cn
        ),
        grid_spec=pltpu.PrefetchScalarGridSpec(
            num_scalar_prefetch=0,
            grid=(L,),
            in_specs=[
                pl.BlockSpec((T * B, Dmax), lambda l: (0, 0)),        # x (resident)
                pl.BlockSpec((1, Dmax, 2 * G), lambda l: (l, 0, 0)),  # W_ih^T per layer
                pl.BlockSpec((1, 2, H, G), lambda l: (l, 0, 0, 0)),   # W_hh^T per layer
                pl.BlockSpec((1, 1, 2 * G), lambda l: (l, 0, 0)),     # bias per layer
                pl.BlockSpec((1, 2, B, H), lambda l: (l, 0, 0, 0)),   # h0 per layer
                pl.BlockSpec((1, 2, B, H), lambda l: (l, 0, 0, 0)),   # c0 per layer
            ],
            out_specs=[
                pl.BlockSpec((T * B, 2 * H), lambda l: (0, 0)),       # y (resident)
                pl.BlockSpec((1, 2, B, H), lambda l: (l, 0, 0, 0)),   # hn per layer
                pl.BlockSpec((1, 2, B, H), lambda l: (l, 0, 0, 0)),   # cn per layer
            ],
            scratch_shapes=[
                pltpu.VMEM((T * B, Dmax), jnp.float32),    # inter-layer activation
                pltpu.VMEM((T * B, 2 * G), jnp.float32),   # hoisted gate projections
            ],
        ),
        compiler_params=pltpu.CompilerParams(
            dimension_semantics=("arbitrary",),   # layers chain through act_scr
        ),
    )(x_flat, wih_all, whh_all, b_all, h0r, c0r)

    y = y_flat.reshape(T, B, 2 * H)
    return y, hn.reshape(2 * L, B, H), cn.reshape(2 * L, B, H)


# ---------------------------------------------------------------------------
# Pure-JAX reference (independent path: unpermuted weights, standard formulas)
# ---------------------------------------------------------------------------

def _bilstm_ref(x, params, h0, c0):
    T = x.shape[0]
    hn_list, cn_list = [], []
    layer_in = x
    for li, (w_ih, w_hh, b_ih, b_hh) in enumerate(params):
        H = w_hh.shape[-1]
        y_dirs = []
        for d in range(2):
            wi, wh = w_ih[d], w_hh[d]
            b = (b_ih[d] + b_hh[d])[None, :]
            h = h0[2 * li + d]
            c = c0[2 * li + d]
            order = range(T) if d == 0 else range(T - 1, -1, -1)
            outs = [None] * T
            for t in order:
                g = (jnp.dot(layer_in[t], wi.T, precision=jax.lax.Precision.HIGHEST)
                     + jnp.dot(h, wh.T, precision=jax.lax.Precision.HIGHEST) + b)
                i = jax.nn.sigmoid(g[:, 0:H])
                f = jax.nn.sigmoid(g[:, H:2 * H])
                gg = jnp.tanh(g[:, 2 * H:3 * H])
                o = jax.nn.sigmoid(g[:, 3 * H:4 * H])
                c = f * c + i * gg
                h = o * jnp.tanh(c)
                outs[t] = h
            hn_list.append(h)
            cn_list.append(c)
            y_dirs.append(jnp.stack(outs, axis=0))
        layer_in = jnp.concatenate(y_dirs, axis=-1)
    return layer_in, jnp.stack(hn_list, axis=0), jnp.stack(cn_list, axis=0)


# ---------------------------------------------------------------------------
# Demo / self-test
# ---------------------------------------------------------------------------

if __name__ == "__main__":
    key = jax.random.PRNGKey(0)

    layer_sizes = [32, 32]     # 2-layer bidirectional LSTM, hidden_size = 32
    batch_size = 2
    vector_dim = 64
    seq_len = 8
    H = layer_sizes[0]
    num_layers = len(layer_sizes)

    keys = iter(jax.random.split(key, 4 * num_layers + 3))
    bound = 1.0 / (H ** 0.5)

    params = []
    for layer_idx in range(num_layers):
        din = vector_dim if layer_idx == 0 else 2 * H
        w_ih = jax.random.uniform(next(keys), (2, 4 * H, din),
                                  minval=-bound, maxval=bound, dtype=jnp.float32)
        w_hh = jax.random.uniform(next(keys), (2, 4 * H, H),
                                  minval=-bound, maxval=bound, dtype=jnp.float32)
        b_ih = jax.random.uniform(next(keys), (2, 4 * H),
                                  minval=-bound, maxval=bound, dtype=jnp.float32)
        b_hh = jax.random.uniform(next(keys), (2, 4 * H),
                                  minval=-bound, maxval=bound, dtype=jnp.float32)
        params.append((w_ih, w_hh, b_ih, b_hh))

    x = jax.random.normal(next(keys), (seq_len, batch_size, vector_dim),
                          dtype=jnp.float32)
    # forward() uses torch.rand for (h0, c0); drawn here with a fixed key so
    # the run is deterministic.
    h0 = jax.random.uniform(next(keys), (2 * num_layers, batch_size, H),
                            dtype=jnp.float32)
    c0 = jax.random.uniform(next(keys), (2 * num_layers, batch_size, H),
                            dtype=jnp.float32)

    fwd = jax.jit(bidirectional_lstm)
    out, hn, cn = jax.block_until_ready(fwd(x, params, h0, c0))
    ref_out, ref_hn, ref_cn = _bilstm_ref(x, params, h0, c0)

    assert out.shape == (seq_len, batch_size, 2 * H), out.shape
    assert hn.shape == (2 * num_layers, batch_size, H), hn.shape
    assert cn.shape == (2 * num_layers, batch_size, H), cn.shape
    assert jnp.allclose(out, ref_out, atol=2e-4, rtol=2e-4), "output mismatch"
    assert jnp.allclose(hn, ref_hn, atol=2e-4, rtol=2e-4), "hn mismatch"
    assert jnp.allclose(cn, ref_cn, atol=2e-4, rtol=2e-4), "cn mismatch"
    print("KERNEL_OK")
</pallas_src>

<mosaic_0001>
module attributes {stable_mosaic.version = 11 : i64} {
  func.func @_bilstm_stack_kernel(%arg0: i32, %arg1: memref<16x64xf32, #tpu.memory_space<vmem>>, %arg2: memref<1x64x256xf32, #tpu.memory_space<vmem>>, %arg3: memref<1x2x32x128xf32, #tpu.memory_space<vmem>>, %arg4: memref<1x1x256xf32, #tpu.memory_space<vmem>>, %arg5: memref<1x2x2x32xf32, #tpu.memory_space<vmem>>, %arg6: memref<1x2x2x32xf32, #tpu.memory_space<vmem>>, %arg7: memref<16x64xf32, #tpu.memory_space<vmem>>, %arg8: memref<1x2x2x32xf32, #tpu.memory_space<vmem>>, %arg9: memref<1x2x2x32xf32, #tpu.memory_space<vmem>>, %arg10: memref<16x64xf32, #tpu.memory_space<vmem>>, %arg11: memref<16x256xf32, #tpu.memory_space<vmem>>) attributes {dimension_semantics = [#tpu.dimension_semantics<arbitrary>], iteration_bounds = array<i64: 2>, scalar_prefetch = 0 : i64, scratch_operands = 2 : i64, tpu.core_type = #tpu.core_type<tc>, window_params = [{pipeline_mode = #tpu.pipeline_mode<synchronous>, transform_indices = @transform_0, window_bounds = array<i64: 16, 64>}, {transform_indices = @transform_1, window_bounds = array<i64: 1, 64, 256>}, {transform_indices = @transform_2, window_bounds = array<i64: 1, 2, 32, 128>}, {transform_indices = @transform_3, window_bounds = array<i64: 1, 1, 256>}, {transform_indices = @transform_4, window_bounds = array<i64: 1, 2, 2, 32>}, {transform_indices = @transform_5, window_bounds = array<i64: 1, 2, 2, 32>}, {pipeline_mode = #tpu.pipeline_mode<synchronous>, transform_indices = @transform_6, window_bounds = array<i64: 16, 64>}, {transform_indices = @transform_7, window_bounds = array<i64: 1, 2, 2, 32>}, {transform_indices = @transform_8, window_bounds = array<i64: 1, 2, 2, 32>}]} {
    %c0_i32 = arith.constant 0 : i32
    %0 = arith.cmpi eq, %arg0, %c0_i32 : i32
    %1 = arith.extui %0 : i1 to i32
    %c0_i32_0 = arith.constant 0 : i32
    %2 = arith.cmpi ne, %1, %c0_i32_0 : i32
    scf.if %2 {
      %c0_171 = arith.constant 0 : index
      %c0_172 = arith.constant 0 : index
      %457 = vector.load %arg1[%c0_171, %c0_172] : memref<16x64xf32, #tpu.memory_space<vmem>>, vector<16x64xf32>
      %c0_173 = arith.constant 0 : index
      %c0_174 = arith.constant 0 : index
      %458 = vector.load %arg10[%c0_173, %c0_174] : memref<16x64xf32, #tpu.memory_space<vmem>>, vector<16x64xf32>
      tpu.vector_store %arg10[%c0_173, %c0_174], %457 {strides = array<i32>} : memref<16x64xf32, #tpu.memory_space<vmem>>, vector<16x64xf32>,
    } else {
    }
    %c0 = arith.constant 0 : index
    %c0_1 = arith.constant 0 : index
    %3 = vector.load %arg10[%c0, %c0_1] : memref<16x64xf32, #tpu.memory_space<vmem>>, vector<16x64xf32>
    %c0_2 = arith.constant 0 : index
    %c0_3 = arith.constant 0 : index
    %c0_4 = arith.constant 0 : index
    %4 = vector.load %arg2[%c0_2, %c0_3, %c0_4] : memref<1x64x256xf32, #tpu.memory_space<vmem>>, vector<1x64x256xf32>
    %5 = vector.shape_cast %4 : vector<1x64x256xf32> to vector<64x256xf32>
    %6 = arith.truncf %3 : vector<16x64xf32> to vector<16x64xbf16>
    %7 = arith.extf %6 : vector<16x64xbf16> to vector<16x64xf32>
    %8 = arith.subf %3, %7 : vector<16x64xf32>
    %9 = arith.truncf %8 : vector<16x64xf32> to vector<16x64xbf16>
    %10 = arith.truncf %5 : vector<64x256xf32> to vector<64x256xbf16>
    %11 = arith.extf %10 : vector<64x256xbf16> to vector<64x256xf32>
    %12 = arith.subf %5, %11 : vector<64x256xf32>
    %13 = arith.truncf %12 : vector<64x256xf32> to vector<64x256xbf16>
    %cst = arith.constant dense<0.000000e+00> : vector<16x256xf32>
    %14 = tpu.matmul %6, %10, %cst {dimension_numbers = #tpu.dot_dimension_numbers<[1], [0], [0], [1], [0, 0, 1, 1], [], []>} : vector<16x64xbf16>, vector<64x256xbf16>, vector<16x256xf32> -> vector<16x256xf32>
    %cst_5 = arith.constant dense<0.000000e+00> : vector<16x256xf32>
    %15 = tpu.matmul %6, %13, %cst_5 {dimension_numbers = #tpu.dot_dimension_numbers<[1], [0], [0], [1], [0, 0, 1, 1], [], []>} : vector<16x64xbf16>, vector<64x256xbf16>, vector<16x256xf32> -> vector<16x256xf32>
    %16 = arith.addf %14, %15 : vector<16x256xf32>
    %cst_6 = arith.constant dense<0.000000e+00> : vector<16x256xf32>
    %17 = tpu.matmul %9, %10, %cst_6 {dimension_numbers = #tpu.dot_dimension_numbers<[1], [0], [0], [1], [0, 0, 1, 1], [], []>} : vector<16x64xbf16>, vector<64x256xbf16>, vector<16x256xf32> -> vector<16x256xf32>
    %18 = arith.addf %16, %17 : vector<16x256xf32>
    %c0_7 = arith.constant 0 : index
    %c0_8 = arith.constant 0 : index
    %c0_9 = arith.constant 0 : index
    %19 = vector.load %arg4[%c0_7, %c0_8, %c0_9] : memref<1x1x256xf32, #tpu.memory_space<vmem>>, vector<1x1x256xf32>
    %20 = vector.shape_cast %19 : vector<1x1x256xf32> to vector<1x256xf32>
    %21 = vector.broadcast %20 : vector<1x256xf32> to vector<16x256xf32>
    %22 = arith.addf %18, %21 : vector<16x256xf32>
    %c0_10 = arith.constant 0 : index
    %c0_11 = arith.constant 0 : index
    %23 = vector.load %arg11[%c0_10, %c0_11] : memref<16x256xf32, #tpu.memory_space<vmem>>, vector<16x256xf32>
    tpu.vector_store %arg11[%c0_10, %c0_11], %22 {strides = array<i32>} : memref<16x256xf32, #tpu.memory_space<vmem>>, vector<16x256xf32>,
    %c0_12 = arith.constant 0 : index
    %c0_13 = arith.constant 0 : index
    %c0_14 = arith.constant 0 : index
    %c0_15 = arith.constant 0 : index
    %24 = vector.load %arg3[%c0_12, %c0_13, %c0_14, %c0_15] : memref<1x2x32x128xf32, #tpu.memory_space<vmem>>, vector<1x1x32x128xf32>
    %25 = vector.shape_cast %24 : vector<1x1x32x128xf32> to vector<32x128xf32>
    %26 = vector.shape_cast %25 : vector<32x128xf32> to vector<1x32x128xf32>
    %27 = vector.shape_cast %26 : vector<1x32x128xf32> to vector<1x32x128xf32>
    %28 = vector.broadcast %27 : vector<1x32x128xf32> to vector<2x32x128xf32>
    %c0_16 = arith.constant 0 : index
    %c1 = arith.constant 1 : index
    %c0_17 = arith.constant 0 : index
    %c0_18 = arith.constant 0 : index
    %29 = vector.load %arg3[%c0_16, %c1, %c0_17, %c0_18] : memref<1x2x32x128xf32, #tpu.memory_space<vmem>>, vector<1x1x32x128xf32>
    %30 = vector.shape_cast %29 : vector<1x1x32x128xf32> to vector<32x128xf32>
    %31 = vector.shape_cast %30 : vector<32x128xf32> to vector<1x32x128xf32>
    %32 = vector.shape_cast %31 : vector<1x32x128xf32> to vector<1x32x128xf32>
    %33 = vector.broadcast %32 : vector<1x32x128xf32> to vector<2x32x128xf32>
    %c0_19 = arith.constant 0 : index
    %c0_20 = arith.constant 0 : index
    %c0_21 = arith.constant 0 : index
    %c0_22 = arith.constant 0 : index
    %34 = vector.load %arg5[%c0_19, %c0_20, %c0_21, %c0_22] : memref<1x2x2x32xf32, #tpu.memory_space<vmem>>, vector<1x1x2x32xf32>
    %35 = vector.shape_cast %34 : vector<1x1x2x32xf32> to vector<2x32xf32>
    %c0_23 = arith.constant 0 : index
    %c0_24 = arith.constant 0 : index
    %c0_25 = arith.constant 0 : index
    %c0_26 = arith.constant 0 : index
    %36 = vector.load %arg6[%c0_23, %c0_24, %c0_25, %c0_26] : memref<1x2x2x32xf32, #tpu.memory_space<vmem>>, vector<1x1x2x32xf32>
    %37 = vector.shape_cast %36 : vector<1x1x2x32xf32> to vector<2x32xf32>
    %c0_27 = arith.constant 0 : index
    %c1_28 = arith.constant 1 : index
    %c0_29 = arith.constant 0 : index
    %c0_30 = arith.constant 0 : index
    %38 = vector.load %arg5[%c0_27, %c1_28, %c0_29, %c0_30] : memref<1x2x2x32xf32, #tpu.memory_space<vmem>>, vector<1x1x2x32xf32>
    %39 = vector.shape_cast %38 : vector<1x1x2x32xf32> to vector<2x32xf32>
    %c0_31 = arith.constant 0 : index
    %c1_32 = arith.constant 1 : index
    %c0_33 = arith.constant 0 : index
    %c0_34 = arith.constant 0 : index
    %40 = vector.load %arg6[%c0_31, %c1_32, %c0_33, %c0_34] : memref<1x2x2x32xf32, #tpu.memory_space<vmem>>, vector<1x1x2x32xf32>
    %41 = vector.shape_cast %40 : vector<1x1x2x32xf32> to vector<2x32xf32>
    %c0_35 = arith.constant 0 : index
    %c0_36 = arith.constant 0 : index
    %42 = vector.load %arg11[%c0_35, %c0_36] : memref<16x256xf32, #tpu.memory_space<vmem>>, vector<2x128xf32>
    %c14 = arith.constant 14 : index
    %c128 = arith.constant 128 : index
    %43 = vector.load %arg11[%c14, %c128] : memref<16x256xf32, #tpu.memory_space<vmem>>, vector<2x128xf32>
    %44 = vector.shape_cast %35 : vector<2x32xf32> to vector<2x32x1xf32>
    %45 = vector.broadcast %44 : vector<2x32x1xf32> to vector<2x32x128xf32>
    %46 = arith.mulf %45, %28 : vector<2x32x128xf32>
    %cst_37 = arith.constant dense<0.000000e+00> : vector<2x128xf32>
    %47 = vector.multi_reduction <add>, %46, %cst_37 [1] : vector<2x32x128xf32> to vector<2x128xf32>
    %48 = arith.addf %42, %47 : vector<2x128xf32>
    %49 = vector.extract_strided_slice %48 {offsets = [0, 0], sizes = [2, 96], strides = [1, 1]} : vector<2x128xf32> to vector<2x96xf32>
    %cst_38 = arith.constant 5.000000e-01 : f32
    %50 = vector.broadcast %cst_38 : f32 to vector<2x96xf32>
    %51 = arith.mulf %50, %49 : vector<2x96xf32>
    %52 = math.tanh %51 : vector<2x96xf32>
    %cst_39 = arith.constant 1.000000e+00 : f32
    %53 = vector.broadcast %cst_39 : f32 to vector<2x96xf32>
    %54 = arith.addf %52, %53 : vector<2x96xf32>
    %cst_40 = arith.constant 5.000000e-01 : f32
    %55 = vector.broadcast %cst_40 : f32 to vector<2x96xf32>
    %56 = arith.mulf %55, %54 : vector<2x96xf32>
    %57 = vector.extract_strided_slice %48 {offsets = [0, 96], sizes = [2, 32], strides = [1, 1]} : vector<2x128xf32> to vector<2x32xf32>
    %58 = math.tanh %57 : vector<2x32xf32>
    %59 = vector.extract_strided_slice %56 {offsets = [0, 0], sizes = [2, 32], strides = [1, 1]} : vector<2x96xf32> to vector<2x32xf32>
    %60 = vector.extract_strided_slice %56 {offsets = [0, 32], sizes = [2, 32], strides = [1, 1]} : vector<2x96xf32> to vector<2x32xf32>
    %61 = vector.extract_strided_slice %56 {offsets = [0, 64], sizes = [2, 32], strides = [1, 1]} : vector<2x96xf32> to vector<2x32xf32>
    %62 = arith.mulf %60, %37 : vector<2x32xf32>
    %63 = arith.mulf %59, %58 : vector<2x32xf32>
    %64 = arith.addf %62, %63 : vector<2x32xf32>
    %65 = math.tanh %64 : vector<2x32xf32>
    %66 = arith.mulf %61, %65 : vector<2x32xf32>
    %67 = vector.shape_cast %39 : vector<2x32xf32> to vector<2x32x1xf32>
    %68 = vector.broadcast %67 : vector<2x32x1xf32> to vector<2x32x128xf32>
    %69 = arith.mulf %68, %33 : vector<2x32x128xf32>
    %cst_41 = arith.constant dense<0.000000e+00> : vector<2x128xf32>
    %70 = vector.multi_reduction <add>, %69, %cst_41 [1] : vector<2x32x128xf32> to vector<2x128xf32>
    %71 = arith.addf %43, %70 : vector<2x128xf32>
    %72 = vector.extract_strided_slice %71 {offsets = [0, 0], sizes = [2, 96], strides = [1, 1]} : vector<2x128xf32> to vector<2x96xf32>
    %cst_42 = arith.constant 5.000000e-01 : f32
    %73 = vector.broadcast %cst_42 : f32 to vector<2x96xf32>
    %74 = arith.mulf %73, %72 : vector<2x96xf32>
    %75 = math.tanh %74 : vector<2x96xf32>
    %cst_43 = arith.constant 1.000000e+00 : f32
    %76 = vector.broadcast %cst_43 : f32 to vector<2x96xf32>
    %77 = arith.addf %75, %76 : vector<2x96xf32>
    %cst_44 = arith.constant 5.000000e-01 : f32
    %78 = vector.broadcast %cst_44 : f32 to vector<2x96xf32>
    %79 = arith.mulf %78, %77 : vector<2x96xf32>
    %80 = vector.extract_strided_slice %71 {offsets = [0, 96], sizes = [2, 32], strides = [1, 1]} : vector<2x128xf32> to vector<2x32xf32>
    %81 = math.tanh %80 : vector<2x32xf32>
    %82 = vector.extract_strided_slice %79 {offsets = [0, 0], sizes = [2, 32], strides = [1, 1]} : vector<2x96xf32> to vector<2x32xf32>
    %83 = vector.extract_strided_slice %79 {offsets = [0, 32], sizes = [2, 32], strides = [1, 1]} : vector<2x96xf32> to vector<2x32xf32>
    %84 = vector.extract_strided_slice %79 {offsets = [0, 64], sizes = [2, 32], strides = [1, 1]} : vector<2x96xf32> to vector<2x32xf32>
    %85 = arith.mulf %83, %41 : vector<2x32xf32>
    %86 = arith.mulf %82, %81 : vector<2x32xf32>
    %87 = arith.addf %85, %86 : vector<2x32xf32>
    %88 = math.tanh %87 : vector<2x32xf32>
    %89 = arith.mulf %84, %88 : vector<2x32xf32>
    %c0_45 = arith.constant 0 : index
    %c0_46 = arith.constant 0 : index
    %90 = vector.load %arg10[%c0_45, %c0_46] : memref<16x64xf32, #tpu.memory_space<vmem>>, vector<2x32xf32>
    tpu.vector_store %arg10[%c0_45, %c0_46], %66 {strides = array<i32>} : memref<16x64xf32, #tpu.memory_space<vmem>>, vector<2x32xf32>,
    %c14_47 = arith.constant 14 : index
    %c32 = arith.constant 32 : index
    %91 = vector.load %arg10[%c14_47, %c32] : memref<16x64xf32, #tpu.memory_space<vmem>>, vector<2x32xf32>
    tpu.vector_store %arg10[%c14_47, %c32], %89 {strides = array<i32>} : memref<16x64xf32, #tpu.memory_space<vmem>>, vector<2x32xf32>,
    %c2 = arith.constant 2 : index
    %c0_48 = arith.constant 0 : index
    %92 = vector.load %arg11[%c2, %c0_48] : memref<16x256xf32, #tpu.memory_space<vmem>>, vector<2x128xf32>
    %c12 = arith.constant 12 : index
    %c128_49 = arith.constant 128 : index
    %93 = vector.load %arg11[%c12, %c128_49] : memref<16x256xf32, #tpu.memory_space<vmem>>, vector<2x128xf32>
    %94 = vector.shape_cast %66 : vector<2x32xf32> to vector<2x32x1xf32>
    %95 = vector.broadcast %94 : vector<2x32x1xf32> to vector<2x32x128xf32>
    %96 = arith.mulf %95, %28 : vector<2x32x128xf32>
    %cst_50 = arith.constant dense<0.000000e+00> : vector<2x128xf32>
    %97 = vector.multi_reduction <add>, %96, %cst_50 [1] : vector<2x32x128xf32> to vector<2x128xf32>
    %98 = arith.addf %92, %97 : vector<2x128xf32>
    %99 = vector.extract_strided_slice %98 {offsets = [0, 0], sizes = [2, 96], strides = [1, 1]} : vector<2x128xf32> to vector<2x96xf32>
    %cst_51 = arith.constant 5.000000e-01 : f32
    %100 = vector.broadcast %cst_51 : f32 to vector<2x96xf32>
    %101 = arith.mulf %100, %99 : vector<2x96xf32>
    %102 = math.tanh %101 : vector<2x96xf32>
    %cst_52 = arith.constant 1.000000e+00 : f32
    %103 = vector.broadcast %cst_52 : f32 to vector<2x96xf32>
    %104 = arith.addf %102, %103 : vector<2x96xf32>
    %cst_53 = arith.constant 5.000000e-01 : f32
    %105 = vector.broadcast %cst_53 : f32 to vector<2x96xf32>
    %106 = arith.mulf %105, %104 : vector<2x96xf32>
    %107 = vector.extract_strided_slice %98 {offsets = [0, 96], sizes = [2, 32], strides = [1, 1]} : vector<2x128xf32> to vector<2x32xf32>
    %108 = math.tanh %107 : vector<2x32xf32>
    %109 = vector.extract_strided_slice %106 {offsets = [0, 0], sizes = [2, 32], strides = [1, 1]} : vector<2x96xf32> to vector<2x32xf32>
    %110 = vector.extract_strided_slice %106 {offsets = [0, 32], sizes = [2, 32], strides = [1, 1]} : vector<2x96xf32> to vector<2x32xf32>
    %111 = vector.extract_strided_slice %106 {offsets = [0, 64], sizes = [2, 32], strides = [1, 1]} : vector<2x96xf32> to vector<2x32xf32>
    %112 = arith.mulf %110, %64 : vector<2x32xf32>
    %113 = arith.mulf %109, %108 : vector<2x32xf32>
    %114 = arith.addf %112, %113 : vector<2x32xf32>
    %115 = math.tanh %114 : vector<2x32xf32>
    %116 = arith.mulf %111, %115 : vector<2x32xf32>
    %117 = vector.shape_cast %89 : vector<2x32xf32> to vector<2x32x1xf32>
    %118 = vector.broadcast %117 : vector<2x32x1xf32> to vector<2x32x128xf32>
    %119 = arith.mulf %118, %33 : vector<2x32x128xf32>
    %cst_54 = arith.constant dense<0.000000e+00> : vector<2x128xf32>
    %120 = vector.multi_reduction <add>, %119, %cst_54 [1] : vector<2x32x128xf32> to vector<2x128xf32>
    %121 = arith.addf %93, %120 : vector<2x128xf32>
    %122 = vector.extract_strided_slice %121 {offsets = [0, 0], sizes = [2, 96], strides = [1, 1]} : vector<2x128xf32> to vector<2x96xf32>
    %cst_55 = arith.constant 5.000000e-01 : f32
    %123 = vector.broadcast %cst_55 : f32 to vector<2x96xf32>
    %124 = arith.mulf %123, %122 : vector<2x96xf32>
    %125 = math.tanh %124 : vector<2x96xf32>
    %cst_56 = arith.constant 1.000000e+00 : f32
    %126 = vector.broadcast %cst_56 : f32 to vector<2x96xf32>
    %127 = arith.addf %125, %126 : vector<2x96xf32>
    %cst_57 = arith.constant 5.000000e-01 : f32
    %128 = vector.broadcast %cst_57 : f32 to vector<2x96xf32>
    %129 = arith.mulf %128, %127 : vector<2x96xf32>
    %130 = vector.extract_strided_slice %121 {offsets = [0, 96], sizes = [2, 32], strides = [1, 1]} : vector<2x128xf32> to vector<2x32xf32>
    %131 = math.tanh %130 : vector<2x32xf32>
    %132 = vector.extract_strided_slice %129 {offsets = [0, 0], sizes = [2, 32], strides = [1, 1]} : vector<2x96xf32> to vector<2x32xf32>
    %133 = vector.extract_strided_slice %129 {offsets = [0, 32], sizes = [2, 32], strides = [1, 1]} : vector<2x96xf32> to vector<2x32xf32>
    %134 = vector.extract_strided_slice %129 {offsets = [0, 64], sizes = [2, 32], strides = [1, 1]} : vector<2x96xf32> to vector<2x32xf32>
    %135 = arith.mulf %133, %87 : vector<2x32xf32>
    %136 = arith.mulf %132, %131 : vector<2x32xf32>
    %137 = arith.addf %135, %136 : vector<2x32xf32>
    %138 = math.tanh %137 : vector<2x32xf32>
    %139 = arith.mulf %134, %138 : vector<2x32xf32>
    %c2_58 = arith.constant 2 : index
    %c0_59 = arith.constant 0 : index
    %140 = vector.load %arg10[%c2_58, %c0_59] : memref<16x64xf32, #tpu.memory_space<vmem>>, vector<2x32xf32>
    tpu.vector_store %arg10[%c2_58, %c0_59], %116 {strides = array<i32>} : memref<16x64xf32, #tpu.memory_space<vmem>>, vector<2x32xf32>,
    %c12_60 = arith.constant 12 : index
    %c32_61 = arith.constant 32 : index
    %141 = vector.load %arg10[%c12_60, %c32_61] : memref<16x64xf32, #tpu.memory_space<vmem>>, vector<2x32xf32>
    tpu.vector_store %arg10[%c12_60, %c32_61], %139 {strides = array<i32>} : memref<16x64xf32, #tpu.memory_space<vmem>>, vector<2x32xf32>,
    %c4 = arith.constant 4 : index
    %c0_62 = arith.constant 0 : index
    %142 = vector.load %arg11[%c4, %c0_62] : memref<16x256xf32, #tpu.memory_space<vmem>>, vector<2x128xf32>
    %c10 = arith.constant 10 : index
    %c128_63 = arith.constant 128 : index
    %143 = vector.load %arg11[%c10, %c128_63] : memref<16x256xf32, #tpu.memory_space<vmem>>, vector<2x128xf32>
    %144 = vector.shape_cast %116 : vector<2x32xf32> to vector<2x32x1xf32>
    %145 = vector.broadcast %144 : vector<2x32x1xf32> to vector<2x32x128xf32>
    %146 = arith.mulf %145, %28 : vector<2x32x128xf32>
    %cst_64 = arith.constant dense<0.000000e+00> : vector<2x128xf32>
    %147 = vector.multi_reduction <add>, %146, %cst_64 [1] : vector<2x32x128xf32> to vector<2x128xf32>
    %148 = arith.addf %142, %147 : vector<2x128xf32>
    %149 = vector.extract_strided_slice %148 {offsets = [0, 0], sizes = [2, 96], strides = [1, 1]} : vector<2x128xf32> to vector<2x96xf32>
    %cst_65 = arith.constant 5.000000e-01 : f32
    %150 = vector.broadcast %cst_65 : f32 to vector<2x96xf32>
    %151 = arith.mulf %150, %149 : vector<2x96xf32>
    %152 = math.tanh %151 : vector<2x96xf32>
    %cst_66 = arith.constant 1.000000e+00 : f32
    %153 = vector.broadcast %cst_66 : f32 to vector<2x96xf32>
    %154 = arith.addf %152, %153 : vector<2x96xf32>
    %cst_67 = arith.constant 5.000000e-01 : f32
    %155 = vector.broadcast %cst_67 : f32 to vector<2x96xf32>
    %156 = arith.mulf %155, %154 : vector<2x96xf32>
    %157 = vector.extract_strided_slice %148 {offsets = [0, 96], sizes = [2, 32], strides = [1, 1]} : vector<2x128xf32> to vector<2x32xf32>
    %158 = math.tanh %157 : vector<2x32xf32>
    %159 = vector.extract_strided_slice %156 {offsets = [0, 0], sizes = [2, 32], strides = [1, 1]} : vector<2x96xf32> to vector<2x32xf32>
    %160 = vector.extract_strided_slice %156 {offsets = [0, 32], sizes = [2, 32], strides = [1, 1]} : vector<2x96xf32> to vector<2x32xf32>
    %161 = vector.extract_strided_slice %156 {offsets = [0, 64], sizes = [2, 32], strides = [1, 1]} : vector<2x96xf32> to vector<2x32xf32>
    %162 = arith.mulf %160, %114 : vector<2x32xf32>
    %163 = arith.mulf %159, %158 : vector<2x32xf32>
    %164 = arith.addf %162, %163 : vector<2x32xf32>
    %165 = math.tanh %164 : vector<2x32xf32>
    %166 = arith.mulf %161, %165 : vector<2x32xf32>
    %167 = vector.shape_cast %139 : vector<2x32xf32> to vector<2x32x1xf32>
    %168 = vector.broadcast %167 : vector<2x32x1xf32> to vector<2x32x128xf32>
    %169 = arith.mulf %168, %33 : vector<2x32x128xf32>
    %cst_68 = arith.constant dense<0.000000e+00> : vector<2x128xf32>
    %170 = vector.multi_reduction <add>, %169, %cst_68 [1] : vector<2x32x128xf32> to vector<2x128xf32>
    %171 = arith.addf %143, %170 : vector<2x128xf32>
    %172 = vector.extract_strided_slice %171 {offsets = [0, 0], sizes = [2, 96], strides = [1, 1]} : vector<2x128xf32> to vector<2x96xf32>
    %cst_69 = arith.constant 5.000000e-01 : f32
    %173 = vector.broadcast %cst_69 : f32 to vector<2x96xf32>
    %174 = arith.mulf %173, %172 : vector<2x96xf32>
    %175 = math.tanh %174 : vector<2x96xf32>
    %cst_70 = arith.constant 1.000000e+00 : f32
    %176 = vector.broadcast %cst_70 : f32 to vector<2x96xf32>
    %177 = arith.addf %175, %176 : vector<2x96xf32>
    %cst_71 = arith.constant 5.000000e-01 : f32
    %178 = vector.broadcast %cst_71 : f32 to vector<2x96xf32>
    %179 = arith.mulf %178, %177 : vector<2x96xf32>
    %180 = vector.extract_strided_slice %171 {offsets = [0, 96], sizes = [2, 32], strides = [1, 1]} : vector<2x128xf32> to vector<2x32xf32>
    %181 = math.tanh %180 : vector<2x32xf32>
    %182 = vector.extract_strided_slice %179 {offsets = [0, 0], sizes = [2, 32], strides = [1, 1]} : vector<2x96xf32> to vector<2x32xf32>
    %183 = vector.extract_strided_slice %179 {offsets = [0, 32], sizes = [2, 32], strides = [1, 1]} : vector<2x96xf32> to vector<2x32xf32>
    %184 = vector.extract_strided_slice %179 {offsets = [0, 64], sizes = [2, 32], strides = [1, 1]} : vector<2x96xf32> to vector<2x32xf32>
    %185 = arith.mulf %183, %137 : vector<2x32xf32>
    %186 = arith.mulf %182, %181 : vector<2x32xf32>
    %187 = arith.addf %185, %186 : vector<2x32xf32>
    %188 = math.tanh %187 : vector<2x32xf32>
    %189 = arith.mulf %184, %188 : vector<2x32xf32>
    %c4_72 = arith.constant 4 : index
    %c0_73 = arith.constant 0 : index
    %190 = vector.load %arg10[%c4_72, %c0_73] : memref<16x64xf32, #tpu.memory_space<vmem>>, vector<2x32xf32>
    tpu.vector_store %arg10[%c4_72, %c0_73], %166 {strides = array<i32>} : memref<16x64xf32, #tpu.memory_space<vmem>>, vector<2x32xf32>,
    %c10_74 = arith.constant 10 : index
    %c32_75 = arith.constant 32 : index
    %191 = vector.load %arg10[%c10_74, %c32_75] : memref<16x64xf32, #tpu.memory_space<vmem>>, vector<2x32xf32>
    tpu.vector_store %arg10[%c10_74, %c32_75], %189 {strides = array<i32>} : memref<16x64xf32, #tpu.memory_space<vmem>>, vector<2x32xf32>,
    %c6 = arith.constant 6 : index
    %c0_76 = arith.constant 0 : index
    %192 = vector.load %arg11[%c6, %c0_76] : memref<16x256xf32, #tpu.memory_space<vmem>>, vector<2x128xf32>
    %c8 = arith.constant 8 : index
    %c128_77 = arith.constant 128 : index
    %193 = vector.load %arg11[%c8, %c128_77] : memref<16x256xf32, #tpu.memory_space<vmem>>, vector<2x128xf32>
    %194 = vector.shape_cast %166 : vector<2x32xf32> to vector<2x32x1xf32>
    %195 = vector.broadcast %194 : vector<2x32x1xf32> to vector<2x32x128xf32>
    %196 = arith.mulf %195, %28 : vector<2x32x128xf32>
    %cst_78 = arith.constant dense<0.000000e+00> : vector<2x128xf32>
    %197 = vector.multi_reduction <add>, %196, %cst_78 [1] : vector<2x32x128xf32> to vector<2x128xf32>
    %198 = arith.addf %192, %197 : vector<2x128xf32>
    %199 = vector.extract_strided_slice %198 {offsets = [0, 0], sizes = [2, 96], strides = [1, 1]} : vector<2x128xf32> to vector<2x96xf32>
    %cst_79 = arith.constant 5.000000e-01 : f32
    %200 = vector.broadcast %cst_79 : f32 to vector<2x96xf32>
    %201 = arith.mulf %200, %199 : vector<2x96xf32>
    %202 = math.tanh %201 : vector<2x96xf32>
    %cst_80 = arith.constant 1.000000e+00 : f32
    %203 = vector.broadcast %cst_80 : f32 to vector<2x96xf32>
    %204 = arith.addf %202, %203 : vector<2x96xf32>
    %cst_81 = arith.constant 5.000000e-01 : f32
    %205 = vector.broadcast %cst_81 : f32 to vector<2x96xf32>
    %206 = arith.mulf %205, %204 : vector<2x96xf32>
    %207 = vector.extract_strided_slice %198 {offsets = [0, 96], sizes = [2, 32], strides = [1, 1]} : vector<2x128xf32> to vector<2x32xf32>
    %208 = math.tanh %207 : vector<2x32xf32>
    %209 = vector.extract_strided_slice %206 {offsets = [0, 0], sizes = [2, 32], strides = [1, 1]} : vector<2x96xf32> to vector<2x32xf32>
    %210 = vector.extract_strided_slice %206 {offsets = [0, 32], sizes = [2, 32], strides = [1, 1]} : vector<2x96xf32> to vector<2x32xf32>
    %211 = vector.extract_strided_slice %206 {offsets = [0, 64], sizes = [2, 32], strides = [1, 1]} : vector<2x96xf32> to vector<2x32xf32>
    %212 = arith.mulf %210, %164 : vector<2x32xf32>
    %213 = arith.mulf %209, %208 : vector<2x32xf32>
    %214 = arith.addf %212, %213 : vector<2x32xf32>
    %215 = math.tanh %214 : vector<2x32xf32>
    %216 = arith.mulf %211, %215 : vector<2x32xf32>
    %217 = vector.shape_cast %189 : vector<2x32xf32> to vector<2x32x1xf32>
    %218 = vector.broadcast %217 : vector<2x32x1xf32> to vector<2x32x128xf32>
    %219 = arith.mulf %218, %33 : vector<2x32x128xf32>
    %cst_82 = arith.constant dense<0.000000e+00> : vector<2x128xf32>
    %220 = vector.multi_reduction <add>, %219, %cst_82 [1] : vector<2x32x128xf32> to vector<2x128xf32>
    %221 = arith.addf %193, %220 : vector<2x128xf32>
    %222 = vector.extract_strided_slice %221 {offsets = [0, 0], sizes = [2, 96], strides = [1, 1]} : vector<2x128xf32> to vector<2x96xf32>
    %cst_83 = arith.constant 5.000000e-01 : f32
    %223 = vector.broadcast %cst_83 : f32 to vector<2x96xf32>
    %224 = arith.mulf %223, %222 : vector<2x96xf32>
    %225 = math.tanh %224 : vector<2x96xf32>
    %cst_84 = arith.constant 1.000000e+00 : f32
    %226 = vector.broadcast %cst_84 : f32 to vector<2x96xf32>
    %227 = arith.addf %225, %226 : vector<2x96xf32>
    %cst_85 = arith.constant 5.000000e-01 : f32
    %228 = vector.broadcast %cst_85 : f32 to vector<2x96xf32>
    %229 = arith.mulf %228, %227 : vector<2x96xf32>
    %230 = vector.extract_strided_slice %221 {offsets = [0, 96], sizes = [2, 32], strides = [1, 1]} : vector<2x128xf32> to vector<2x32xf32>
    %231 = math.tanh %230 : vector<2x32xf32>
    %232 = vector.extract_strided_slice %229 {offsets = [0, 0], sizes = [2, 32], strides = [1, 1]} : vector<2x96xf32> to vector<2x32xf32>
    %233 = vector.extract_strided_slice %229 {offsets = [0, 32], sizes = [2, 32], strides = [1, 1]} : vector<2x96xf32> to vector<2x32xf32>
    %234 = vector.extract_strided_slice %229 {offsets = [0, 64], sizes = [2, 32], strides = [1, 1]} : vector<2x96xf32> to vector<2x32xf32>
    %235 = arith.mulf %233, %187 : vector<2x32xf32>
    %236 = arith.mulf %232, %231 : vector<2x32xf32>
    %237 = arith.addf %235, %236 : vector<2x32xf32>
    %238 = math.tanh %237 : vector<2x32xf32>
    %239 = arith.mulf %234, %238 : vector<2x32xf32>
    %c6_86 = arith.constant 6 : index
    %c0_87 = arith.constant 0 : index
    %240 = vector.load %arg10[%c6_86, %c0_87] : memref<16x64xf32, #tpu.memory_space<vmem>>, vector<2x32xf32>
    tpu.vector_store %arg10[%c6_86, %c0_87], %216 {strides = array<i32>} : memref<16x64xf32, #tpu.memory_space<vmem>>, vector<2x32xf32>,
    %c8_88 = arith.constant 8 : index
    %c32_89 = arith.constant 32 : index
    %241 = vector.load %arg10[%c8_88, %c32_89] : memref<16x64xf32, #tpu.memory_space<vmem>>, vector<2x32xf32>
    tpu.vector_store %arg10[%c8_88, %c32_89], %239 {strides = array<i32>} : memref<16x64xf32, #tpu.memory_space<vmem>>, vector<2x32xf32>,
    %c8_90 = arith.constant 8 : index
    %c0_91 = arith.constant 0 : index
    %242 = vector.load %arg11[%c8_90, %c0_91] : memref<16x256xf32, #tpu.memory_space<vmem>>, vector<2x128xf32>
    %c6_92 = arith.constant 6 : index
    %c128_93 = arith.constant 128 : index
    %243 = vector.load %arg11[%c6_92, %c128_93] : memref<16x256xf32, #tpu.memory_space<vmem>>, vector<2x128xf32>
    %244 = vector.shape_cast %216 : vector<2x32xf32> to vector<2x32x1xf32>
    %245 = vector.broadcast %244 : vector<2x32x1xf32> to vector<2x32x128xf32>
    %246 = arith.mulf %245, %28 : vector<2x32x128xf32>
    %cst_94 = arith.constant dense<0.000000e+00> : vector<2x128xf32>
    %247 = vector.multi_reduction <add>, %246, %cst_94 [1] : vector<2x32x128xf32> to vector<2x128xf32>
    %248 = arith.addf %242, %247 : vector<2x128xf32>
    %249 = vector.extract_strided_slice %248 {offsets = [0, 0], sizes = [2, 96], strides = [1, 1]} : vector<2x128xf32> to vector<2x96xf32>
    %cst_95 = arith.constant 5.000000e-01 : f32
    %250 = vector.broadcast %cst_95 : f32 to vector<2x96xf32>
    %251 = arith.mulf %250, %249 : vector<2x96xf32>
    %252 = math.tanh %251 : vector<2x96xf32>
    %cst_96 = arith.constant 1.000000e+00 : f32
    %253 = vector.broadcast %cst_96 : f32 to vector<2x96xf32>
    %254 = arith.addf %252, %253 : vector<2x96xf32>
    %cst_97 = arith.constant 5.000000e-01 : f32
    %255 = vector.broadcast %cst_97 : f32 to vector<2x96xf32>
    %256 = arith.mulf %255, %254 : vector<2x96xf32>
    %257 = vector.extract_strided_slice %248 {offsets = [0, 96], sizes = [2, 32], strides = [1, 1]} : vector<2x128xf32> to vector<2x32xf32>
    %258 = math.tanh %257 : vector<2x32xf32>
    %259 = vector.extract_strided_slice %256 {offsets = [0, 0], sizes = [2, 32], strides = [1, 1]} : vector<2x96xf32> to vector<2x32xf32>
    %260 = vector.extract_strided_slice %256 {offsets = [0, 32], sizes = [2, 32], strides = [1, 1]} : vector<2x96xf32> to vector<2x32xf32>
    %261 = vector.extract_strided_slice %256 {offsets = [0, 64], sizes = [2, 32], strides = [1, 1]} : vector<2x96xf32> to vector<2x32xf32>
    %262 = arith.mulf %260, %214 : vector<2x32xf32>
    %263 = arith.mulf %259, %258 : vector<2x32xf32>
    %264 = arith.addf %262, %263 : vector<2x32xf32>
    %265 = math.tanh %264 : vector<2x32xf32>
    %266 = arith.mulf %261, %265 : vector<2x32xf32>
    %267 = vector.shape_cast %239 : vector<2x32xf32> to vector<2x32x1xf32>
    %268 = vector.broadcast %267 : vector<2x32x1xf32> to vector<2x32x128xf32>
    %269 = arith.mulf %268, %33 : vector<2x32x128xf32>
    %cst_98 = arith.constant dense<0.000000e+00> : vector<2x128xf32>
    %270 = vector.multi_reduction <add>, %269, %cst_98 [1] : vector<2x32x128xf32> to vector<2x128xf32>
    %271 = arith.addf %243, %270 : vector<2x128xf32>
    %272 = vector.extract_strided_slice %271 {offsets = [0, 0], sizes = [2, 96], strides = [1, 1]} : vector<2x128xf32> to vector<2x96xf32>
    %cst_99 = arith.constant 5.000000e-01 : f32
    %273 = vector.broadcast %cst_99 : f32 to vector<2x96xf32>
    %274 = arith.mulf %273, %272 : vector<2x96xf32>
    %275 = math.tanh %274 : vector<2x96xf32>
    %cst_100 = arith.constant 1.000000e+00 : f32
    %276 = vector.broadcast %cst_100 : f32 to vector<2x96xf32>
    %277 = arith.addf %275, %276 : vector<2x96xf32>
    %cst_101 = arith.constant 5.000000e-01 : f32
    %278 = vector.broadcast %cst_101 : f32 to vector<2x96xf32>
    %279 = arith.mulf %278, %277 : vector<2x96xf32>
    %280 = vector.extract_strided_slice %271 {offsets = [0, 96], sizes = [2, 32], strides = [1, 1]} : vector<2x128xf32> to vector<2x32xf32>
    %281 = math.tanh %280 : vector<2x32xf32>
    %282 = vector.extract_strided_slice %279 {offsets = [0, 0], sizes = [2, 32], strides = [1, 1]} : vector<2x96xf32> to vector<2x32xf32>
    %283 = vector.extract_strided_slice %279 {offsets = [0, 32], sizes = [2, 32], strides = [1, 1]} : vector<2x96xf32> to vector<2x32xf32>
    %284 = vector.extract_strided_slice %279 {offsets = [0, 64], sizes = [2, 32], strides = [1, 1]} : vector<2x96xf32> to vector<2x32xf32>
    %285 = arith.mulf %283, %237 : vector<2x32xf32>
    %286 = arith.mulf %282, %281 : vector<2x32xf32>
    %287 = arith.addf %285, %286 : vector<2x32xf32>
    %288 = math.tanh %287 : vector<2x32xf32>
    %289 = arith.mulf %284, %288 : vector<2x32xf32>
    %c8_102 = arith.constant 8 : index
    %c0_103 = arith.constant 0 : index
    %290 = vector.load %arg10[%c8_102, %c0_103] : memref<16x64xf32, #tpu.memory_space<vmem>>, vector<2x32xf32>
    tpu.vector_store %arg10[%c8_102, %c0_103], %266 {strides = array<i32>} : memref<16x64xf32, #tpu.memory_space<vmem>>, vector<2x32xf32>,
    %c6_104 = arith.constant 6 : index
    %c32_105 = arith.constant 32 : index
    %291 = vector.load %arg10[%c6_104, %c32_105] : memref<16x64xf32, #tpu.memory_space<vmem>>, vector<2x32xf32>
    tpu.vector_store %arg10[%c6_104, %c32_105], %289 {strides = array<i32>} : memref<16x64xf32, #tpu.memory_space<vmem>>, vector<2x32xf32>,
    %c10_106 = arith.constant 10 : index
    %c0_107 = arith.constant 0 : index
    %292 = vector.load %arg11[%c10_106, %c0_107] : memref<16x256xf32, #tpu.memory_space<vmem>>, vector<2x128xf32>
    %c4_108 = arith.constant 4 : index
    %c128_109 = arith.constant 128 : index
    %293 = vector.load %arg11[%c4_108, %c128_109] : memref<16x256xf32, #tpu.memory_space<vmem>>, vector<2x128xf32>
    %294 = vector.shape_cast %266 : vector<2x32xf32> to vector<2x32x1xf32>
    %295 = vector.broadcast %294 : vector<2x32x1xf32> to vector<2x32x128xf32>
    %296 = arith.mulf %295, %28 : vector<2x32x128xf32>
    %cst_110 = arith.constant dense<0.000000e+00> : vector<2x128xf32>
    %297 = vector.multi_reduction <add>, %296, %cst_110 [1] : vector<2x32x128xf32> to vector<2x128xf32>
    %298 = arith.addf %292, %297 : vector<2x128xf32>
    %299 = vector.extract_strided_slice %298 {offsets = [0, 0], sizes = [2, 96], strides = [1, 1]} : vector<2x128xf32> to vector<2x96xf32>
    %cst_111 = arith.constant 5.000000e-01 : f32
    %300 = vector.broadcast %cst_111 : f32 to vector<2x96xf32>
    %301 = arith.mulf %300, %299 : vector<2x96xf32>
    %302 = math.tanh %301 : vector<2x96xf32>
    %cst_112 = arith.constant 1.000000e+00 : f32
    %303 = vector.broadcast %cst_112 : f32 to vector<2x96xf32>
    %304 = arith.addf %302, %303 : vector<2x96xf32>
    %cst_113 = arith.constant 5.000000e-01 : f32
    %305 = vector.broadcast %cst_113 : f32 to vector<2x96xf32>
    %306 = arith.mulf %305, %304 : vector<2x96xf32>
    %307 = vector.extract_strided_slice %298 {offsets = [0, 96], sizes = [2, 32], strides = [1, 1]} : vector<2x128xf32> to vector<2x32xf32>
    %308 = math.tanh %307 : vector<2x32xf32>
    %309 = vector.extract_strided_slice %306 {offsets = [0, 0], sizes = [2, 32], strides = [1, 1]} : vector<2x96xf32> to vector<2x32xf32>
    %310 = vector.extract_strided_slice %306 {offsets = [0, 32], sizes = [2, 32], strides = [1, 1]} : vector<2x96xf32> to vector<2x32xf32>
    %311 = vector.extract_strided_slice %306 {offsets = [0, 64], sizes = [2, 32], strides = [1, 1]} : vector<2x96xf32> to vector<2x32xf32>
    %312 = arith.mulf %310, %264 : vector<2x32xf32>
    %313 = arith.mulf %309, %308 : vector<2x32xf32>
    %314 = arith.addf %312, %313 : vector<2x32xf32>
    %315 = math.tanh %314 : vector<2x32xf32>
    %316 = arith.mulf %311, %315 : vector<2x32xf32>
    %317 = vector.shape_cast %289 : vector<2x32xf32> to vector<2x32x1xf32>
    %318 = vector.broadcast %317 : vector<2x32x1xf32> to vector<2x32x128xf32>
    %319 = arith.mulf %318, %33 : vector<2x32x128xf32>
    %cst_114 = arith.constant dense<0.000000e+00> : vector<2x128xf32>
    %320 = vector.multi_reduction <add>, %319, %cst_114 [1] : vector<2x32x128xf32> to vector<2x128xf32>
    %321 = arith.addf %293, %320 : vector<2x128xf32>
    %322 = vector.extract_strided_slice %321 {offsets = [0, 0], sizes = [2, 96], strides = [1, 1]} : vector<2x128xf32> to vector<2x96xf32>
    %cst_115 = arith.constant 5.000000e-01 : f32
    %323 = vector.broadcast %cst_115 : f32 to vector<2x96xf32>
    %324 = arith.mulf %323, %322 : vector<2x96xf32>
    %325 = math.tanh %324 : vector<2x96xf32>
    %cst_116 = arith.constant 1.000000e+00 : f32
    %326 = vector.broadcast %cst_116 : f32 to vector<2x96xf32>
    %327 = arith.addf %325, %326 : vector<2x96xf32>
    %cst_117 = arith.constant 5.000000e-01 : f32
    %328 = vector.broadcast %cst_117 : f32 to vector<2x96xf32>
    %329 = arith.mulf %328, %327 : vector<2x96xf32>
    %330 = vector.extract_strided_slice %321 {offsets = [0, 96], sizes = [2, 32], strides = [1, 1]} : vector<2x128xf32> to vector<2x32xf32>
    %331 = math.tanh %330 : vector<2x32xf32>
    %332 = vector.extract_strided_slice %329 {offsets = [0, 0], sizes = [2, 32], strides = [1, 1]} : vector<2x96xf32> to vector<2x32xf32>
    %333 = vector.extract_strided_slice %329 {offsets = [0, 32], sizes = [2, 32], strides = [1, 1]} : vector<2x96xf32> to vector<2x32xf32>
    %334 = vector.extract_strided_slice %329 {offsets = [0, 64], sizes = [2, 32], strides = [1, 1]} : vector<2x96xf32> to vector<2x32xf32>
    %335 = arith.mulf %333, %287 : vector<2x32xf32>
    %336 = arith.mulf %332, %331 : vector<2x32xf32>
    %337 = arith.addf %335, %336 : vector<2x32xf32>
    %338 = math.tanh %337 : vector<2x32xf32>
    %339 = arith.mulf %334, %338 : vector<2x32xf32>
    %c10_118 = arith.constant 10 : index
    %c0_119 = arith.constant 0 : index
    %340 = vector.load %arg10[%c10_118, %c0_119] : memref<16x64xf32, #tpu.memory_space<vmem>>, vector<2x32xf32>
    tpu.vector_store %arg10[%c10_118, %c0_119], %316 {strides = array<i32>} : memref<16x64xf32, #tpu.memory_space<vmem>>, vector<2x32xf32>,
    %c4_120 = arith.constant 4 : index
    %c32_121 = arith.constant 32 : index
    %341 = vector.load %arg10[%c4_120, %c32_121] : memref<16x64xf32, #tpu.memory_space<vmem>>, vector<2x32xf32>
    tpu.vector_store %arg10[%c4_120, %c32_121], %339 {strides = array<i32>} : memref<16x64xf32, #tpu.memory_space<vmem>>, vector<2x32xf32>,
    %c12_122 = arith.constant 12 : index
    %c0_123 = arith.constant 0 : index
    %342 = vector.load %arg11[%c12_122, %c0_123] : memref<16x256xf32, #tpu.memory_space<vmem>>, vector<2x128xf32>
    %c2_124 = arith.constant 2 : index
    %c128_125 = arith.constant 128 : index
    %343 = vector.load %arg11[%c2_124, %c128_125] : memref<16x256xf32, #tpu.memory_space<vmem>>, vector<2x128xf32>
    %344 = vector.shape_cast %316 : vector<2x32xf32> to vector<2x32x1xf32>
    %345 = vector.broadcast %344 : vector<2x32x1xf32> to vector<2x32x128xf32>
    %346 = arith.mulf %345, %28 : vector<2x32x128xf32>
    %cst_126 = arith.constant dense<0.000000e+00> : vector<2x128xf32>
    %347 = vector.multi_reduction <add>, %346, %cst_126 [1] : vector<2x32x128xf32> to vector<2x128xf32>
    %348 = arith.addf %342, %347 : vector<2x128xf32>
    %349 = vector.extract_strided_slice %348 {offsets = [0, 0], sizes = [2, 96], strides = [1, 1]} : vector<2x128xf32> to vector<2x96xf32>
    %cst_127 = arith.constant 5.000000e-01 : f32
    %350 = vector.broadcast %cst_127 : f32 to vector<2x96xf32>
    %351 = arith.mulf %350, %349 : vector<2x96xf32>
    %352 = math.tanh %351 : vector<2x96xf32>
    %cst_128 = arith.constant 1.000000e+00 : f32
    %353 = vector.broadcast %cst_128 : f32 to vector<2x96xf32>
    %354 = arith.addf %352, %353 : vector<2x96xf32>
    %cst_129 = arith.constant 5.000000e-01 : f32
    %355 = vector.broadcast %cst_129 : f32 to vector<2x96xf32>
    %356 = arith.mulf %355, %354 : vector<2x96xf32>
    %357 = vector.extract_strided_slice %348 {offsets = [0, 96], sizes = [2, 32], strides = [1, 1]} : vector<2x128xf32> to vector<2x32xf32>
    %358 = math.tanh %357 : vector<2x32xf32>
    %359 = vector.extract_strided_slice %356 {offsets = [0, 0], sizes = [2, 32], strides = [1, 1]} : vector<2x96xf32> to vector<2x32xf32>
    %360 = vector.extract_strided_slice %356 {offsets = [0, 32], sizes = [2, 32], strides = [1, 1]} : vector<2x96xf32> to vector<2x32xf32>
    %361 = vector.extract_strided_slice %356 {offsets = [0, 64], sizes = [2, 32], strides = [1, 1]} : vector<2x96xf32> to vector<2x32xf32>
    %362 = arith.mulf %360, %314 : vector<2x32xf32>
    %363 = arith.mulf %359, %358 : vector<2x32xf32>
    %364 = arith.addf %362, %363 : vector<2x32xf32>
    %365 = math.tanh %364 : vector<2x32xf32>
    %366 = arith.mulf %361, %365 : vector<2x32xf32>
    %367 = vector.shape_cast %339 : vector<2x32xf32> to vector<2x32x1xf32>
    %368 = vector.broadcast %367 : vector<2x32x1xf32> to vector<2x32x128xf32>
    %369 = arith.mulf %368, %33 : vector<2x32x128xf32>
    %cst_130 = arith.constant dense<0.000000e+00> : vector<2x128xf32>
    %370 = vector.multi_reduction <add>, %369, %cst_130 [1] : vector<2x32x128xf32> to vector<2x128xf32>
    %371 = arith.addf %343, %370 : vector<2x128xf32>
    %372 = vector.extract_strided_slice %371 {offsets = [0, 0], sizes = [2, 96], strides = [1, 1]} : vector<2x128xf32> to vector<2x96xf32>
    %cst_131 = arith.constant 5.000000e-01 : f32
    %373 = vector.broadcast %cst_131 : f32 to vector<2x96xf32>
    %374 = arith.mulf %373, %372 : vector<2x96xf32>
    %375 = math.tanh %374 : vector<2x96xf32>
    %cst_132 = arith.constant 1.000000e+00 : f32
    %376 = vector.broadcast %cst_132 : f32 to vector<2x96xf32>
    %377 = arith.addf %375, %376 : vector<2x96xf32>
    %cst_133 = arith.constant 5.000000e-01 : f32
    %378 = vector.broadcast %cst_133 : f32 to vector<2x96xf32>
    %379 = arith.mulf %378, %377 : vector<2x96xf32>
    %380 = vector.extract_strided_slice %371 {offsets = [0, 96], sizes = [2, 32], strides = [1, 1]} : vector<2x128xf32> to vector<2x32xf32>
    %381 = math.tanh %380 : vector<2x32xf32>
    %382 = vector.extract_strided_slice %379 {offsets = [0, 0], sizes = [2, 32], strides = [1, 1]} : vector<2x96xf32> to vector<2x32xf32>
    %383 = vector.extract_strided_slice %379 {offsets = [0, 32], sizes = [2, 32], strides = [1, 1]} : vector<2x96xf32> to vector<2x32xf32>
    %384 = vector.extract_strided_slice %379 {offsets = [0, 64], sizes = [2, 32], strides = [1, 1]} : vector<2x96xf32> to vector<2x32xf32>
    %385 = arith.mulf %383, %337 : vector<2x32xf32>
    %386 = arith.mulf %382, %381 : vector<2x32xf32>
    %387 = arith.addf %385, %386 : vector<2x32xf32>
    %388 = math.tanh %387 : vector<2x32xf32>
    %389 = arith.mulf %384, %388 : vector<2x32xf32>
    %c12_134 = arith.constant 12 : index
    %c0_135 = arith.constant 0 : index
    %390 = vector.load %arg10[%c12_134, %c0_135] : memref<16x64xf32, #tpu.memory_space<vmem>>, vector<2x32xf32>
    tpu.vector_store %arg10[%c12_134, %c0_135], %366 {strides = array<i32>} : memref<16x64xf32, #tpu.memory_space<vmem>>, vector<2x32xf32>,
    %c2_136 = arith.constant 2 : index
    %c32_137 = arith.constant 32 : index
    %391 = vector.load %arg10[%c2_136, %c32_137] : memref<16x64xf32, #tpu.memory_space<vmem>>, vector<2x32xf32>
    tpu.vector_store %arg10[%c2_136, %c32_137], %389 {strides = array<i32>} : memref<16x64xf32, #tpu.memory_space<vmem>>, vector<2x32xf32>,
    %c14_138 = arith.constant 14 : index
    %c0_139 = arith.constant 0 : index
    %392 = vector.load %arg11[%c14_138, %c0_139] : memref<16x256xf32, #tpu.memory_space<vmem>>, vector<2x128xf32>
    %c0_140 = arith.constant 0 : index
    %c128_141 = arith.constant 128 : index
    %393 = vector.load %arg11[%c0_140, %c128_141] : memref<16x256xf32, #tpu.memory_space<vmem>>, vector<2x128xf32>
    %394 = vector.shape_cast %366 : vector<2x32xf32> to vector<2x32x1xf32>
    %395 = vector.broadcast %394 : vector<2x32x1xf32> to vector<2x32x128xf32>
    %396 = arith.mulf %395, %28 : vector<2x32x128xf32>
    %cst_142 = arith.constant dense<0.000000e+00> : vector<2x128xf32>
    %397 = vector.multi_reduction <add>, %396, %cst_142 [1] : vector<2x32x128xf32> to vector<2x128xf32>
    %398 = arith.addf %392, %397 : vector<2x128xf32>
    %399 = vector.extract_strided_slice %398 {offsets = [0, 0], sizes = [2, 96], strides = [1, 1]} : vector<2x128xf32> to vector<2x96xf32>
    %cst_143 = arith.constant 5.000000e-01 : f32
    %400 = vector.broadcast %cst_143 : f32 to vector<2x96xf32>
    %401 = arith.mulf %400, %399 : vector<2x96xf32>
    %402 = math.tanh %401 : vector<2x96xf32>
    %cst_144 = arith.constant 1.000000e+00 : f32
    %403 = vector.broadcast %cst_144 : f32 to vector<2x96xf32>
    %404 = arith.addf %402, %403 : vector<2x96xf32>
    %cst_145 = arith.constant 5.000000e-01 : f32
    %405 = vector.broadcast %cst_145 : f32 to vector<2x96xf32>
    %406 = arith.mulf %405, %404 : vector<2x96xf32>
    %407 = vector.extract_strided_slice %398 {offsets = [0, 96], sizes = [2, 32], strides = [1, 1]} : vector<2x128xf32> to vector<2x32xf32>
    %408 = math.tanh %407 : vector<2x32xf32>
    %409 = vector.extract_strided_slice %406 {offsets = [0, 0], sizes = [2, 32], strides = [1, 1]} : vector<2x96xf32> to vector<2x32xf32>
    %410 = vector.extract_strided_slice %406 {offsets = [0, 32], sizes = [2, 32], strides = [1, 1]} : vector<2x96xf32> to vector<2x32xf32>
    %411 = vector.extract_strided_slice %406 {offsets = [0, 64], sizes = [2, 32], strides = [1, 1]} : vector<2x96xf32> to vector<2x32xf32>
    %412 = arith.mulf %410, %364 : vector<2x32xf32>
    %413 = arith.mulf %409, %408 : vector<2x32xf32>
    %414 = arith.addf %412, %413 : vector<2x32xf32>
    %415 = math.tanh %414 : vector<2x32xf32>
    %416 = arith.mulf %411, %415 : vector<2x32xf32>
    %417 = vector.shape_cast %389 : vector<2x32xf32> to vector<2x32x1xf32>
    %418 = vector.broadcast %417 : vector<2x32x1xf32> to vector<2x32x128xf32>
    %419 = arith.mulf %418, %33 : vector<2x32x128xf32>
    %cst_146 = arith.constant dense<0.000000e+00> : vector<2x128xf32>
    %420 = vector.multi_reduction <add>, %419, %cst_146 [1] : vector<2x32x128xf32> to vector<2x128xf32>
    %421 = arith.addf %393, %420 : vector<2x128xf32>
    %422 = vector.extract_strided_slice %421 {offsets = [0, 0], sizes = [2, 96], strides = [1, 1]} : vector<2x128xf32> to vector<2x96xf32>
    %cst_147 = arith.constant 5.000000e-01 : f32
    %423 = vector.broadcast %cst_147 : f32 to vector<2x96xf32>
    %424 = arith.mulf %423, %422 : vector<2x96xf32>
    %425 = math.tanh %424 : vector<2x96xf32>
    %cst_148 = arith.constant 1.000000e+00 : f32
    %426 = vector.broadcast %cst_148 : f32 to vector<2x96xf32>
    %427 = arith.addf %425, %426 : vector<2x96xf32>
    %cst_149 = arith.constant 5.000000e-01 : f32
    %428 = vector.broadcast %cst_149 : f32 to vector<2x96xf32>
    %429 = arith.mulf %428, %427 : vector<2x96xf32>
    %430 = vector.extract_strided_slice %421 {offsets = [0, 96], sizes = [2, 32], strides = [1, 1]} : vector<2x128xf32> to vector<2x32xf32>
    %431 = math.tanh %430 : vector<2x32xf32>
    %432 = vector.extract_strided_slice %429 {offsets = [0, 0], sizes = [2, 32], strides = [1, 1]} : vector<2x96xf32> to vector<2x32xf32>
    %433 = vector.extract_strided_slice %429 {offsets = [0, 32], sizes = [2, 32], strides = [1, 1]} : vector<2x96xf32> to vector<2x32xf32>
    %434 = vector.extract_strided_slice %429 {offsets = [0, 64], sizes = [2, 32], strides = [1, 1]} : vector<2x96xf32> to vector<2x32xf32>
    %435 = arith.mulf %433, %387 : vector<2x32xf32>
    %436 = arith.mulf %432, %431 : vector<2x32xf32>
    %437 = arith.addf %435, %436 : vector<2x32xf32>
    %438 = math.tanh %437 : vector<2x32xf32>
    %439 = arith.mulf %434, %438 : vector<2x32xf32>
    %c14_150 = arith.constant 14 : index
    %c0_151 = arith.constant 0 : index
    %440 = vector.load %arg10[%c14_150, %c0_151] : memref<16x64xf32, #tpu.memory_space<vmem>>, vector<2x32xf32>
    tpu.vector_store %arg10[%c14_150, %c0_151], %416 {strides = array<i32>} : memref<16x64xf32, #tpu.memory_space<vmem>>, vector<2x32xf32>,
    %c0_152 = arith.constant 0 : index
    %c32_153 = arith.constant 32 : index
    %441 = vector.load %arg10[%c0_152, %c32_153] : memref<16x64xf32, #tpu.memory_space<vmem>>, vector<2x32xf32>
    tpu.vector_store %arg10[%c0_152, %c32_153], %439 {strides = array<i32>} : memref<16x64xf32, #tpu.memory_space<vmem>>, vector<2x32xf32>,
    %c0_154 = arith.constant 0 : index
    %c0_155 = arith.constant 0 : index
    %c0_156 = arith.constant 0 : index
    %c0_157 = arith.constant 0 : index
    %442 = vector.load %arg8[%c0_154, %c0_155, %c0_156, %c0_157] : memref<1x2x2x32xf32, #tpu.memory_space<vmem>>, vector<1x1x2x32xf32>
    %443 = vector.shape_cast %442 : vector<1x1x2x32xf32> to vector<2x32xf32>
    %444 = vector.shape_cast %416 : vector<2x32xf32> to vector<1x1x2x32xf32>
    tpu.vector_store %arg8[%c0_154, %c0_155, %c0_156, %c0_157], %444 {strides = array<i32>} : memref<1x2x2x32xf32, #tpu.memory_space<vmem>>, vector<1x1x2x32xf32>,
    %c0_158 = arith.constant 0 : index
    %c1_159 = arith.constant 1 : index
    %c0_160 = arith.constant 0 : index
    %c0_161 = arith.constant 0 : index
    %445 = vector.load %arg8[%c0_158, %c1_159, %c0_160, %c0_161] : memref<1x2x2x32xf32, #tpu.memory_space<vmem>>, vector<1x1x2x32xf32>
    %446 = vector.shape_cast %445 : vector<1x1x2x32xf32> to vector<2x32xf32>
    %447 = vector.shape_cast %439 : vector<2x32xf32> to vector<1x1x2x32xf32>
    tpu.vector_store %arg8[%c0_158, %c1_159, %c0_160, %c0_161], %447 {strides = array<i32>} : memref<1x2x2x32xf32, #tpu.memory_space<vmem>>, vector<1x1x2x32xf32>,
    %c0_162 = arith.constant 0 : index
    %c0_163 = arith.constant 0 : index
    %c0_164 = arith.constant 0 : index
    %c0_165 = arith.constant 0 : index
    %448 = vector.load %arg9[%c0_162, %c0_163, %c0_164, %c0_165] : memref<1x2x2x32xf32, #tpu.memory_space<vmem>>, vector<1x1x2x32xf32>
    %449 = vector.shape_cast %448 : vector<1x1x2x32xf32> to vector<2x32xf32>
    %450 = vector.shape_cast %414 : vector<2x32xf32> to vector<1x1x2x32xf32>
    tpu.vector_store %arg9[%c0_162, %c0_163, %c0_164, %c0_165], %450 {strides = array<i32>} : memref<1x2x2x32xf32, #tpu.memory_space<vmem>>, vector<1x1x2x32xf32>,
    %c0_166 = arith.constant 0 : index
    %c1_167 = arith.constant 1 : index
    %c0_168 = arith.constant 0 : index
    %c0_169 = arith.constant 0 : index
    %451 = vector.load %arg9[%c0_166, %c1_167, %c0_168, %c0_169] : memref<1x2x2x32xf32, #tpu.memory_space<vmem>>, vector<1x1x2x32xf32>
    %452 = vector.shape_cast %451 : vector<1x1x2x32xf32> to vector<2x32xf32>
    %453 = vector.shape_cast %437 : vector<2x32xf32> to vector<1x1x2x32xf32>
    tpu.vector_store %arg9[%c0_166, %c1_167, %c0_168, %c0_169], %453 {strides = array<i32>} : memref<1x2x2x32xf32, #tpu.memory_space<vmem>>, vector<1x1x2x32xf32>,
    %c1_i32 = arith.constant 1 : i32
    %454 = arith.cmpi eq, %arg0, %c1_i32 : i32
    %455 = arith.extui %454 : i1 to i32
    %c0_i32_170 = arith.constant 0 : i32
    %456 = arith.cmpi ne, %455, %c0_i32_170 : i32
    scf.if %456 {
      %c0_171 = arith.constant 0 : index
      %c0_172 = arith.constant 0 : index
      %457 = vector.load %arg10[%c0_171, %c0_172] : memref<16x64xf32, #tpu.memory_space<vmem>>, vector<16x64xf32>
      %c0_173 = arith.constant 0 : index
      %c0_174 = arith.constant 0 : index
      %458 = vector.load %arg7[%c0_173, %c0_174] : memref<16x64xf32, #tpu.memory_space<vmem>>, vector<16x64xf32>
      tpu.vector_store %arg7[%c0_173, %c0_174], %457 {strides = array<i32>} : memref<16x64xf32, #tpu.memory_space<vmem>>, vector<16x64xf32>,
    } else {
    }
    return
  }
  func.func @transform_0(%arg0: i32) -> (i32, i32) {
    %c0_i32 = arith.constant 0 : i32
    %c0_i32_0 = arith.constant 0 : i32
    %c0_i32_1 = arith.constant 0 : i32
    return %c0_i32, %c0_i32_0 : i32, i32
  }
  func.func @transform_1(%arg0: i32) -> (i32, i32, i32) {
    %c0_i32 = arith.constant 0 : i32
    %c0_i32_0 = arith.constant 0 : i32
    %c0_i32_1 = arith.constant 0 : i32
    return %arg0, %c0_i32, %c0_i32_0 : i32, i32, i32
  }
  func.func @transform_2(%arg0: i32) -> (i32, i32, i32, i32) {
    %c0_i32 = arith.constant 0 : i32
    %c0_i32_0 = arith.constant 0 : i32
    %c0_i32_1 = arith.constant 0 : i32
    %c0_i32_2 = arith.constant 0 : i32
    return %arg0, %c0_i32, %c0_i32_0, %c0_i32_1 : i32, i32, i32, i32
  }
  func.func @transform_3(%arg0: i32) -> (i32, i32, i32) {
    %c0_i32 = arith.constant 0 : i32
    %c0_i32_0 = arith.constant 0 : i32
    %c0_i32_1 = arith.constant 0 : i32
    return %arg0, %c0_i32, %c0_i32_0 : i32, i32, i32
  }
  func.func @transform_4(%arg0: i32) -> (i32, i32, i32, i32) {
    %c0_i32 = arith.constant 0 : i32
    %c0_i32_0 = arith.constant 0 : i32
    %c0_i32_1 = arith.constant 0 : i32
    %c0_i32_2 = arith.constant 0 : i32
    return %arg0, %c0_i32, %c0_i32_0, %c0_i32_1 : i32, i32, i32, i32
  }
  func.func @transform_5(%arg0: i32) -> (i32, i32, i32, i32) {
    %c0_i32 = arith.constant 0 : i32
    %c0_i32_0 = arith.constant 0 : i32
    %c0_i32_1 = arith.constant 0 : i32
    %c0_i32_2 = arith.constant 0 : i32
    return %arg0, %c0_i32, %c0_i32_0, %c0_i32_1 : i32, i32, i32, i32
  }
  func.func @transform_6(%arg0: i32) -> (i32, i32) {
    %c0_i32 = arith.constant 0 : i32
    %c0_i32_0 = arith.constant 0 : i32
    %c0_i32_1 = arith.constant 0 : i32
    return %c0_i32, %c0_i32_0 : i32, i32
  }
  func.func @transform_7(%arg0: i32) -> (i32, i32, i32, i32) {
    %c0_i32 = arith.constant 0 : i32
    %c0_i32_0 = arith.constant 0 : i32
    %c0_i32_1 = arith.constant 0 : i32
    %c0_i32_2 = arith.constant 0 : i32
    return %arg0, %c0_i32, %c0_i32_0, %c0_i32_1 : i32, i32, i32, i32
  }
  func.func @transform_8(%arg0: i32) -> (i32, i32, i32, i32) {
    %c0_i32 = arith.constant 0 : i32
    %c0_i32_0 = arith.constant 0 : i32
    %c0_i32_1 = arith.constant 0 : i32
    %c0_i32_2 = arith.constant 0 : i32
    return %arg0, %c0_i32, %c0_i32_0, %c0_i32_1 : i32, i32, i32, i32
  }
}

</mosaic_0001>

<bundles_post_ra>
// kernel: bidirectional_lstm.1
= control target key start
LH: loop header
LB: loop body
LE: loop exit
PB: predicated region body
PF: predicated region fallthrough
CT: control target
= control target key end

     0   :  { %14 = vsyncpa [#allocation5], 0  ;;  %s3648_s0 = inlined_call_operand.vmem [shape: f32[16,64], index: 0, kind: input, shape index: {}]   ;;  %s3649_s1 = inlined_call_operand.vmem [shape: f32[2,64,256], index: 1, kind: input, shape index: {}]   ;;  %s3650_s2 = inlined_call_operand.vmem [shape: f32[2,2,32,128], index: 2, kind: input, shape index: {}]   ;;  %s3651_s3 = inlined_call_operand.vmem [shape: f32[2,1,256], index: 3, kind: input, shape index: {}]   ;;  %s3652_s4 = inlined_call_operand.vmem [shape: f32[2,2,2,32], index: 4, kind: input, shape index: {}]   ;;  %s3653_s5 = inlined_call_operand.vmem [shape: f32[2,2,2,32], index: 5, kind: input, shape index: {}]   ;;  %s3654_s6 = inlined_call_operand.hbm [shape: f32[16,64], index: 6, kind: output, shape index: {0}]   ;;  %s3655_s7 = inlined_call_operand.hbm [shape: f32[2,2,2,32], index: 7, kind: output, shape index: {1}]   ;;  %s3656_s8 = inlined_call_operand.hbm [shape: f32[2,2,2,32], index: 8, kind: output, shape index: {2}]  }
   0x1   :  { %15 = vsyncpa [#allocation7], 0 }
   0x2   :  { %17 = vsyncpa [#allocation7 + $0x1], 0  ;;  %s2903_s27 = smov 0   ;;  %s2905_s28 = smov 0  }
   0x3   :  { %s2907_s29 = smov 0   ;;  %s2909_s30 = smov 0  }
   0x4 LB: > { %3662 = sst [smem:[#allocation11_spill]] %s2838_s28  ;;  %s2922_s9 = sadd.s32 4294967295, %s2846_s30   ;;  %s2846_s30 = sphi %s2909_s30, %s3669_s30   ;;  %s2842_s29 = sphi %s2907_s29, %s3672_s29   ;;  %s2838_s28 = sphi %s2905_s28, %s3671_s28   ;;  %s2834_s27 = sphi %s2903_s27, %s3670_s27  }
   0x5   : > { %3663 = sst [smem:[#allocation12_spill]] %s2842_s29  ;;  %s3657_s10 = sadd.s32 4294967294, %s2846_s30  }
   0x6   : > { %s2926_s11 = sadd.s32 1, %s2846_s30   ;;  %s202_s12 = sadd.s32 1, %s2842_s29 }
   0x7   : > { %3664 = sst [smem:[#allocation13_spill]] %s2926_s11  ;;  %s199_s13 = ssub.s32 %s2846_s30, %s2926_s11 }
   0x8   : > { %p212_p0 = scmp.ne.s32.totalorder %s2842_s29, %s2838_s28  ;;  %p200_p1 = scmp.eq.s32.totalorder %s199_s13, 0 }
   0x9   : > { %p213_p2 = scmp.eq.s32.totalorder %s2922_s9, 1  ;;  %p218_p3 = scmp.ne.s32.totalorder %s2838_s28, %s2834_s27 }
   0xa   : > { %p219_p4 = scmp.eq.s32.totalorder %s3657_s10, 1  ;;  %p2515_p7 = scmp.ge.s32.totalorder %s2846_s30, 1 }
   0xb   : > { %s2938_s14 = scalar_select %p200_p1, %s2842_s29, %s202_s12  }
   0xc   : > { %p2942_p5 = por %p213_p2, %p212_p0  ;;  %p2946_p6 = por %p219_p4, %p218_p3 }
   0xd   : > { %3665 = sst [smem:[#allocation14_spill]] %s2938_s14  ;;  %p305_p8 = scmp.lt.s32.totalorder %s2846_s30, 3 }
   0xf   : > { %p306_p9 = pnand %p2515_p7, %p305_p8 }
  0x10   : > { %s353_s17 = sand.u32 (!%p306_p9), 1, %s2838_s28   ;;  %p363_p10 = scmp.lt.s32.totalorder (!%p306_p9), %s2922_s9, 1 }
  0x11   : > { %309 = sbr.rel (%p306_p9) target bundleno = 4527 (0x11af), region = 44  ;;  %s2516_s18 = sshll.u32 (!%p306_p9), %s353_s17, 2 }
  0x12   : > { %s2980_s25 = scalar_lea.vmem (!%p306_p9), [#allocation6], %s2516_s18  ;;  %p2527_p11 = scmp.ne.s32.totalorder (!%p306_p9), %s2922_s9, 0 }
  0x18   : > { %s364_s19 = scalar_select %p363_p10, %s2922_s9, 1 }
  0x19   : > { %391 = sbr.rel (%p2527_p11) target bundleno = 32 (0x20), region = 48  ;;  %v392_v0 = vld [vmem:[%s3648_s0] sm:$0xff] (!%p2527_p11)  ;;  %vm394_vm0 = vcmask (!%p2527_p11), 523264   ;;  %v393_v1 = vld [vmem:[%s3648_s0 + $0x8] sm:$0xff] (!%p2527_p11) }
  0x1a   : > { %s2550_s20 = sshll.u32 %s364_s19, 7  ;;  %s2551_s21 = sshll.u32 %s364_s19, 6  ;;  %395 = vst.msk [vmem:[#allocation2] sm:$0xff] (!%p2527_p11), %vm394_vm0, %v392_v0  ;;  %396 = vst.msk [vmem:[#allocation2 + $0x8] sm:$0xff] (!%p2527_p11), %vm394_vm0, %v393_v1 }
  0x1b   : > { %s2958_s24 = scalar_lea.vmem %s3649_s1, %s2550_s20  ;;  %s2963_s27 = scalar_lea.vmem %s3650_s2, %s2551_s21 }
  0x1c   : > { %s2522_s12 = sshll.u32 %s364_s19, 1  ;;  %s2552_s13 = sshll.u32 %s364_s19, 2 }
  0x1d   : > { %s2968_s29 = scalar_lea.vmem %s3651_s3, %s2522_s12  ;;  %s2973_s11 = scalar_lea.vmem %s3652_s4, %s2552_s13 }
  0x1e   : > { %s2978_s23 = scalar_lea.vmem %s3653_s5, %s2552_s13  ;;  %s2982_s21 = scalar_lea.vmem [#allocation8], %s2516_s18 }
  0x20 PF: > { %v400_v2 = vld [vmem:[%s2958_s24 + $0x8] sm:$0xff]  ;;  %v402_v3 = vld [vmem:[%s2958_s24 + $0x18] sm:$0xff]  ;;  %v399_v4 = vld [vmem:[%s2958_s24] sm:$0xff]  ;;  %v2848_v9 = vmov 0   ;;  %v611_v15 = vlaneseq  ;;  %vm469_vm1 = vcmask 523264   ;;  %vm712_vm2 = vcmask 1041409  }
  0x21   : > { %v2994_v5 = vpack.c.bf16 %v402_v3, %v400_v2  ;;  %v401_v6 = vld [vmem:[%s2958_s24 + $0x10] sm:$0xff]  ;;  %v404_v7 = vld [vmem:[%s2958_s24 + $0x28] sm:$0xff]  ;;  %v406_v8 = vld [vmem:[%s2958_s24 + $0x38] sm:$0xff]  ;;  %548 = vmatprep.mubr.bf16.mxu0 %v2848_v9  ;;  %505 = vmatprep.mubr.bf16.mxu1 %v2848_v9  ;;  %vm808_vm3 = vcmask 1047559   ;;  %vm921_vm4 = vcmask 1043459   ;;  %vm1018_vm5 = vcmask 1045509  }
  0x22   : > { %v3001_v10 = vpack.c.bf16 %v401_v6, %v399_v4  ;;  %v3003_v11 = vpack.c.bf16 %v406_v8, %v404_v7  ;;  %v403_v12 = vld [vmem:[%s2958_s24 + $0x20] sm:$0xff]  ;;  %v405_v13 = vld [vmem:[%s2958_s24 + $0x30] sm:$0xff]  ;;  %v408_v14 = vld [vmem:[%s2958_s24 + $0x48] sm:$0xff]  ;;  %v3028_v35 = vshrl.u32 %v611_v15, 7  ;;  %s2851_s18 = smov 96   ;;  %vm843_vm6 = vcmask 254976  }
  0x23   : > { %516 = vmatprep.subr.bf16.mxu0 %v2994_v5  ;;  %v410_v16 = vld [vmem:[%s2958_s24 + $0x58] sm:$0xff]  ;;  %v430_v17 = vunpack.c.l.bf16 %v2994_v5  ;;  %v432_v18 = vunpack.c.h.bf16 %v2994_v5  ;;  %v3013_v19 = vpack.c.bf16 %v405_v13, %v403_v12  ;;  %v407_v20 = vld [vmem:[%s2958_s24 + $0x40] sm:$0xff]  ;;  %v409_v21 = vld [vmem:[%s2958_s24 + $0x50] sm:$0xff]  ;;  %vm1051_vm7 = vcmask 257026   ;;  %p2539_p12 = scmp.ne.s32.totalorder %s2922_s9, 1 }
  0x24   : > { %517 = vmatpush1.bf16.msra.mxu0 %v3001_v10  ;;  %v429_v22 = vunpack.c.l.bf16 %v3001_v10  ;;  %v431_v23 = vunpack.c.h.bf16 %v3001_v10  ;;  %v3020_v24 = vpack.c.bf16 %v410_v16, %v408_v14  ;;  %v412_v25 = vld [vmem:[%s2958_s24 + $0x68] sm:$0xff]  ;;  %v434_v28 = vunpack.c.l.bf16 %v3003_v11  ;;  %v414_v29 = vld [vmem:[%s2958_s24 + $0x78] sm:$0xff]  ;;  %v411_v30 = vld [vmem:[%s2958_s24 + $0x60] sm:$0xff] }
  0x25   : > { %518 = vmatprep.subr.bf16.mxu0 %v3003_v11  ;;  %v446_v26 = vsub.f32 %v400_v2, %v430_v17  ;;  %v448_v27 = vsub.f32 %v402_v3, %v432_v18  ;;  %v413_v31 = vld [vmem:[%s2958_s24 + $0x70] sm:$0xff]  ;;  %v436_v34 = vunpack.c.h.bf16 %v3003_v11  ;;  %v3030_v36 = vpack.c.bf16 %v409_v21, %v407_v20  ;;  %v397_v52 = vld [vmem:[#allocation2] sm:$0xff]  ;;  %v398_v53 = vld [vmem:[#allocation2 + $0x8] sm:$0xff] }
  0x26   : > { %v445_v32 = vsub.f32 %v399_v4, %v429_v22  ;;  %v447_v33 = vsub.f32 %v401_v6, %v431_v23  ;;  %v450_v38 = vsub.f32 %v404_v7, %v434_v28  ;;  %v433_v39 = vunpack.c.l.bf16 %v3013_v19  ;;  %v638_v6 = vld [vmem:[%s2973_s11] sm:$0x3]  ;;  %v2535_v18 = vld [vmem:[%s2973_s11 + $0x2] sm:$0x3]  ;;  %s2850_s11 = smov 64  }
  0x27   : > { %v462_v37 = vpack.c.bf16 %v448_v27, %v446_v26  ;;  %v452_v41 = vsub.f32 %v406_v8, %v436_v34  ;;  %v435_v42 = vunpack.c.h.bf16 %v3013_v19  ;;  %v438_v43 = vunpack.c.l.bf16 %v3020_v24 }
  0x28   : > { %519 = vmatpush1.bf16.msra.mxu0 %v3013_v19  ;;  %v461_v40 = vpack.c.bf16 %v447_v33, %v445_v32  ;;  %v3037_v44 = vpack.c.bf16 %v414_v29, %v412_v25  ;;  %v3039_v45 = vpack.c.bf16 %v413_v31, %v411_v30  ;;  %v449_v46 = vsub.f32 %v403_v12, %v433_v39  ;;  %v3079_v32 = vld [vmem:[%s2963_s27 + $0x8] sm:$0xff] }
  0x29   : > { %520 = vmatprep.subr.bf16.mxu0 %v3020_v24  ;;  %473 = vmatprep.subr.bf16.mxu1 %v462_v37  ;;  %v440_v47 = vunpack.c.h.bf16 %v3020_v24  ;;  %v464_v48 = vpack.c.bf16 %v452_v41, %v450_v38  ;;  %v451_v49 = vsub.f32 %v405_v13, %v435_v42  ;;  %v454_v50 = vsub.f32 %v408_v14, %v438_v43  ;;  %v3089_v41 = vld [vmem:[%s2963_s27 + $0x20] sm:$0xff]  ;;  %v3092_v42 = vld [vmem:[%s2963_s27 + $0x10] sm:$0xff] }
  0x2a   : > { %474 = vmatpush1.bf16.msra.mxu1 %v461_v40  ;;  %v437_v51 = vunpack.c.l.bf16 %v3030_v36  ;;  %v439_v55 = vunpack.c.h.bf16 %v3030_v36  ;;  %v442_v56 = vunpack.c.l.bf16 %v3037_v44  ;;  %v444_v57 = vunpack.c.h.bf16 %v3037_v44  ;;  %v3086_v40 = vld [vmem:[%s2963_s27 + $0x28] sm:$0xff] }
  0x2b   : > { %v456_v54 = vsub.f32 %v410_v16, %v440_v47  ;;  %475 = vmatprep.subr.bf16.mxu1 %v464_v48  ;;  %v463_v58 = vpack.c.bf16 %v451_v49, %v449_v46  ;;  %v441_v60 = vunpack.c.l.bf16 %v3039_v45  ;;  %v443_v61 = vunpack.c.h.bf16 %v3039_v45 }
  0x2c   : > { %521 = vmatpush1.bf16.msra.mxu0 %v3030_v36  ;;  %v453_v59 = vsub.f32 %v407_v20, %v437_v51  ;;  %v455_v63 = vsub.f32 %v409_v21, %v439_v55  ;;  %v458_v0 = vsub.f32 %v412_v25, %v442_v56  ;;  %v460_v1 = vsub.f32 %v414_v29, %v444_v57  ;;  %v3101_v51 = vld [vmem:[%s2963_s27 + $0x30] sm:$0xff] }
  0x2d   : > { %522 = vmatprep.subr.bf16.mxu0 %v3037_v44  ;;  %v466_v62 = vpack.c.bf16 %v456_v54, %v454_v50  ;;  %v415_v2 = vpack.c.bf16 %v398_v53, %v397_v52  ;;  %v457_v3 = vsub.f32 %v411_v30, %v441_v60  ;;  %v459_v4 = vsub.f32 %v413_v31, %v443_v61  ;;  %v3076_v31 = vld [vmem:[%s2963_s27] sm:$0xff]  ;;  %v3104_v54 = vld [vmem:[%s2963_s27 + $0x18] sm:$0xff] }
  0x2e   : > { %476 = vmatpush1.bf16.msra.mxu1 %v463_v58  ;;  %v465_v7 = vpack.c.bf16 %v455_v63, %v453_v59  ;;  %v468_v8 = vpack.c.bf16 %v460_v1, %v458_v0  ;;  %v3052_v12 = vsub.s32 1, %v3028_v35  ;;  %v3055_v13 = vsub.s32 0, %v3028_v35  ;;  %v3111_v63 = vld [vmem:[%s2963_s27 + $0x38] sm:$0xff] }
  0x2f   : > { %477 = vmatprep.subr.bf16.mxu1 %v466_v62  ;;  %v467_v15 = vpack.c.bf16 %v459_v4, %v457_v3  ;;  %v416_v17 = vunpack.c.l.bf16 %v415_v2  ;;  %vm1257_vm8 = vcmask 259076   ;;  %vm1463_vm9 = vcmask 261126  }
  0x30   : > { %523 = vmatpush1.bf16.msra.mxu0 %v3039_v45  ;;  %v668_v14 = vrot.slane %v638_v6, %v3052_v12  ;;  %v649_v16 = vrot.slane %v638_v6, %v3055_v13  ;;  %vm849_vm10 = vcmask 523526   ;;  %vm1057_vm11 = vcmask 521476  }
  0x31   : > { %562 = vmatprep.subr.bf16.mxu0 %v2994_v5  ;;  %v417_v5 = vunpack.c.h.bf16 %v415_v2  ;;  %v418_v20 = vsub.f32 %v397_v52, %v416_v17  ;;  %vm1263_vm12 = vcmask 519426   ;;  %vm1469_vm13 = vcmask 517376  }
  0x32   : > { %478 = vmatpush1.bf16.msra.mxu1 %v465_v7  ;;  %670 = vbcast.lane.b32.xlu1 %v668_v14, 256 }
  0x33   : > { %2529 = vmatmul.mubr.msk.bf16.vlgmr.msra.gmra.mrb[0].mxu0 %vm469_vm1, %v415_v2  ;;  %479 = vmatprep.subr.bf16.mxu1 %v468_v8 }
  0x34   : > { %563 = vmatpush1.bf16.msra.mxu0 %v3001_v10  ;;  %594 = vmatprep.mubr.bf16.mxu0 %v2848_v9  ;;  %v745_v10 = vrot.slane %v2535_v18, %v3055_v13  ;;  %v419_v9 = vsub.f32 %v398_v53, %v417_v5 }
  0x35   : > { %564 = vmatprep.subr.bf16.mxu0 %v3003_v11  ;;  %651 = vbcast.lane.b32.xlu0 %v649_v16, 256  ;;  %v764_v11 = vrot.slane %v2535_v18, %v3052_v12 }
  0x36   : > { %480 = vmatpush1.bf16.msra.mxu1 %v467_v15  ;;  %674 = vbcast.lane.b32.xlu1 %v668_v14, 264  ;;  %v420_v21 = vpack.c.bf16 %v419_v9, %v418_v20 }
  0x38   : > { %565 = vmatpush1.bf16.msra.mxu0 %v3013_v19 }
  0x39   : > { %566 = vmatprep.subr.bf16.mxu0 %v3020_v24  ;;  %2528 = vmatmul.mubr.msk.bf16.vlgmr.msra.gmra.mrb[0].mxu1 %vm469_vm1, %v415_v2 }
  0x3a   : > { %655 = vbcast.lane.b32.xlu0 %v649_v16, 264  ;;  %751 = vbcast.lane.b32.xlu1 %v745_v10, 264 }
  0x3c   : > { %567 = vmatpush1.bf16.msra.mxu0 %v3030_v36 }
  0x3d   : > { %568 = vmatprep.subr.bf16.mxu0 %v3037_v44 }
  0x3e   : > { %747 = vbcast.lane.b32.xlu0 %v745_v10, 256  ;;  %770 = vbcast.lane.b32.xlu1 %v764_v11, 264 }
  0x40   : > { %569 = vmatpush1.bf16.msra.mxu0 %v3039_v45 }
  0x42   : > { %766 = vbcast.lane.b32.xlu0 %v764_v11, 256  ;;  %678 = vbcast.lane.b32.xlu1 %v668_v14, 272 }
  0x43   : > { %2530 = vmatmul.mubr.msk.bf16.vlgmr.msra.gmra.mrb[0].mxu0 %vm469_vm1, %v420_v21 }
  0x46   : > { %659 = vbcast.lane.b32.xlu0 %v649_v16, 272  ;;  %774 = vbcast.lane.b32.xlu1 %v764_v11, 272 }
  0x4a   : > { %755 = vbcast.lane.b32.xlu0 %v745_v10, 272  ;;  %682 = vbcast.lane.b32.xlu1 %v668_v14, 280 }
  0x4e   : > { %663 = vbcast.lane.b32.xlu0 %v649_v16, 280  ;;  %778 = vbcast.lane.b32.xlu1 %v764_v11, 280 }
  0x52   : > { %759 = vbcast.lane.b32.xlu0 %v745_v10, 280 }
  0xa4   : > { %v671_v19 = vpop.permute.xlu1 %670 }
  0xa5   : > { %v688_v36 = vmul.f32 %v671_v19, %v3076_v31 }
  0xa7   : > { %v652_v22 = vpop.permute.xlu0 %651 }
  0xa8   : > { %v675_v23 = vpop.permute.xlu1 %674  ;;  %v684_v37 = vmul.f32 %v652_v22, %v3076_v31 }
  0xa9   : > { %v689_v38 = vmul.f32 %v675_v23, %v3079_v32 }
  0xab   : > { %v701_v47 = vadd.f32 %v689_v38, %v688_v36 }
  0xac   : > { %v656_v24 = vpop.permute.xlu0 %655  ;;  %v752_v25 = vpop.permute.xlu1 %751 }
  0xad   : > { %v685_v39 = vmul.f32 %v656_v24, %v3079_v32  ;;  %v781_v43 = vmul.f32 %v3086_v40, %v752_v25 }
  0xaf   : > { %v692_v48 = vadd.f32 %v685_v39, %v684_v37 }
  0xb0   : > { %v748_v26 = vpop.permute.xlu0 %747  ;;  %v771_v27 = vpop.permute.xlu1 %770 }
  0xb1   : > { %v780_v44 = vmul.f32 %v3089_v41, %v748_v26  ;;  %v785_v45 = vmul.f32 %v3086_v40, %v771_v27  ;;  %v609_v26 = vld [vmem:[%s2968_s29] sm:$0x3]  ;;  %s2849_s29 = smov 32  }
  0xb2   : > { %v618_v36 = vrot.slane %v609_v26, %v3052_v12 }
  0xb3   : > { %v788_v55 = vadd.f32 %v781_v43, %v780_v44 }
  0xb4   : > { %v767_v28 = vpop.permute.xlu0 %766  ;;  %v679_v29 = vpop.permute.xlu1 %678 }
  0xb5   : > { %v784_v46 = vmul.f32 %v3089_v41, %v767_v28  ;;  %v690_v49 = vmul.f32 %v679_v29, %v3092_v42  ;;  %v614_v29 = vrot.slane %v609_v26, %v3055_v13 }
  0xb7   : > { %v797_v56 = vadd.f32 %v785_v45, %v784_v46  ;;  %v702_v59 = vadd.f32 %v701_v47, %v690_v49 }
  0xb8   : > { %v660_v30 = vpop.permute.xlu0 %659  ;;  %v775_v33 = vpop.permute.xlu1 %774 }
  0xb9   : > { %v686_v50 = vmul.f32 %v660_v30, %v3092_v42  ;;  %v786_v57 = vmul.f32 %v3101_v51, %v775_v33 }
  0xbb   : > { %v693_v60 = vadd.f32 %v692_v48, %v686_v50  ;;  %v798_v2 = vadd.f32 %v797_v56, %v786_v57 }
  0xbc   : > { %v756_v34 = vpop.permute.xlu0 %755  ;;  %v683_v52 = vpop.permute.xlu1 %682 }
  0xbd   : > { %v782_v58 = vmul.f32 %v3101_v51, %v756_v34  ;;  %v691_v61 = vmul.f32 %v683_v52, %v3104_v54 }
  0xbf   : > { %v789_v3 = vadd.f32 %v788_v55, %v782_v58  ;;  %v703_v7 = vadd.f32 %v702_v59, %v691_v61 }
  0xc0   : > { %v664_v53 = vpop.permute.xlu0 %663  ;;  %v779_v0 = vpop.permute.xlu1 %778 }
  0xc1   : > { %v687_v62 = vmul.f32 %v664_v53, %v3104_v54  ;;  %v787_v4 = vmul.f32 %v3111_v63, %v779_v0  ;;  %v704_v16 = vrot.slane %v703_v7, 4 }
  0xc3   : > { %v694_v8 = vadd.f32 %v693_v60, %v687_v62  ;;  %v799_v14 = vadd.f32 %v798_v2, %v787_v4  ;;  %v705_v9 = vadd.f32 %v704_v16, %v703_v7 }
  0xc4   : > { %v760_v1 = vpop.permute.xlu0 %759 }
  0xc5   : > { %v783_v6 = vmul.f32 %v3111_v63, %v760_v1  ;;  %v695_v17 = vrot.slane %v694_v8, 4  ;;  %v800_v18 = vrot.slane %v799_v14, 4  ;;  %v706_v24 = vrot.slane %v705_v9, 2 }
  0xc7   : > { %v790_v15 = vadd.f32 %v789_v3, %v783_v6  ;;  %v696_v11 = vadd.f32 %v695_v17, %v694_v8  ;;  %v801_v22 = vadd.f32 %v800_v18, %v799_v14  ;;  %v707_v30 = vadd.f32 %v706_v24, %v705_v9  ;;  %v2536_v8 = vld [vmem:[%s2978_s23 + $0x2] sm:$0x3]  ;;  %v639_v14 = vld [vmem:[%s2978_s23] sm:$0x3] }
  0xc8   : > { %v818_v16 = vrot.slane %v2536_v8, 2 }
  0xc9   : > { %v791_v10 = vrot.slane %v790_v15, 4  ;;  %v697_v25 = vrot.slane %v696_v11, 2  ;;  %v802_v27 = vrot.slane %v801_v22, 2  ;;  %v708_v49 = vrot.slane %v707_v30, 1 }
  0xcb   : > { %v792_v23 = vadd.f32 %v791_v10, %v790_v15  ;;  %v698_v33 = vadd.f32 %v697_v25, %v696_v11  ;;  %v803_v44 = vadd.f32 %v802_v27, %v801_v22  ;;  %v709_v59 = vadd.f32 %v708_v49, %v707_v30 }
  0xcd   : > { %v793_v28 = vrot.slane %v792_v23, 2  ;;  %v699_v50 = vrot.slane %v698_v33, 1  ;;  %v804_v57 = vrot.slane %v803_v44, 1 }
  0xcf   : > { %v794_v45 = vadd.f32 %v793_v28, %v792_v23  ;;  %v700_v60 = vadd.f32 %v699_v50, %v698_v33  ;;  %v805_v61 = vadd.f32 %v804_v57, %v803_v44 }
  0xd1   : > { %v795_v58 = vrot.slane %v794_v45, 1  ;;  %v713_v0 = vsel %vm712_vm2, %v709_v59, %v700_v60 }
  0xd3   : > { %v796_v62 = vadd.f32 %v795_v58, %v794_v45 }
  0xd5   : > { %v809_v3 = vsel %vm808_vm3, %v805_v61, %v796_v62 }
 0x10c   : > { %v507_v5 = vpop.f32.mrb[0].mxu1 }
 0x10d   : > { %v509_v20 = vpop.f32.mrb[1].mxu1 }
 0x10e   : > { %v511_v21 = vpop.f32.mrb[2].mxu1 }
 0x10f   : > { %v513_v19 = vpop.f32.mrb[3].mxu1 }
 0x116   : > { %v596_v34 = vpop.f32.mrb[0].mxu0 }
 0x117   : > { %v2556_v37 = vadd.f32 %v596_v34, %v507_v5  ;;  %v598_v38 = vpop.f32.mrb[1].mxu0 }
 0x118   : > { %v2557_v39 = vadd.f32 %v598_v38, %v509_v20  ;;  %v600_v43 = vpop.f32.mrb[2].mxu0 }
 0x119   : > { %v621_v46 = vadd.f32 %v2556_v37, %v614_v29  ;;  %v2558_v47 = vadd.f32 %v600_v43, %v511_v21  ;;  %v602_v48 = vpop.f32.mrb[3].mxu0 }
 0x11a   : > { %v622_v52 = vadd.f32 %v2557_v39, %v618_v36  ;;  %v2559_v53 = vadd.f32 %v602_v48, %v513_v19  ;;  %v3148_v48 = vsub.s32 7, %v3028_v35 }
 0x11b   : > { %625 = vst [vmem:[#allocation3] sm:$0xff] %v621_v46  ;;  %v623_v55 = vadd.f32 %v2558_v47, %v614_v29  ;;  %v3143_v46 = vsub.s32 6, %v3028_v35 }
 0x11c   : > { %626 = vst [vmem:[#allocation3 + $0x8] sm:$0xff] %v622_v52  ;;  %v624_v56 = vadd.f32 %v2559_v53, %v618_v36 }
 0x11d   : > { %627 = vst [vmem:[#allocation3 + $0x10] sm:$0xff] %v623_v55 }
 0x11e   : > { %628 = vst [vmem:[#allocation3 + $0x18] sm:$0xff] %v624_v56 }
 0x122   : > { %v644_v1 = vld [vmem:[#allocation3] sm:$0x3] }
 0x123   : > { %v715_v2 = vadd.f32 %v713_v0, %v644_v1 }
 0x125   : > { %2622 = vtanh.f32 %v715_v2  ;;  %v645_v4 = vld [vmem:[#allocation3 + $0x18] sm:$0xc0]  ;;  %v716_v17 = vmul.f32 0.5, %v715_v2 }
 0x126   : > { %v811_v6 = vadd.f32 %v809_v3, %v645_v4 }
 0x128   : > { %2624 = vtanh.f32 %v811_v6  ;;  %v812_v5 = vmul.f32 0.5, %v811_v6 }
 0x129   : > { %2626 = vtanh.f32 %v716_v17 }
 0x12a   : > { %2628 = vtanh.f32 %v812_v5 }
 0x12f   : > { %v2623_v7 = vpop.eup %2622 }
 0x130   : > { %727 = vrot.lane.b32.xlu0 %v2623_v7, %s2849_s29 }
 0x132   : > { %v2625_v15 = vpop.eup %2624 }
 0x133   : > { %824 = vrot.lane.b32.xlu1 %v2625_v15, %s2849_s29  ;;  %v2627_v18 = vpop.eup %2626 }
 0x134   : > { %722 = vrot.lane.b32.xlu0 %v639_v14, %s2849_s29  ;;  %v2629_v10 = vpop.eup %2628  ;;  %v718_v20 = vadd.f32 1.0, %v2627_v18 }
 0x135   : > { %v814_v9 = vadd.f32 1.0, %v2629_v10 }
 0x136   : > { %v719_v11 = vmul.f32 0.5, %v718_v20 }
 0x137   : > { %819 = vrot.lane.b32.xlu1 %v818_v16, %s2849_s29  ;;  %v815_v22 = vmul.f32 0.5, %v814_v9 }
 0x1a2   : > { %v728_v21 = vpop.permute.xlu0 %727 }
 0x1a3   : > { %v730_v19 = vmul.f32 %v728_v21, %v719_v11 }
 0x1a5   : > { %732 = vrot.lane.b32.xlu0 %v730_v19, %s2849_s29  ;;  %v825_v23 = vpop.permute.xlu1 %824 }
 0x1a6   : > { %v827_v24 = vmul.f32 %v825_v23, %v815_v22  ;;  %v723_v25 = vpop.permute.xlu0 %722 }
 0x1a7   : > { %v725_v26 = vmul.f32 %v723_v25, %v719_v11 }
 0x1a8   : > { %829 = vrot.lane.b32.xlu1 %v827_v24, %s2849_s29 }
 0x1a9   : > { %v820_v27 = vpop.permute.xlu1 %819 }
 0x1aa   : > { %v822_v30 = vmul.f32 %v820_v27, %v815_v22 }
 0x217   : > { %v733_v28 = vpop.permute.xlu0 %732 }
 0x218   : > { %v3128_v29 = vadd.f32 %v733_v28, %v725_v26 }
 0x21a   : > { %2630 = vtanh.f32 %v3128_v29  ;;  %v830_v33 = vpop.permute.xlu1 %829 }
 0x21b   : > { %v3131_v34 = vadd.f32 %v830_v33, %v822_v30 }
 0x21d   : > { %2632 = vtanh.f32 %v3131_v34 }
 0x224   : > { %v2631_v36 = vpop.eup %2630 }
 0x225   : > { %738 = vrot.lane.b32.xlu0 %v2631_v36, %s2849_s29 }
 0x227   : > { %v2633_v37 = vpop.eup %2632 }
 0x228   : > { %835 = vrot.lane.b32.xlu1 %v2633_v37, %s2849_s29 }
 0x297   : > { %v739_v38 = vpop.permute.xlu0 %738 }
 0x298   : > { %v3136_v39 = vmul.f32 %v739_v38, %v719_v11 }
 0x29a   : > { %v856_v43 = vrot.slane %v3136_v39, %v3055_v13  ;;  %v876_v44 = vrot.slane %v3136_v39, %v3052_v12  ;;  %v836_v45 = vpop.permute.xlu1 %835 }
 0x29b   : > { %v3145_v47 = vmul.f32 %v836_v45, %v815_v22 }
 0x29c   : > { %859 = vbcast.lane.b32.xlu0 %v856_v43, 320  ;;  %863 = vbcast.lane.b32.xlu1 %v856_v43, 328 }
 0x29d   : > { %v953_v49 = vrot.slane %v3145_v47, %v3143_v46  ;;  %v973_v50 = vrot.slane %v3145_v47, %v3148_v48 }
 0x2a0   : > { %879 = vbcast.lane.b32.xlu0 %v876_v44, 320  ;;  %883 = vbcast.lane.b32.xlu1 %v876_v44, 328 }
 0x2a4   : > { %867 = vbcast.lane.b32.xlu0 %v856_v43, 336  ;;  %887 = vbcast.lane.b32.xlu1 %v876_v44, 336 }
 0x2a8   : > { %871 = vbcast.lane.b32.xlu0 %v856_v43, 344  ;;  %891 = vbcast.lane.b32.xlu1 %v876_v44, 344 }
 0x2ac   : > { %960 = vbcast.lane.b32.xlu1 %v953_v49, 328  ;;  %956 = vbcast.lane.b32.xlu0 %v953_v49, 320 }
 0x2b0   : > { %980 = vbcast.lane.b32.xlu1 %v973_v50, 328  ;;  %976 = vbcast.lane.b32.xlu0 %v973_v50, 320 }
 0x2b4   : > { %984 = vbcast.lane.b32.xlu1 %v973_v50, 336  ;;  %964 = vbcast.lane.b32.xlu0 %v953_v49, 336 }
 0x2b8   : > { %988 = vbcast.lane.b32.xlu1 %v973_v50, 344  ;;  %968 = vbcast.lane.b32.xlu0 %v953_v49, 344 }
 0x30e   : > { %v860_v52 = vpop.permute.xlu0 %859  ;;  %v864_v53 = vpop.permute.xlu1 %863 }
 0x30f   : > { %v893_v57 = vmul.f32 %v860_v52, %v3076_v31  ;;  %v894_v58 = vmul.f32 %v864_v53, %v3079_v32 }
 0x311   : > { %v901_v2 = vadd.f32 %v894_v58, %v893_v57  ;;  %v851_v57 = vld [vmem:[#allocation3] sm:$0xc] }
 0x312   : > { %v880_v55 = vpop.permute.xlu0 %879  ;;  %v884_v56 = vpop.permute.xlu1 %883 }
 0x313   : > { %v897_v59 = vmul.f32 %v880_v55, %v3076_v31  ;;  %v898_v60 = vmul.f32 %v884_v56, %v3079_v32 }
 0x315   : > { %v910_v3 = vadd.f32 %v898_v60, %v897_v59 }
 0x316   : > { %v868_v61 = vpop.permute.xlu0 %867  ;;  %v888_v62 = vpop.permute.xlu1 %887 }
 0x317   : > { %v895_v0 = vmul.f32 %v868_v61, %v3092_v42  ;;  %v899_v1 = vmul.f32 %v888_v62, %v3092_v42 }
 0x319   : > { %v902_v7 = vadd.f32 %v901_v2, %v895_v0  ;;  %v911_v8 = vadd.f32 %v910_v3, %v899_v1 }
 0x31a   : > { %v872_v4 = vpop.permute.xlu0 %871  ;;  %v892_v6 = vpop.permute.xlu1 %891 }
 0x31b   : > { %v896_v14 = vmul.f32 %v872_v4, %v3104_v54  ;;  %v900_v15 = vmul.f32 %v892_v6, %v3104_v54 }
 0x31d   : > { %v903_v16 = vadd.f32 %v902_v7, %v896_v14  ;;  %v912_v17 = vadd.f32 %v911_v8, %v900_v15 }
 0x31e   : > { %v957_v5 = vpop.permute.xlu0 %956  ;;  %v961_v18 = vpop.permute.xlu1 %960 }
 0x31f   : > { %v904_v10 = vrot.slane %v903_v16, 4  ;;  %v913_v20 = vrot.slane %v912_v17, 4  ;;  %v990_v24 = vmul.f32 %v3089_v41, %v957_v5  ;;  %v991_v25 = vmul.f32 %v3086_v40, %v961_v18 }
 0x321   : > { %v905_v9 = vadd.f32 %v904_v10, %v903_v16  ;;  %v914_v11 = vadd.f32 %v913_v20, %v912_v17  ;;  %v998_v45 = vadd.f32 %v991_v25, %v990_v24  ;;  %v852_v20 = vld [vmem:[#allocation3 + $0x18] sm:$0x30] }
 0x322   : > { %v977_v21 = vpop.permute.xlu0 %976  ;;  %v981_v19 = vpop.permute.xlu1 %980 }
 0x323   : > { %v906_v22 = vrot.slane %v905_v9, 2  ;;  %v915_v23 = vrot.slane %v914_v11, 2  ;;  %v994_v28 = vmul.f32 %v3089_v41, %v977_v21  ;;  %v995_v30 = vmul.f32 %v3086_v40, %v981_v19 }
 0x325   : > { %v907_v26 = vadd.f32 %v906_v22, %v905_v9  ;;  %v916_v27 = vadd.f32 %v915_v23, %v914_v11  ;;  %v1007_v52 = vadd.f32 %v995_v30, %v994_v28 }
 0x326   : > { %v965_v33 = vpop.permute.xlu0 %964  ;;  %v985_v36 = vpop.permute.xlu1 %984 }
 0x327   : > { %v908_v37 = vrot.slane %v907_v26, 1  ;;  %v917_v38 = vrot.slane %v916_v27, 1  ;;  %v992_v43 = vmul.f32 %v3101_v51, %v965_v33  ;;  %v996_v44 = vmul.f32 %v3101_v51, %v985_v36 }
 0x329   : > { %v909_v49 = vadd.f32 %v908_v37, %v907_v26  ;;  %v918_v50 = vadd.f32 %v917_v38, %v916_v27  ;;  %v999_v53 = vadd.f32 %v998_v45, %v992_v43  ;;  %v1008_v59 = vadd.f32 %v1007_v52, %v996_v44 }
 0x32a   : > { %v969_v55 = vpop.permute.xlu0 %968  ;;  %v989_v56 = vpop.permute.xlu1 %988  ;;  %v931_v38 = vrot.slane %v3128_v29, 6  ;;  %v3187_v29 = vsub.s32 2, %v3028_v35 }
 0x32b   : > { %v922_v58 = vsel %vm921_vm4, %v918_v50, %v909_v49  ;;  %v993_v60 = vmul.f32 %v3111_v63, %v969_v55  ;;  %v997_v61 = vmul.f32 %v3111_v63, %v989_v56  ;;  %v1028_v50 = vrot.slane %v3131_v34, 2 }
 0x32c   : > { %v924_v62 = vadd.f32 %v922_v58, %v851_v57 }
 0x32d   : > { %v1000_v0 = vadd.f32 %v999_v53, %v993_v60  ;;  %v1009_v1 = vadd.f32 %v1008_v59, %v997_v61  ;;  %v3192_v59 = vsub.s32 3, %v3028_v35  ;;  %v3199_v61 = vsub.s32 4, %v3028_v35 }
 0x32e   : > { %2634 = vtanh.f32 %v924_v62  ;;  %v925_v19 = vmul.f32 0.5, %v924_v62 }
 0x32f   : > { %v1001_v2 = vrot.slane %v1000_v0, 4  ;;  %v1010_v3 = vrot.slane %v1009_v1, 4 }
 0x331   : > { %v1002_v4 = vadd.f32 %v1001_v2, %v1000_v0  ;;  %v1011_v6 = vadd.f32 %v1010_v3, %v1009_v1  ;;  %v3204_v1 = vsub.s32 5, %v3028_v35 }
 0x333   : > { %v1003_v7 = vrot.slane %v1002_v4, 2  ;;  %v1012_v8 = vrot.slane %v1011_v6, 2 }
 0x335   : > { %v1004_v14 = vadd.f32 %v1003_v7, %v1002_v4  ;;  %v1013_v15 = vadd.f32 %v1012_v8, %v1011_v6 }
 0x337   : > { %v1005_v16 = vrot.slane %v1004_v14, 1  ;;  %v1014_v17 = vrot.slane %v1013_v15, 1 }
 0x338   : > { %v2635_v5 = vpop.eup %2634 }
 0x339   : > { %v1006_v18 = vadd.f32 %v1005_v16, %v1004_v14  ;;  %v1015_v10 = vadd.f32 %v1014_v17, %v1013_v15  ;;  %935 = vrot.lane.b32.xlu0 %v2635_v5, %s2849_s29 }
 0x33b   : > { %v1019_v9 = vsel %vm1018_vm5, %v1015_v10, %v1006_v18 }
 0x33c   : > { %v1021_v11 = vadd.f32 %v1019_v9, %v852_v20 }
 0x33e   : > { %2636 = vtanh.f32 %v1021_v11  ;;  %v1022_v23 = vmul.f32 0.5, %v1021_v11 }
 0x33f   : > { %2638 = vtanh.f32 %v925_v19 }
 0x340   : > { %2640 = vtanh.f32 %v1022_v23 }
 0x348   : > { %v2637_v21 = vpop.eup %2636 }
 0x349   : > { %1032 = vrot.lane.b32.xlu1 %v2637_v21, %s2849_s29  ;;  %v2639_v22 = vpop.eup %2638 }
 0x34a   : > { %v927_v24 = vadd.f32 1.0, %v2639_v22  ;;  %v2641_v28 = vpop.eup %2640 }
 0x34b   : > { %v1024_v30 = vadd.f32 1.0, %v2641_v28 }
 0x34c   : > { %v928_v25 = vmul.f32 0.5, %v927_v24 }
 0x34d   : > { %v1025_v33 = vmul.f32 0.5, %v1024_v30 }
 0x34e   : > { %v933_v43 = vmul.f32 %v931_v38, %v928_v25 }
 0x34f   : > { %v1030_v52 = vmul.f32 %v1028_v50, %v1025_v33 }
 0x3ab   : > { %v936_v26 = vpop.permute.xlu0 %935 }
 0x3ac   : > { %v938_v27 = vmul.f32 %v936_v26, %v928_v25 }
 0x3ae   : > { %940 = vrot.lane.b32.xlu0 %v938_v27, %s2849_s29 }
 0x3bb   : > { %v1033_v36 = vpop.permute.xlu1 %1032 }
 0x3bc   : > { %v1035_v37 = vmul.f32 %v1033_v36, %v1025_v33 }
 0x3be   : > { %1037 = vrot.lane.b32.xlu1 %v1035_v37, %s2849_s29 }
 0x420   : > { %v941_v44 = vpop.permute.xlu0 %940 }
 0x421   : > { %v3177_v45 = vadd.f32 %v941_v44, %v933_v43 }
 0x423   : > { %2642 = vtanh.f32 %v3177_v45 }
 0x42d   : > { %v2643_v49 = vpop.eup %2642 }
 0x42e   : > { %946 = vrot.lane.b32.xlu0 %v2643_v49, %s2849_s29 }
 0x430   : > { %v1038_v53 = vpop.permute.xlu1 %1037 }
 0x431   : > { %v3182_v55 = vadd.f32 %v1038_v53, %v1030_v52 }
 0x433   : > { %2644 = vtanh.f32 %v3182_v55 }
 0x43d   : > { %v2645_v56 = vpop.eup %2644 }
 0x43e   : > { %1043 = vrot.lane.b32.xlu1 %v2645_v56, %s2849_s29 }
 0x4a0   : > { %v947_v57 = vpop.permute.xlu0 %946 }
 0x4a1   : > { %v3189_v58 = vmul.f32 %v947_v57, %v928_v25 }
 0x4a3   : > { %v1064_v34 = vrot.slane %v3189_v58, %v3187_v29  ;;  %v1084_v60 = vrot.slane %v3189_v58, %v3192_v59 }
 0x4a5   : > { %1067 = vbcast.lane.b32.xlu0 %v1064_v34, 320  ;;  %1071 = vbcast.lane.b32.xlu1 %v1064_v34, 328 }
 0x4a9   : > { %1087 = vbcast.lane.b32.xlu0 %v1084_v60, 320  ;;  %1091 = vbcast.lane.b32.xlu1 %v1084_v60, 328 }
 0x4ad   : > { %1075 = vbcast.lane.b32.xlu0 %v1064_v34, 336  ;;  %1095 = vbcast.lane.b32.xlu1 %v1084_v60, 336 }
 0x4b0   : > { %v1044_v62 = vpop.permute.xlu1 %1043 }
 0x4b1   : > { %v3201_v0 = vmul.f32 %v1044_v62, %v1025_v33  ;;  %1079 = vbcast.lane.b32.xlu0 %v1064_v34, 344  ;;  %1099 = vbcast.lane.b32.xlu1 %v1084_v60, 344 }
 0x4b3   : > { %v1160_v2 = vrot.slane %v3201_v0, %v3199_v61  ;;  %v1180_v3 = vrot.slane %v3201_v0, %v3204_v1 }
 0x4b5   : > { %1167 = vbcast.lane.b32.xlu1 %v1160_v2, 328  ;;  %1163 = vbcast.lane.b32.xlu0 %v1160_v2, 320 }
 0x4b9   : > { %1187 = vbcast.lane.b32.xlu1 %v1180_v3, 328  ;;  %1183 = vbcast.lane.b32.xlu0 %v1180_v3, 320 }
 0x4bd   : > { %1191 = vbcast.lane.b32.xlu1 %v1180_v3, 336  ;;  %1171 = vbcast.lane.b32.xlu0 %v1160_v2, 336 }
 0x4c1   : > { %1195 = vbcast.lane.b32.xlu1 %v1180_v3, 344  ;;  %1175 = vbcast.lane.b32.xlu0 %v1160_v2, 344 }
 0x517   : > { %v1068_v4 = vpop.permute.xlu0 %1067  ;;  %v1072_v6 = vpop.permute.xlu1 %1071 }
 0x518   : > { %v1101_v35 = vmul.f32 %v1068_v4, %v3076_v31  ;;  %v1102_v14 = vmul.f32 %v1072_v6, %v3079_v32 }
 0x51a   : > { %v1109_v20 = vadd.f32 %v1102_v14, %v1101_v35 }
 0x51b   : > { %v1088_v7 = vpop.permute.xlu0 %1087  ;;  %v1092_v8 = vpop.permute.xlu1 %1091 }
 0x51c   : > { %v1105_v15 = vmul.f32 %v1088_v7, %v3076_v31  ;;  %v1106_v16 = vmul.f32 %v1092_v8, %v3079_v32 }
 0x51e   : > { %v1118_v9 = vadd.f32 %v1106_v16, %v1105_v15 }
 0x51f   : > { %v1076_v17 = vpop.permute.xlu0 %1075  ;;  %v1096_v5 = vpop.permute.xlu1 %1095 }
 0x520   : > { %v1103_v18 = vmul.f32 %v1076_v17, %v3092_v42  ;;  %v1107_v10 = vmul.f32 %v1096_v5, %v3092_v42  ;;  %v1059_v5 = vld [vmem:[#allocation3] sm:$0x30] }
 0x522   : > { %v1110_v19 = vadd.f32 %v1109_v20, %v1103_v18  ;;  %v1119_v22 = vadd.f32 %v1118_v9, %v1107_v10 }
 0x523   : > { %v1080_v11 = vpop.permute.xlu0 %1079  ;;  %v1100_v21 = vpop.permute.xlu1 %1099 }
 0x524   : > { %v1104_v23 = vmul.f32 %v1080_v11, %v3104_v54  ;;  %v1108_v24 = vmul.f32 %v1100_v21, %v3104_v54 }
 0x526   : > { %v1111_v25 = vadd.f32 %v1110_v19, %v1104_v23  ;;  %v1120_v26 = vadd.f32 %v1119_v22, %v1108_v24 }
 0x527   : > { %v1164_v27 = vpop.permute.xlu0 %1163  ;;  %v1168_v28 = vpop.permute.xlu1 %1167 }
 0x528   : > { %v1112_v30 = vrot.slane %v1111_v25, 4  ;;  %v1121_v33 = vrot.slane %v1120_v26, 4  ;;  %v1197_v50 = vmul.f32 %v3089_v41, %v1164_v27  ;;  %v1198_v52 = vmul.f32 %v3086_v40, %v1168_v28 }
 0x52a   : > { %v1113_v36 = vadd.f32 %v1112_v30, %v1111_v25  ;;  %v1122_v37 = vadd.f32 %v1121_v33, %v1120_v26  ;;  %v1205_v7 = vadd.f32 %v1198_v52, %v1197_v50 }
 0x52b   : > { %v1184_v38 = vpop.permute.xlu0 %1183  ;;  %v1188_v43 = vpop.permute.xlu1 %1187 }
 0x52c   : > { %v1114_v44 = vrot.slane %v1113_v36, 2  ;;  %v1123_v49 = vrot.slane %v1122_v37, 2  ;;  %v1201_v57 = vmul.f32 %v3089_v41, %v1184_v38  ;;  %v1202_v34 = vmul.f32 %v3086_v40, %v1188_v43 }
 0x52e   : > { %v1115_v53 = vadd.f32 %v1114_v44, %v1113_v36  ;;  %v1124_v56 = vadd.f32 %v1123_v49, %v1122_v37  ;;  %v1214_v14 = vadd.f32 %v1202_v34, %v1201_v57  ;;  %v1060_v44 = vld [vmem:[#allocation3 + $0x18] sm:$0xc] }
 0x52f   : > { %v1172_v60 = vpop.permute.xlu0 %1171  ;;  %v1192_v62 = vpop.permute.xlu1 %1191 }
 0x530   : > { %v1116_v2 = vrot.slane %v1115_v53, 1  ;;  %v1125_v3 = vrot.slane %v1124_v56, 1  ;;  %v1199_v4 = vmul.f32 %v3101_v51, %v1172_v60  ;;  %v1203_v6 = vmul.f32 %v3101_v51, %v1192_v62 }
 0x532   : > { %v1117_v8 = vadd.f32 %v1116_v2, %v1115_v53  ;;  %v1126_v35 = vadd.f32 %v1125_v3, %v1124_v56  ;;  %v1206_v15 = vadd.f32 %v1205_v7, %v1199_v4  ;;  %v1215_v10 = vadd.f32 %v1214_v14, %v1203_v6 }
 0x533   : > { %v1176_v16 = vpop.permute.xlu0 %1175  ;;  %v1196_v17 = vpop.permute.xlu1 %1195 }
 0x534   : > { %v1129_v18 = vsel %vm1018_vm5, %v1126_v35, %v1117_v8  ;;  %v1200_v20 = vmul.f32 %v3111_v63, %v1176_v16  ;;  %v1204_v9 = vmul.f32 %v3111_v63, %v1196_v17  ;;  %v1138_v35 = vrot.slane %v3177_v45, 6 }
 0x535   : > { %v1131_v11 = vadd.f32 %v1129_v18, %v1059_v5  ;;  %v1234_v5 = vrot.slane %v3182_v55, 2 }
 0x536   : > { %v1207_v21 = vadd.f32 %v1206_v15, %v1200_v20  ;;  %v1216_v19 = vadd.f32 %v1215_v10, %v1204_v9 }
 0x537   : > { %2646 = vtanh.f32 %v1131_v11  ;;  %v1132_v53 = vmul.f32 0.5, %v1131_v11 }
 0x538   : > { %v1208_v22 = vrot.slane %v1207_v21, 4  ;;  %v1217_v23 = vrot.slane %v1216_v19, 4 }
 0x53a   : > { %v1209_v24 = vadd.f32 %v1208_v22, %v1207_v21  ;;  %v1218_v25 = vadd.f32 %v1217_v23, %v1216_v19 }
 0x53c   : > { %v1210_v26 = vrot.slane %v1209_v24, 2  ;;  %v1219_v27 = vrot.slane %v1218_v25, 2 }
 0x53e   : > { %v1211_v28 = vadd.f32 %v1210_v26, %v1209_v24  ;;  %v1220_v30 = vadd.f32 %v1219_v27, %v1218_v25 }
 0x540   : > { %v1212_v33 = vrot.slane %v1211_v28, 1  ;;  %v1221_v36 = vrot.slane %v1220_v30, 1 }
 0x541   : > { %v2647_v37 = vpop.eup %2646 }
 0x542   : > { %v1213_v38 = vadd.f32 %v1212_v33, %v1211_v28  ;;  %v1222_v43 = vadd.f32 %v1221_v36, %v1220_v30  ;;  %1142 = vrot.lane.b32.xlu0 %v2647_v37, %s2849_s29 }
 0x544   : > { %v1225_v49 = vsel %vm921_vm4, %v1222_v43, %v1213_v38 }
 0x545   : > { %v1227_v50 = vadd.f32 %v1225_v49, %v1060_v44 }
 0x547   : > { %2648 = vtanh.f32 %v1227_v50  ;;  %v1228_v57 = vmul.f32 0.5, %v1227_v50 }
 0x548   : > { %2650 = vtanh.f32 %v1132_v53 }
 0x549   : > { %2652 = vtanh.f32 %v1228_v57 }
 0x551   : > { %v2649_v52 = vpop.eup %2648 }
 0x552   : > { %1238 = vrot.lane.b32.xlu1 %v2649_v52, %s2849_s29  ;;  %v2651_v56 = vpop.eup %2650 }
 0x553   : > { %v1134_v34 = vadd.f32 1.0, %v2651_v56  ;;  %v2653_v3 = vpop.eup %2652 }
 0x554   : > { %v1230_v4 = vadd.f32 1.0, %v2653_v3 }
 0x555   : > { %v1135_v60 = vmul.f32 0.5, %v1134_v34 }
 0x556   : > { %v1231_v6 = vmul.f32 0.5, %v1230_v4 }
 0x557   : > { %v1140_v14 = vmul.f32 %v1138_v35, %v1135_v60 }
 0x558   : > { %v1236_v18 = vmul.f32 %v1234_v5, %v1231_v6 }
 0x5b4   : > { %v1143_v62 = vpop.permute.xlu0 %1142 }
 0x5b5   : > { %v1145_v2 = vmul.f32 %v1143_v62, %v1135_v60 }
 0x5b7   : > { %1147 = vrot.lane.b32.xlu0 %v1145_v2, %s2849_s29 }
 0x5c4   : > { %v1239_v7 = vpop.permute.xlu1 %1238 }
 0x5c5   : > { %v1241_v8 = vmul.f32 %v1239_v7, %v1231_v6 }
 0x5c7   : > { %1243 = vrot.lane.b32.xlu1 %v1241_v8, %s2849_s29 }
 0x629   : > { %v1148_v15 = vpop.permute.xlu0 %1147 }
 0x62a   : > { %v3233_v16 = vadd.f32 %v1148_v15, %v1140_v14 }
 0x62c   : > { %2654 = vtanh.f32 %v3233_v16 }
 0x636   : > { %v2655_v17 = vpop.eup %2654 }
 0x637   : > { %1153 = vrot.lane.b32.xlu0 %v2655_v17, %s2849_s29 }
 0x639   : > { %v1244_v10 = vpop.permute.xlu1 %1243 }
 0x63a   : > { %v3238_v20 = vadd.f32 %v1244_v10, %v1236_v18 }
 0x63c   : > { %2656 = vtanh.f32 %v3238_v20 }
 0x646   : > { %v2657_v9 = vpop.eup %2656 }
 0x647   : > { %1249 = vrot.lane.b32.xlu1 %v2657_v9, %s2849_s29 }
 0x6a9   : > { %v1154_v45 = vpop.permute.xlu0 %1153 }
 0x6aa   : > { %v3242_v11 = vmul.f32 %v1154_v45, %v1135_v60 }
 0x6ac   : > { %v1270_v21 = vrot.slane %v3242_v11, %v3199_v61  ;;  %v1290_v55 = vrot.slane %v3242_v11, %v3204_v1 }
 0x6ae   : > { %1273 = vbcast.lane.b32.xlu0 %v1270_v21, 320  ;;  %1277 = vbcast.lane.b32.xlu1 %v1270_v21, 328 }
 0x6b2   : > { %1293 = vbcast.lane.b32.xlu0 %v1290_v55, 320  ;;  %1297 = vbcast.lane.b32.xlu1 %v1290_v55, 328 }
 0x6b6   : > { %1281 = vbcast.lane.b32.xlu0 %v1270_v21, 336  ;;  %1301 = vbcast.lane.b32.xlu1 %v1290_v55, 336 }
 0x6b9   : > { %v1250_v19 = vpop.permute.xlu1 %1249 }
 0x6ba   : > { %v3248_v22 = vmul.f32 %v1250_v19, %v1231_v6  ;;  %1285 = vbcast.lane.b32.xlu0 %v1270_v21, 344  ;;  %1305 = vbcast.lane.b32.xlu1 %v1290_v55, 344 }
 0x6bc   : > { %v1366_v23 = vrot.slane %v3248_v22, %v3187_v29  ;;  %v1386_v24 = vrot.slane %v3248_v22, %v3192_v59 }
 0x6be   : > { %1373 = vbcast.lane.b32.xlu1 %v1366_v23, 328  ;;  %1369 = vbcast.lane.b32.xlu0 %v1366_v23, 320 }
 0x6c2   : > { %1393 = vbcast.lane.b32.xlu1 %v1386_v24, 328  ;;  %1389 = vbcast.lane.b32.xlu0 %v1386_v24, 320 }
 0x6c6   : > { %1397 = vbcast.lane.b32.xlu1 %v1386_v24, 336  ;;  %1377 = vbcast.lane.b32.xlu0 %v1366_v23, 336 }
 0x6ca   : > { %1401 = vbcast.lane.b32.xlu1 %v1386_v24, 344  ;;  %1381 = vbcast.lane.b32.xlu0 %v1366_v23, 344 }
 0x720   : > { %v1274_v25 = vpop.permute.xlu0 %1273  ;;  %v1278_v26 = vpop.permute.xlu1 %1277 }
 0x721   : > { %v1307_v30 = vmul.f32 %v1274_v25, %v3076_v31  ;;  %v1308_v33 = vmul.f32 %v1278_v26, %v3079_v32 }
 0x723   : > { %v1315_v50 = vadd.f32 %v1308_v33, %v1307_v30 }
 0x724   : > { %v1294_v27 = vpop.permute.xlu0 %1293  ;;  %v1298_v28 = vpop.permute.xlu1 %1297 }
 0x725   : > { %v1311_v36 = vmul.f32 %v1294_v27, %v3076_v31  ;;  %v1312_v37 = vmul.f32 %v1298_v28, %v3079_v32 }
 0x727   : > { %v1324_v52 = vadd.f32 %v1312_v37, %v1311_v36  ;;  %v1265_v37 = vld [vmem:[#allocation3] sm:$0xc0] }
 0x728   : > { %v1282_v38 = vpop.permute.xlu0 %1281  ;;  %v1302_v43 = vpop.permute.xlu1 %1301 }
 0x729   : > { %v1309_v44 = vmul.f32 %v1282_v38, %v3092_v42  ;;  %v1313_v49 = vmul.f32 %v1302_v43, %v3092_v42 }
 0x72b   : > { %v1316_v57 = vadd.f32 %v1315_v50, %v1309_v44  ;;  %v1325_v34 = vadd.f32 %v1324_v52, %v1313_v49 }
 0x72c   : > { %v1286_v53 = vpop.permute.xlu0 %1285  ;;  %v1306_v56 = vpop.permute.xlu1 %1305 }
 0x72d   : > { %v1310_v60 = vmul.f32 %v1286_v53, %v3104_v54  ;;  %v1314_v62 = vmul.f32 %v1306_v56, %v3104_v54 }
 0x72f   : > { %v1317_v2 = vadd.f32 %v1316_v57, %v1310_v60  ;;  %v1326_v31 = vadd.f32 %v1325_v34, %v1314_v62 }
 0x730   : > { %v1370_v3 = vpop.permute.xlu0 %1369  ;;  %v1374_v32 = vpop.permute.xlu1 %1373 }
 0x731   : > { %v1318_v4 = vrot.slane %v1317_v2, 4  ;;  %v1327_v6 = vrot.slane %v1326_v31, 4  ;;  %v1403_v17 = vmul.f32 %v3089_v41, %v1370_v3  ;;  %v1404_v5 = vmul.f32 %v3086_v40, %v1374_v32 }
 0x733   : > { %v1319_v7 = vadd.f32 %v1318_v4, %v1317_v2  ;;  %v1328_v8 = vadd.f32 %v1327_v6, %v1326_v31  ;;  %v1411_v25 = vadd.f32 %v1404_v5, %v1403_v17 }
 0x734   : > { %v1390_v35 = vpop.permute.xlu0 %1389  ;;  %v1394_v42 = vpop.permute.xlu1 %1393 }
 0x735   : > { %v1320_v14 = vrot.slane %v1319_v7, 2  ;;  %v1329_v15 = vrot.slane %v1328_v8, 2  ;;  %v1407_v54 = vmul.f32 %v3089_v41, %v1390_v35  ;;  %v1408_v9 = vmul.f32 %v3086_v40, %v1394_v42 }
 0x737   : > { %v1321_v18 = vadd.f32 %v1320_v14, %v1319_v7  ;;  %v1330_v10 = vadd.f32 %v1329_v15, %v1328_v8  ;;  %v1420_v28 = vadd.f32 %v1408_v9, %v1407_v54 }
 0x738   : > { %v1378_v45 = vpop.permute.xlu0 %1377  ;;  %v1398_v21 = vpop.permute.xlu1 %1397 }
 0x739   : > { %v1322_v55 = vrot.slane %v1321_v18, 1  ;;  %v1331_v19 = vrot.slane %v1330_v10, 1  ;;  %v1405_v23 = vmul.f32 %v3101_v51, %v1378_v45  ;;  %v1409_v24 = vmul.f32 %v3101_v51, %v1398_v21 }
 0x73b   : > { %v1323_v26 = vadd.f32 %v1322_v55, %v1321_v18  ;;  %v1332_v27 = vadd.f32 %v1331_v19, %v1330_v10  ;;  %v1412_v30 = vadd.f32 %v1411_v25, %v1405_v23  ;;  %v1421_v38 = vadd.f32 %v1420_v28, %v1409_v24 }
 0x73c   : > { %v1382_v33 = vpop.permute.xlu0 %1381  ;;  %v1402_v36 = vpop.permute.xlu1 %1401  ;;  %v1344_v55 = vrot.slane %v3233_v16, 6 }
 0x73d   : > { %v1335_v41 = vsel %vm808_vm3, %v1332_v27, %v1323_v26  ;;  %v1406_v40 = vmul.f32 %v3111_v63, %v1382_v33  ;;  %v1410_v43 = vmul.f32 %v3111_v63, %v1402_v36  ;;  %v1266_v63 = vld [vmem:[#allocation3 + $0x18] sm:$0x3]  ;;  %v1440_v26 = vrot.slane %v3238_v20, 2 }
 0x73e   : > { %v1337_v44 = vadd.f32 %v1335_v41, %v1265_v37 }
 0x73f   : > { %v1413_v49 = vadd.f32 %v1412_v30, %v1406_v40  ;;  %v1422_v50 = vadd.f32 %v1421_v38, %v1410_v43 }
 0x740   : > { %2658 = vtanh.f32 %v1337_v44  ;;  %v1338_v35 = vmul.f32 0.5, %v1337_v44 }
 0x741   : > { %v1414_v51 = vrot.slane %v1413_v49, 4  ;;  %v1423_v52 = vrot.slane %v1422_v50, 4 }
 0x743   : > { %v1415_v53 = vadd.f32 %v1414_v51, %v1413_v49  ;;  %v1424_v56 = vadd.f32 %v1423_v52, %v1422_v50  ;;  %v3299_v52 = vld [vmem:[%s2963_s27] sm:$0xff] }
 0x745   : > { %v1416_v57 = vrot.slane %v1415_v53, 2  ;;  %v1425_v34 = vrot.slane %v1424_v56, 2 }
 0x747   : > { %v1417_v60 = vadd.f32 %v1416_v57, %v1415_v53  ;;  %v1426_v62 = vadd.f32 %v1425_v34, %v1424_v56  ;;  %v3303_v56 = vld [vmem:[%s2963_s27 + $0x8] sm:$0xff] }
 0x749   : > { %v1418_v2 = vrot.slane %v1417_v60, 1  ;;  %v1427_v31 = vrot.slane %v1426_v62, 1 }
 0x74a   : > { %v2659_v3 = vpop.eup %2658 }
 0x74b   : > { %v1419_v32 = vadd.f32 %v1418_v2, %v1417_v60  ;;  %v1428_v4 = vadd.f32 %v1427_v31, %v1426_v62  ;;  %1348 = vrot.lane.b32.xlu0 %v2659_v3, %s2849_s29  ;;  %v3309_v31 = vld [vmem:[%s2963_s27 + $0x10] sm:$0xff] }
 0x74d   : > { %v1431_v6 = vsel %vm712_vm2, %v1428_v4, %v1419_v32 }
 0x74e   : > { %v1433_v7 = vadd.f32 %v1431_v6, %v1266_v63 }
 0x750   : > { %2660 = vtanh.f32 %v1433_v7  ;;  %v1434_v14 = vmul.f32 0.5, %v1433_v7 }
 0x751   : > { %2662 = vtanh.f32 %v1338_v35 }
 0x752   : > { %2664 = vtanh.f32 %v1434_v14 }
 0x75a   : > { %v2661_v8 = vpop.eup %2660 }
 0x75b   : > { %1444 = vrot.lane.b32.xlu1 %v2661_v8, %s2849_s29  ;;  %v2663_v42 = vpop.eup %2662 }
 0x75c   : > { %v1340_v15 = vadd.f32 1.0, %v2663_v42  ;;  %v2665_v10 = vpop.eup %2664  ;;  %v3314_v42 = vld [vmem:[%s2963_s27 + $0x18] sm:$0xff] }
 0x75d   : > { %v1436_v54 = vadd.f32 1.0, %v2665_v10 }
 0x75e   : > { %v1341_v17 = vmul.f32 0.5, %v1340_v15 }
 0x75f   : > { %v1437_v9 = vmul.f32 0.5, %v1436_v54 }
 0x760   : > { %v1346_v19 = vmul.f32 %v1344_v55, %v1341_v17 }
 0x761   : > { %v1442_v27 = vmul.f32 %v1440_v26, %v1437_v9  ;;  %v3319_v26 = vld [vmem:[%s2963_s27 + $0x20] sm:$0xff] }
 0x7bd   : > { %v1349_v5 = vpop.permute.xlu0 %1348 }
 0x7be   : > { %v1351_v18 = vmul.f32 %v1349_v5, %v1341_v17 }
 0x7c0   : > { %1353 = vrot.lane.b32.xlu0 %v1351_v18, %s2849_s29 }
 0x7cd   : > { %v1445_v45 = vpop.permute.xlu1 %1444 }
 0x7ce   : > { %v1447_v21 = vmul.f32 %v1445_v45, %v1437_v9 }
 0x7d0   : > { %1449 = vrot.lane.b32.xlu1 %v1447_v21, %s2849_s29 }
 0x832   : > { %v1354_v23 = vpop.permute.xlu0 %1353 }
 0x833   : > { %v3277_v24 = vadd.f32 %v1354_v23, %v1346_v19 }
 0x835   : > { %2666 = vtanh.f32 %v3277_v24 }
 0x83f   : > { %v2667_v25 = vpop.eup %2666 }
 0x840   : > { %1359 = vrot.lane.b32.xlu0 %v2667_v25, %s2849_s29 }
 0x842   : > { %v1450_v28 = vpop.permute.xlu1 %1449 }
 0x843   : > { %v3282_v30 = vadd.f32 %v1450_v28, %v1442_v27  ;;  %v3323_v28 = vld [vmem:[%s2963_s27 + $0x28] sm:$0xff] }
 0x845   : > { %2668 = vtanh.f32 %v3282_v30 }
 0x84f   : > { %v2669_v33 = vpop.eup %2668 }
 0x850   : > { %1455 = vrot.lane.b32.xlu1 %v2669_v33, %s2849_s29 }
 0x8b2   : > { %v1360_v16 = vpop.permute.xlu0 %1359 }
 0x8b3   : > { %v3286_v36 = vmul.f32 %v1360_v16, %v1341_v17 }
 0x8b5   : > { %v1476_v37 = vrot.slane %v3286_v36, %v3143_v46  ;;  %v1496_v20 = vrot.slane %v3286_v36, %v3148_v48 }
 0x8b7   : > { %1479 = vbcast.lane.b32.xlu0 %v1476_v37, 320  ;;  %1483 = vbcast.lane.b32.xlu1 %v1476_v37, 328 }
 0x8bb   : > { %1499 = vbcast.lane.b32.xlu0 %v1496_v20, 320  ;;  %1503 = vbcast.lane.b32.xlu1 %v1496_v20, 328 }
 0x8bf   : > { %1487 = vbcast.lane.b32.xlu0 %v1476_v37, 336  ;;  %1507 = vbcast.lane.b32.xlu1 %v1496_v20, 336 }
 0x8c2   : > { %v1456_v41 = vpop.permute.xlu1 %1455 }
 0x8c3   : > { %v3292_v38 = vmul.f32 %v1456_v41, %v1437_v9  ;;  %1491 = vbcast.lane.b32.xlu0 %v1476_v37, 344  ;;  %1511 = vbcast.lane.b32.xlu1 %v1496_v20, 344 }
 0x8c5   : > { %v1572_v40 = vrot.slane %v3292_v38, %v3055_v13  ;;  %v1592_v43 = vrot.slane %v3292_v38, %v3052_v12 }
 0x8c7   : > { %1579 = vbcast.lane.b32.xlu1 %v1572_v40, 328  ;;  %1575 = vbcast.lane.b32.xlu0 %v1572_v40, 320 }
 0x8cb   : > { %1599 = vbcast.lane.b32.xlu1 %v1592_v43, 328  ;;  %1595 = vbcast.lane.b32.xlu0 %v1592_v43, 320 }
 0x8cf   : > { %1603 = vbcast.lane.b32.xlu1 %v1592_v43, 336  ;;  %1583 = vbcast.lane.b32.xlu0 %v1572_v40, 336 }
 0x8d3   : > { %1607 = vbcast.lane.b32.xlu1 %v1592_v43, 344  ;;  %1587 = vbcast.lane.b32.xlu0 %v1572_v40, 344 }
 0x929   : > { %v1480_v44 = vpop.permute.xlu0 %1479  ;;  %v1484_v49 = vpop.permute.xlu1 %1483 }
 0x92a   : > { %v1513_v53 = vmul.f32 %v3299_v52, %v1480_v44  ;;  %v1514_v57 = vmul.f32 %v3303_v56, %v1484_v49 }
 0x92c   : > { %v1521_v4 = vadd.f32 %v1514_v57, %v1513_v53 }
 0x92d   : > { %v1500_v50 = vpop.permute.xlu0 %1499  ;;  %v1504_v51 = vpop.permute.xlu1 %1503 }
 0x92e   : > { %v1517_v34 = vmul.f32 %v3299_v52, %v1500_v50  ;;  %v1518_v60 = vmul.f32 %v3303_v56, %v1504_v51  ;;  %v3329_v50 = vld [vmem:[%s2963_s27 + $0x30] sm:$0xff] }
 0x930   : > { %v1530_v63 = vadd.f32 %v1518_v60, %v1517_v34 }
 0x931   : > { %v1488_v62 = vpop.permute.xlu0 %1487  ;;  %v1508_v2 = vpop.permute.xlu1 %1507 }
 0x932   : > { %v1515_v3 = vmul.f32 %v3309_v31, %v1488_v62  ;;  %v1519_v32 = vmul.f32 %v3309_v31, %v1508_v2 }
 0x934   : > { %v1522_v8 = vadd.f32 %v1521_v4, %v1515_v3  ;;  %v1531_v35 = vadd.f32 %v1530_v63, %v1519_v32  ;;  %v1471_v4 = vld [vmem:[#allocation3 + $0x10] sm:$0x3] }
 0x935   : > { %v1492_v6 = vpop.permute.xlu0 %1491  ;;  %v1512_v7 = vpop.permute.xlu1 %1511 }
 0x936   : > { %v1516_v14 = vmul.f32 %v3314_v42, %v1492_v6  ;;  %v1520_v15 = vmul.f32 %v3314_v42, %v1512_v7  ;;  %v3335_v7 = vld [vmem:[%s2963_s27 + $0x38] sm:$0xff] }
 0x938   : > { %v1523_v17 = vadd.f32 %v1522_v8, %v1516_v14  ;;  %v1532_v5 = vadd.f32 %v1531_v35, %v1520_v15 }
 0x939   : > { %v1576_v18 = vpop.permute.xlu0 %1575  ;;  %v1580_v10 = vpop.permute.xlu1 %1579 }
 0x93a   : > { %v1524_v54 = vrot.slane %v1523_v17, 4  ;;  %v1533_v9 = vrot.slane %v1532_v5, 4  ;;  %v1609_v27 = vmul.f32 %v3319_v26, %v1576_v18  ;;  %v1610_v33 = vmul.f32 %v3323_v28, %v1580_v10 }
 0x93c   : > { %v1525_v45 = vadd.f32 %v1524_v54, %v1523_v17  ;;  %v1534_v21 = vadd.f32 %v1533_v9, %v1532_v5  ;;  %v1617_v57 = vadd.f32 %v1610_v33, %v1609_v27 }
 0x93d   : > { %v1596_v55 = vpop.permute.xlu0 %1595  ;;  %v1600_v19 = vpop.permute.xlu1 %1599 }
 0x93e   : > { %v1526_v23 = vrot.slane %v1525_v45, 2  ;;  %v1535_v25 = vrot.slane %v1534_v21, 2  ;;  %v1613_v20 = vmul.f32 %v3319_v26, %v1596_v55  ;;  %v1614_v41 = vmul.f32 %v3323_v28, %v1600_v19 }
 0x940   : > { %v1527_v16 = vadd.f32 %v1526_v23, %v1525_v45  ;;  %v1536_v37 = vadd.f32 %v1535_v25, %v1534_v21  ;;  %v1626_v62 = vadd.f32 %v1614_v41, %v1613_v20 }
 0x941   : > { %v1584_v40 = vpop.permute.xlu0 %1583  ;;  %v1604_v43 = vpop.permute.xlu1 %1603 }
 0x942   : > { %v1528_v44 = vrot.slane %v1527_v16, 1  ;;  %v1537_v49 = vrot.slane %v1536_v37, 1  ;;  %v1611_v51 = vmul.f32 %v3329_v50, %v1584_v40  ;;  %v1615_v53 = vmul.f32 %v3329_v50, %v1604_v43 }
 0x944   : > { %v1529_v34 = vadd.f32 %v1528_v44, %v1527_v16  ;;  %v1538_v60 = vadd.f32 %v1537_v49, %v1536_v37  ;;  %v1618_v2 = vadd.f32 %v1617_v57, %v1611_v51  ;;  %v1627_v6 = vadd.f32 %v1626_v62, %v1615_v53  ;;  %v1472_v16 = vld [vmem:[#allocation3 + $0x8] sm:$0xc0] }
 0x945   : > { %v1588_v3 = vpop.permute.xlu0 %1587  ;;  %v1608_v32 = vpop.permute.xlu1 %1607 }
 0x946   : > { %v1541_v63 = vsel %vm712_vm2, %v1538_v60, %v1529_v34  ;;  %v1612_v8 = vmul.f32 %v3335_v7, %v1588_v3  ;;  %v1616_v35 = vmul.f32 %v3335_v7, %v1608_v32  ;;  %v1550_v32 = vrot.slane %v3277_v24, 6 }
 0x947   : > { %v1543_v14 = vadd.f32 %v1541_v63, %v1471_v4 }
 0x948   : > { %v1619_v15 = vadd.f32 %v1618_v2, %v1612_v8  ;;  %v1628_v17 = vadd.f32 %v1627_v6, %v1616_v35  ;;  %v1646_v35 = vrot.slane %v3282_v30, 2 }
 0x949   : > { %2670 = vtanh.f32 %v1543_v14  ;;  %v1544_v40 = vmul.f32 0.5, %v1543_v14 }
 0x94a   : > { %v1620_v5 = vrot.slane %v1619_v15, 4  ;;  %v1629_v18 = vrot.slane %v1628_v17, 4 }
 0x94c   : > { %v1621_v10 = vadd.f32 %v1620_v5, %v1619_v15  ;;  %v1630_v54 = vadd.f32 %v1629_v18, %v1628_v17 }
 0x94e   : > { %v1622_v9 = vrot.slane %v1621_v10, 2  ;;  %v1631_v45 = vrot.slane %v1630_v54, 2 }
 0x950   : > { %v1623_v21 = vadd.f32 %v1622_v9, %v1621_v10  ;;  %v1632_v55 = vadd.f32 %v1631_v45, %v1630_v54 }
 0x952   : > { %v1624_v19 = vrot.slane %v1623_v21, 1  ;;  %v1633_v23 = vrot.slane %v1632_v55, 1 }
 0x953   : > { %v2671_v25 = vpop.eup %2670 }
 0x954   : > { %v1625_v27 = vadd.f32 %v1624_v19, %v1623_v21  ;;  %v1634_v33 = vadd.f32 %v1633_v23, %v1632_v55  ;;  %1554 = vrot.lane.b32.xlu0 %v2671_v25, %s2849_s29 }
 0x956   : > { %v1637_v37 = vsel %vm808_vm3, %v1634_v33, %v1625_v27 }
 0x957   : > { %v1639_v20 = vadd.f32 %v1637_v37, %v1472_v16 }
 0x959   : > { %2672 = vtanh.f32 %v1639_v20  ;;  %v1640_v44 = vmul.f32 0.5, %v1639_v20 }
 0x95a   : > { %2674 = vtanh.f32 %v1544_v40 }
 0x95b   : > { %2676 = vtanh.f32 %v1640_v44 }
 0x963   : > { %v2673_v41 = vpop.eup %2672 }
 0x964   : > { %1650 = vrot.lane.b32.xlu1 %v2673_v41, %s2849_s29  ;;  %v2675_v43 = vpop.eup %2674 }
 0x965   : > { %v1546_v49 = vadd.f32 1.0, %v2675_v43  ;;  %v2677_v34 = vpop.eup %2676 }
 0x966   : > { %v1642_v60 = vadd.f32 1.0, %v2677_v34 }
 0x967   : > { %v1547_v51 = vmul.f32 0.5, %v1546_v49 }
 0x968   : > { %v1643_v62 = vmul.f32 0.5, %v1642_v60 }
 0x969   : > { %v1552_v4 = vmul.f32 %v1550_v32, %v1547_v51 }
 0x96a   : > { %v1648_v14 = vmul.f32 %v1646_v35, %v1643_v62 }
 0x9c6   : > { %v1555_v53 = vpop.permute.xlu0 %1554 }
 0x9c7   : > { %v1557_v57 = vmul.f32 %v1555_v53, %v1547_v51 }
 0x9c9   : > { %1559 = vrot.lane.b32.xlu0 %v1557_v57, %s2849_s29 }
 0x9d6   : > { %v1651_v2 = vpop.permute.xlu1 %1650 }
 0x9d7   : > { %v1653_v3 = vmul.f32 %v1651_v2, %v1643_v62 }
 0x9d9   : > { %1655 = vrot.lane.b32.xlu1 %v1653_v3, %s2849_s29 }
 0xa3b   : > { %v1560_v63 = vpop.permute.xlu0 %1559 }
 0xa3c   : > { %v3345_v6 = vadd.f32 %v1560_v63, %v1552_v4 }
 0xa3e   : > { %2678 = vtanh.f32 %v3345_v6 }
 0xa48   : > { %v2679_v8 = vpop.eup %2678 }
 0xa49   : > { %1565 = vrot.lane.b32.xlu0 %v2679_v8, %s2849_s29 }
 0xa4b   : > { %v1656_v15 = vpop.permute.xlu1 %1655 }
 0xa4c   : > { %v3350_v17 = vadd.f32 %v1656_v15, %v1648_v14 }
 0xa4e   : > { %2680 = vtanh.f32 %v3350_v17 }
 0xa58   : > { %v2681_v5 = vpop.eup %2680 }
 0xa59   : > { %1661 = vrot.lane.b32.xlu1 %v2681_v5, %s2849_s29 }
 0xabb   : > { %v1566_v24 = vpop.permute.xlu0 %1565 }
 0xabc   : > { %v3354_v18 = vmul.f32 %v1566_v24, %v1547_v51 }
 0xabe   : > { %v1680_v10 = vrot.slane %v3354_v18, %v3055_v13  ;;  %v1700_v30 = vrot.slane %v3354_v18, %v3052_v12 }
 0xac0   : > { %1683 = vbcast.lane.b32.xlu0 %v1680_v10, 320  ;;  %1687 = vbcast.lane.b32.xlu1 %v1680_v10, 328 }
 0xac4   : > { %1703 = vbcast.lane.b32.xlu0 %v1700_v30, 320  ;;  %1707 = vbcast.lane.b32.xlu1 %v1700_v30, 328 }
 0xac8   : > { %1691 = vbcast.lane.b32.xlu0 %v1680_v10, 336  ;;  %1711 = vbcast.lane.b32.xlu1 %v1700_v30, 336 }
 0xacb   : > { %v1662_v54 = vpop.permute.xlu1 %1661 }
 0xacc   : > { %v3360_v9 = vmul.f32 %v1662_v54, %v1643_v62  ;;  %1695 = vbcast.lane.b32.xlu0 %v1680_v10, 344  ;;  %1715 = vbcast.lane.b32.xlu1 %v1700_v30, 344 }
 0xace   : > { %v1776_v45 = vrot.slane %v3360_v9, %v3143_v46  ;;  %v1796_v13 = vrot.slane %v3360_v9, %v3148_v48 }
 0xad0   : > { %1783 = vbcast.lane.b32.xlu1 %v1776_v45, 328  ;;  %1779 = vbcast.lane.b32.xlu0 %v1776_v45, 320 }
 0xad4   : > { %1803 = vbcast.lane.b32.xlu1 %v1796_v13, 328  ;;  %1799 = vbcast.lane.b32.xlu0 %v1796_v13, 320 }
 0xad8   : > { %1807 = vbcast.lane.b32.xlu1 %v1796_v13, 336  ;;  %1787 = vbcast.lane.b32.xlu0 %v1776_v45, 336 }
 0xadc   : > { %1811 = vbcast.lane.b32.xlu1 %v1796_v13, 344  ;;  %1791 = vbcast.lane.b32.xlu0 %v1776_v45, 344 }
 0xb32   : > { %v1684_v12 = vpop.permute.xlu0 %1683  ;;  %v1688_v21 = vpop.permute.xlu1 %1687 }
 0xb33   : > { %v1717_v23 = vmul.f32 %v3299_v52, %v1684_v12  ;;  %v1718_v25 = vmul.f32 %v3303_v56, %v1688_v21 }
 0xb35   : > { %v1725_v20 = vadd.f32 %v1718_v25, %v1717_v23 }
 0xb36   : > { %v1704_v55 = vpop.permute.xlu0 %1703  ;;  %v1708_v19 = vpop.permute.xlu1 %1707 }
 0xb37   : > { %v1721_v46 = vmul.f32 %v3299_v52, %v1704_v55  ;;  %v1722_v27 = vmul.f32 %v3303_v56, %v1708_v19 }
 0xb39   : > { %v1734_v41 = vadd.f32 %v1722_v27, %v1721_v46 }
 0xb3a   : > { %v1692_v33 = vpop.permute.xlu0 %1691  ;;  %v1712_v48 = vpop.permute.xlu1 %1711 }
 0xb3b   : > { %v1719_v16 = vmul.f32 %v3309_v31, %v1692_v33  ;;  %v1723_v37 = vmul.f32 %v3309_v31, %v1712_v48 }
 0xb3d   : > { %v1726_v44 = vadd.f32 %v1725_v20, %v1719_v16  ;;  %v1735_v49 = vadd.f32 %v1734_v41, %v1723_v37  ;;  %v1675_v37 = vld [vmem:[#allocation3 + $0x10] sm:$0xc] }
 0xb3e   : > { %v1696_v40 = vpop.permute.xlu0 %1695  ;;  %v1716_v43 = vpop.permute.xlu1 %1715 }
 0xb3f   : > { %v1720_v51 = vmul.f32 %v3314_v42, %v1696_v40  ;;  %v1724_v53 = vmul.f32 %v3314_v42, %v1716_v43 }
 0xb41   : > { %v1727_v57 = vadd.f32 %v1726_v44, %v1720_v51  ;;  %v1736_v34 = vadd.f32 %v1735_v49, %v1724_v53 }
 0xb42   : > { %v1780_v60 = vpop.permute.xlu0 %1779  ;;  %v1784_v62 = vpop.permute.xlu1 %1783 }
 0xb43   : > { %v1728_v2 = vrot.slane %v1727_v57, 4  ;;  %v1737_v3 = vrot.slane %v1736_v34, 4  ;;  %v1813_v15 = vmul.f32 %v3319_v26, %v1780_v60  ;;  %v1814_v5 = vmul.f32 %v3323_v28, %v1784_v62 }
 0xb45   : > { %v1729_v32 = vadd.f32 %v1728_v2, %v1727_v57  ;;  %v1738_v4 = vadd.f32 %v1737_v3, %v1736_v34  ;;  %v1821_v23 = vadd.f32 %v1814_v5, %v1813_v15  ;;  %v1676_v15 = vld [vmem:[#allocation3 + $0x8] sm:$0x30] }
 0xb46   : > { %v1800_v63 = vpop.permute.xlu0 %1799  ;;  %v1804_v8 = vpop.permute.xlu1 %1803 }
 0xb47   : > { %v1730_v35 = vrot.slane %v1729_v32, 2  ;;  %v1739_v14 = vrot.slane %v1738_v4, 2  ;;  %v1817_v30 = vmul.f32 %v3319_v26, %v1800_v63  ;;  %v1818_v54 = vmul.f32 %v3323_v28, %v1804_v8 }
 0xb49   : > { %v1731_v24 = vadd.f32 %v1730_v35, %v1729_v32  ;;  %v1740_v10 = vadd.f32 %v1739_v14, %v1738_v4  ;;  %v1830_v27 = vadd.f32 %v1818_v54, %v1817_v30 }
 0xb4a   : > { %v1788_v45 = vpop.permute.xlu0 %1787  ;;  %v1808_v13 = vpop.permute.xlu1 %1807 }
 0xb4b   : > { %v1732_v12 = vrot.slane %v1731_v24, 1  ;;  %v1741_v21 = vrot.slane %v1740_v10, 1  ;;  %v1815_v55 = vmul.f32 %v3329_v50, %v1788_v45  ;;  %v1819_v19 = vmul.f32 %v3329_v50, %v1808_v13 }
 0xb4d   : > { %v1733_v25 = vadd.f32 %v1732_v12, %v1731_v24  ;;  %v1742_v46 = vadd.f32 %v1741_v21, %v1740_v10  ;;  %v1822_v33 = vadd.f32 %v1821_v23, %v1815_v55  ;;  %v1831_v41 = vadd.f32 %v1830_v27, %v1819_v19 }
 0xb4e   : > { %v1792_v48 = vpop.permute.xlu0 %1791  ;;  %v1812_v16 = vpop.permute.xlu1 %1811 }
 0xb4f   : > { %v1745_v20 = vsel %vm921_vm4, %v1742_v46, %v1733_v25  ;;  %v1816_v40 = vmul.f32 %v3335_v7, %v1792_v48  ;;  %v1820_v43 = vmul.f32 %v3335_v7, %v1812_v16 }
 0xb50   : > { %v1747_v44 = vadd.f32 %v1745_v20, %v1675_v37 }
 0xb51   : > { %v1823_v49 = vadd.f32 %v1822_v33, %v1816_v40  ;;  %v1832_v51 = vadd.f32 %v1831_v41, %v1820_v43  ;;  %v1754_v33 = vrot.slane %v3345_v6, 6  ;;  %v1850_v41 = vrot.slane %v3350_v17, 2 }
 0xb52   : > { %2682 = vtanh.f32 %v1747_v44  ;;  %v1748_v30 = vmul.f32 0.5, %v1747_v44 }
 0xb53   : > { %v1824_v53 = vrot.slane %v1823_v49, 4  ;;  %v1833_v57 = vrot.slane %v1832_v51, 4 }
 0xb55   : > { %v1825_v34 = vadd.f32 %v1824_v53, %v1823_v49  ;;  %v1834_v60 = vadd.f32 %v1833_v57, %v1832_v51 }
 0xb57   : > { %v1826_v62 = vrot.slane %v1825_v34, 2  ;;  %v1835_v2 = vrot.slane %v1834_v60, 2 }
 0xb59   : > { %v1827_v3 = vadd.f32 %v1826_v62, %v1825_v34  ;;  %v1836_v32 = vadd.f32 %v1835_v2, %v1834_v60 }
 0xb5b   : > { %v1828_v4 = vrot.slane %v1827_v3, 1  ;;  %v1837_v63 = vrot.slane %v1836_v32, 1 }
 0xb5c   : > { %v2683_v8 = vpop.eup %2682 }
 0xb5d   : > { %v1829_v35 = vadd.f32 %v1828_v4, %v1827_v3  ;;  %v1838_v14 = vadd.f32 %v1837_v63, %v1836_v32  ;;  %1758 = vrot.lane.b32.xlu0 %v2683_v8, %s2849_s29 }
 0xb5f   : > { %v1841_v5 = vsel %vm1018_vm5, %v1838_v14, %v1829_v35 }
 0xb60   : > { %v1843_v24 = vadd.f32 %v1841_v5, %v1676_v15 }
 0xb62   : > { %2684 = vtanh.f32 %v1843_v24  ;;  %v1844_v45 = vmul.f32 0.5, %v1843_v24 }
 0xb63   : > { %2686 = vtanh.f32 %v1748_v30 }
 0xb64   : > { %2688 = vtanh.f32 %v1844_v45 }
 0xb6c   : > { %v2685_v10 = vpop.eup %2684 }
 0xb6d   : > { %1854 = vrot.lane.b32.xlu1 %v2685_v10, %s2849_s29  ;;  %v2687_v54 = vpop.eup %2686 }
 0xb6e   : > { %v1750_v13 = vadd.f32 1.0, %v2687_v54  ;;  %v2689_v19 = vpop.eup %2688 }
 0xb6f   : > { %v1846_v23 = vadd.f32 1.0, %v2689_v19 }
 0xb70   : > { %v1751_v12 = vmul.f32 0.5, %v1750_v13 }
 0xb71   : > { %v1847_v25 = vmul.f32 0.5, %v1846_v23 }
 0xb72   : > { %v1756_v48 = vmul.f32 %v1754_v33, %v1751_v12 }
 0xb73   : > { %v1852_v40 = vmul.f32 %v1850_v41, %v1847_v25 }
 0xbcf   : > { %v1759_v21 = vpop.permute.xlu0 %1758 }
 0xbd0   : > { %v1761_v55 = vmul.f32 %v1759_v21, %v1751_v12 }
 0xbd2   : > { %1763 = vrot.lane.b32.xlu0 %v1761_v55, %s2849_s29 }
 0xbdf   : > { %v1855_v46 = vpop.permute.xlu1 %1854 }
 0xbe0   : > { %v1857_v27 = vmul.f32 %v1855_v46, %v1847_v25 }
 0xbe2   : > { %1859 = vrot.lane.b32.xlu1 %v1857_v27, %s2849_s29 }
 0xc44   : > { %v1764_v16 = vpop.permute.xlu0 %1763 }
 0xc45   : > { %v3389_v37 = vadd.f32 %v1764_v16, %v1756_v48 }
 0xc47   : > { %2690 = vtanh.f32 %v3389_v37 }
 0xc51   : > { %v2691_v20 = vpop.eup %2690 }
 0xc52   : > { %1769 = vrot.lane.b32.xlu0 %v2691_v20, %s2849_s29 }
 0xc54   : > { %v1860_v43 = vpop.permute.xlu1 %1859 }
 0xc55   : > { %v3394_v44 = vadd.f32 %v1860_v43, %v1852_v40 }
 0xc57   : > { %2692 = vtanh.f32 %v3394_v44 }
 0xc61   : > { %v2693_v49 = vpop.eup %2692 }
 0xc62   : > { %1865 = vrot.lane.b32.xlu1 %v2693_v49, %s2849_s29 }
 0xcc4   : > { %v1770_v6 = vpop.permute.xlu0 %1769 }
 0xcc5   : > { %v3398_v51 = vmul.f32 %v1770_v6, %v1751_v12 }
 0xcc7   : > { %v1884_v53 = vrot.slane %v3398_v51, %v3187_v29  ;;  %v1904_v17 = vrot.slane %v3398_v51, %v3192_v59 }
 0xcc9   : > { %1887 = vbcast.lane.b32.xlu0 %v1884_v53, 320  ;;  %1891 = vbcast.lane.b32.xlu1 %v1884_v53, 328 }
 0xccd   : > { %1907 = vbcast.lane.b32.xlu0 %v1904_v17, 320  ;;  %1911 = vbcast.lane.b32.xlu1 %v1904_v17, 328 }
 0xcd1   : > { %1895 = vbcast.lane.b32.xlu0 %v1884_v53, 336  ;;  %1915 = vbcast.lane.b32.xlu1 %v1904_v17, 336 }
 0xcd4   : > { %v1866_v57 = vpop.permute.xlu1 %1865 }
 0xcd5   : > { %v3404_v34 = vmul.f32 %v1866_v57, %v1847_v25  ;;  %1899 = vbcast.lane.b32.xlu0 %v1884_v53, 344  ;;  %1919 = vbcast.lane.b32.xlu1 %v1904_v17, 344 }
 0xcd7   : > { %v1980_v60 = vrot.slane %v3404_v34, %v3199_v61  ;;  %v2000_v62 = vrot.slane %v3404_v34, %v3204_v1 }
 0xcd9   : > { %1987 = vbcast.lane.b32.xlu1 %v1980_v60, 328  ;;  %1983 = vbcast.lane.b32.xlu0 %v1980_v60, 320 }
 0xcdd   : > { %2007 = vbcast.lane.b32.xlu1 %v2000_v62, 328  ;;  %2003 = vbcast.lane.b32.xlu0 %v2000_v62, 320 }
 0xce1   : > { %2011 = vbcast.lane.b32.xlu1 %v2000_v62, 336  ;;  %1991 = vbcast.lane.b32.xlu0 %v1980_v60, 336 }
 0xce5   : > { %2015 = vbcast.lane.b32.xlu1 %v2000_v62, 344  ;;  %1995 = vbcast.lane.b32.xlu0 %v1980_v60, 344 }
 0xd3b   : > { %v1888_v2 = vpop.permute.xlu0 %1887  ;;  %v1892_v3 = vpop.permute.xlu1 %1891 }
 0xd3c   : > { %v1921_v63 = vmul.f32 %v3299_v52, %v1888_v2  ;;  %v1922_v8 = vmul.f32 %v3303_v56, %v1892_v3 }
 0xd3e   : > { %v1929_v30 = vadd.f32 %v1922_v8, %v1921_v63 }
 0xd3f   : > { %v1908_v32 = vpop.permute.xlu0 %1907  ;;  %v1912_v4 = vpop.permute.xlu1 %1911 }
 0xd40   : > { %v1925_v35 = vmul.f32 %v3299_v52, %v1908_v32  ;;  %v1926_v14 = vmul.f32 %v3303_v56, %v1912_v4 }
 0xd42   : > { %v1938_v54 = vadd.f32 %v1926_v14, %v1925_v35 }
 0xd43   : > { %v1896_v15 = vpop.permute.xlu0 %1895  ;;  %v1916_v5 = vpop.permute.xlu1 %1915 }
 0xd44   : > { %v1923_v24 = vmul.f32 %v3309_v31, %v1896_v15  ;;  %v1927_v10 = vmul.f32 %v3309_v31, %v1916_v5 }
 0xd46   : > { %v1930_v12 = vadd.f32 %v1929_v30, %v1923_v24  ;;  %v1939_v21 = vadd.f32 %v1938_v54, %v1927_v10  ;;  %v1879_v54 = vld [vmem:[#allocation3 + $0x10] sm:$0x30] }
 0xd47   : > { %v1900_v45 = vpop.permute.xlu0 %1899  ;;  %v1920_v13 = vpop.permute.xlu1 %1919 }
 0xd48   : > { %v1924_v55 = vmul.f32 %v3314_v42, %v1900_v45  ;;  %v1928_v19 = vmul.f32 %v3314_v42, %v1920_v13 }
 0xd4a   : > { %v1931_v23 = vadd.f32 %v1930_v12, %v1924_v55  ;;  %v1940_v25 = vadd.f32 %v1939_v21, %v1928_v19 }
 0xd4b   : > { %v1984_v46 = vpop.permute.xlu0 %1983  ;;  %v1988_v27 = vpop.permute.xlu1 %1987 }
 0xd4c   : > { %v1932_v33 = vrot.slane %v1931_v23, 4  ;;  %v1941_v48 = vrot.slane %v1940_v25, 4  ;;  %v2017_v6 = vmul.f32 %v3319_v26, %v1984_v46  ;;  %v2018_v53 = vmul.f32 %v3323_v28, %v1988_v27 }
 0xd4e   : > { %v1933_v16 = vadd.f32 %v1932_v33, %v1931_v23  ;;  %v1942_v20 = vadd.f32 %v1941_v48, %v1940_v25  ;;  %v2025_v35 = vadd.f32 %v2018_v53, %v2017_v6 }
 0xd4f   : > { %v2004_v41 = vpop.permute.xlu0 %2003  ;;  %v2008_v40 = vpop.permute.xlu1 %2007 }
 0xd50   : > { %v1934_v43 = vrot.slane %v1933_v16, 2  ;;  %v1943_v49 = vrot.slane %v1942_v20, 2  ;;  %v2021_v60 = vmul.f32 %v3319_v26, %v2004_v41  ;;  %v2022_v62 = vmul.f32 %v3323_v28, %v2008_v40 }
 0xd52   : > { %v1935_v17 = vadd.f32 %v1934_v43, %v1933_v16  ;;  %v1944_v57 = vadd.f32 %v1943_v49, %v1942_v20  ;;  %v2034_v5 = vadd.f32 %v2022_v62, %v2021_v60 }
 0xd53   : > { %v1992_v2 = vpop.permute.xlu0 %1991  ;;  %v2012_v3 = vpop.permute.xlu1 %2011 }
 0xd54   : > { %v1936_v32 = vrot.slane %v1935_v17, 1  ;;  %v1945_v4 = vrot.slane %v1944_v57, 1  ;;  %v2019_v63 = vmul.f32 %v3329_v50, %v1992_v2  ;;  %v2023_v8 = vmul.f32 %v3329_v50, %v2012_v3 }
 0xd56   : > { %v1937_v14 = vadd.f32 %v1936_v32, %v1935_v17  ;;  %v1946_v15 = vadd.f32 %v1945_v4, %v1944_v57  ;;  %v2026_v24 = vadd.f32 %v2025_v35, %v2019_v63  ;;  %v2035_v13 = vadd.f32 %v2034_v5, %v2023_v8  ;;  %v1880_v17 = vld [vmem:[#allocation3 + $0x8] sm:$0xc] }
 0xd57   : > { %v1996_v10 = vpop.permute.xlu0 %1995  ;;  %v2016_v30 = vpop.permute.xlu1 %2015 }
 0xd58   : > { %v1949_v45 = vsel %vm1018_vm5, %v1946_v15, %v1937_v14  ;;  %v2020_v12 = vmul.f32 %v3335_v7, %v1996_v10  ;;  %v2024_v21 = vmul.f32 %v3335_v7, %v2016_v30  ;;  %v1958_v30 = vrot.slane %v3389_v37, 6 }
 0xd59   : > { %v1951_v55 = vadd.f32 %v1949_v45, %v1879_v54 }
 0xd5a   : > { %v2027_v19 = vadd.f32 %v2026_v24, %v2020_v12  ;;  %v2036_v23 = vadd.f32 %v2035_v13, %v2024_v21  ;;  %v2054_v21 = vrot.slane %v3394_v44, 2 }
 0xd5b   : > { %2694 = vtanh.f32 %v1951_v55  ;;  %v1952_v2 = vmul.f32 0.5, %v1951_v55 }
 0xd5c   : > { %v2028_v25 = vrot.slane %v2027_v19, 4  ;;  %v2037_v46 = vrot.slane %v2036_v23, 4 }
 0xd5e   : > { %v2029_v27 = vadd.f32 %v2028_v25, %v2027_v19  ;;  %v2038_v33 = vadd.f32 %v2037_v46, %v2036_v23 }
 0xd60   : > { %v2030_v48 = vrot.slane %v2029_v27, 2  ;;  %v2039_v16 = vrot.slane %v2038_v33, 2 }
 0xd62   : > { %v2031_v20 = vadd.f32 %v2030_v48, %v2029_v27  ;;  %v2040_v41 = vadd.f32 %v2039_v16, %v2038_v33 }
 0xd64   : > { %v2032_v40 = vrot.slane %v2031_v20, 1  ;;  %v2041_v43 = vrot.slane %v2040_v41, 1 }
 0xd65   : > { %v2695_v49 = vpop.eup %2694 }
 0xd66   : > { %v2033_v6 = vadd.f32 %v2032_v40, %v2031_v20  ;;  %v2042_v53 = vadd.f32 %v2041_v43, %v2040_v41  ;;  %1962 = vrot.lane.b32.xlu0 %v2695_v49, %s2849_s29 }
 0xd68   : > { %v2045_v57 = vsel %vm921_vm4, %v2042_v53, %v2033_v6 }
 0xd69   : > { %v2047_v60 = vadd.f32 %v2045_v57, %v1880_v17 }
 0xd6b   : > { %2696 = vtanh.f32 %v2047_v60  ;;  %v2048_v32 = vmul.f32 0.5, %v2047_v60 }
 0xd6c   : > { %2698 = vtanh.f32 %v1952_v2 }
 0xd6d   : > { %2700 = vtanh.f32 %v2048_v32 }
 0xd75   : > { %v2697_v62 = vpop.eup %2696 }
 0xd76   : > { %2058 = vrot.lane.b32.xlu1 %v2697_v62, %s2849_s29  ;;  %v2699_v3 = vpop.eup %2698 }
 0xd77   : > { %v1954_v4 = vadd.f32 1.0, %v2699_v3  ;;  %v2701_v14 = vpop.eup %2700 }
 0xd78   : > { %v2050_v15 = vadd.f32 1.0, %v2701_v14 }
 0xd79   : > { %v1955_v63 = vmul.f32 0.5, %v1954_v4 }
 0xd7a   : > { %v2051_v5 = vmul.f32 0.5, %v2050_v15 }
 0xd7b   : > { %v1960_v54 = vmul.f32 %v1958_v30, %v1955_v63 }
 0xd7c   : > { %v2056_v55 = vmul.f32 %v2054_v21, %v2051_v5 }
 0xdd8   : > { %v1963_v8 = vpop.permute.xlu0 %1962 }
 0xdd9   : > { %v1965_v35 = vmul.f32 %v1963_v8, %v1955_v63 }
 0xddb   : > { %1967 = vrot.lane.b32.xlu0 %v1965_v35, %s2849_s29 }
 0xde8   : > { %v2059_v24 = vpop.permute.xlu1 %2058 }
 0xde9   : > { %v2061_v10 = vmul.f32 %v2059_v24, %v2051_v5 }
 0xdeb   : > { %2063 = vrot.lane.b32.xlu1 %v2061_v10, %s2849_s29 }
 0xe4d   : > { %v1968_v45 = vpop.permute.xlu0 %1967 }
 0xe4e   : > { %v3433_v13 = vadd.f32 %v1968_v45, %v1960_v54 }
 0xe50   : > { %2702 = vtanh.f32 %v3433_v13 }
 0xe5a   : > { %v2703_v12 = vpop.eup %2702 }
 0xe5b   : > { %1973 = vrot.lane.b32.xlu0 %v2703_v12, %s2849_s29 }
 0xe5d   : > { %v2064_v19 = vpop.permute.xlu1 %2063 }
 0xe5e   : > { %v3438_v23 = vadd.f32 %v2064_v19, %v2056_v55 }
 0xe60   : > { %2704 = vtanh.f32 %v3438_v23 }
 0xe6a   : > { %v2705_v25 = vpop.eup %2704 }
 0xe6b   : > { %2069 = vrot.lane.b32.xlu1 %v2705_v25, %s2849_s29 }
 0xecd   : > { %v1974_v37 = vpop.permute.xlu0 %1973 }
 0xece   : > { %v3442_v46 = vmul.f32 %v1974_v37, %v1955_v63 }
 0xed0   : > { %v2088_v27 = vrot.slane %v3442_v46, %v3199_v61  ;;  %v2108_v44 = vrot.slane %v3442_v46, %v3204_v1 }
 0xed2   : > { %2091 = vbcast.lane.b32.xlu0 %v2088_v27, 320  ;;  %2095 = vbcast.lane.b32.xlu1 %v2088_v27, 328 }
 0xed6   : > { %2111 = vbcast.lane.b32.xlu0 %v2108_v44, 320  ;;  %2115 = vbcast.lane.b32.xlu1 %v2108_v44, 328 }
 0xeda   : > { %2099 = vbcast.lane.b32.xlu0 %v2088_v27, 336  ;;  %2119 = vbcast.lane.b32.xlu1 %v2108_v44, 336 }
 0xedd   : > { %v2070_v33 = vpop.permute.xlu1 %2069 }
 0xede   : > { %v3448_v48 = vmul.f32 %v2070_v33, %v2051_v5  ;;  %2103 = vbcast.lane.b32.xlu0 %v2088_v27, 344  ;;  %2123 = vbcast.lane.b32.xlu1 %v2108_v44, 344 }
 0xee0   : > { %v2184_v16 = vrot.slane %v3448_v48, %v3187_v29  ;;  %v2204_v61 = vrot.slane %v3448_v48, %v3192_v59 }
 0xee2   : > { %2191 = vbcast.lane.b32.xlu1 %v2184_v16, 328  ;;  %2187 = vbcast.lane.b32.xlu0 %v2184_v16, 320 }
 0xee6   : > { %2211 = vbcast.lane.b32.xlu1 %v2204_v61, 328  ;;  %2207 = vbcast.lane.b32.xlu0 %v2204_v61, 320 }
 0xeea   : > { %2215 = vbcast.lane.b32.xlu1 %v2204_v61, 336  ;;  %2195 = vbcast.lane.b32.xlu0 %v2184_v16, 336 }
 0xeee   : > { %2219 = vbcast.lane.b32.xlu1 %v2204_v61, 344  ;;  %2199 = vbcast.lane.b32.xlu0 %v2184_v16, 344 }
 0xf44   : > { %v2092_v1 = vpop.permute.xlu0 %2091  ;;  %v2096_v20 = vpop.permute.xlu1 %2095 }
 0xf45   : > { %v2125_v43 = vmul.f32 %v3299_v52, %v2092_v1  ;;  %v2126_v49 = vmul.f32 %v3303_v56, %v2096_v20 }
 0xf47   : > { %v2133_v60 = vadd.f32 %v2126_v49, %v2125_v43 }
 0xf48   : > { %v2112_v41 = vpop.permute.xlu0 %2111  ;;  %v2116_v40 = vpop.permute.xlu1 %2115 }
 0xf49   : > { %v2129_v29 = vmul.f32 %v3299_v52, %v2112_v41  ;;  %v2130_v6 = vmul.f32 %v3303_v56, %v2116_v40 }
 0xf4b   : > { %v2142_v62 = vadd.f32 %v2130_v6, %v2129_v29  ;;  %v2083_v6 = vld [vmem:[#allocation3 + $0x10] sm:$0xc0] }
 0xf4c   : > { %v2100_v53 = vpop.permute.xlu0 %2099  ;;  %v2120_v59 = vpop.permute.xlu1 %2119 }
 0xf4d   : > { %v2127_v17 = vmul.f32 %v3309_v31, %v2100_v53  ;;  %v2131_v57 = vmul.f32 %v3309_v31, %v2120_v59 }
 0xf4f   : > { %v2134_v32 = vadd.f32 %v2133_v60, %v2127_v17  ;;  %v2143_v4 = vadd.f32 %v2142_v62, %v2131_v57 }
 0xf50   : > { %v2104_v2 = vpop.permute.xlu0 %2103  ;;  %v2124_v3 = vpop.permute.xlu1 %2123 }
 0xf51   : > { %v2128_v63 = vmul.f32 %v3314_v42, %v2104_v2  ;;  %v2132_v8 = vmul.f32 %v3314_v42, %v2124_v3 }
 0xf53   : > { %v2135_v35 = vadd.f32 %v2134_v32, %v2128_v63  ;;  %v2144_v52 = vadd.f32 %v2143_v4, %v2132_v8 }
 0xf54   : > { %v2188_v14 = vpop.permute.xlu0 %2187  ;;  %v2192_v56 = vpop.permute.xlu1 %2191 }
 0xf55   : > { %v2136_v15 = vrot.slane %v2135_v35, 4  ;;  %v2145_v5 = vrot.slane %v2144_v52, 4  ;;  %v2221_v12 = vmul.f32 %v3319_v26, %v2188_v14  ;;  %v2222_v21 = vmul.f32 %v3323_v28, %v2192_v56 }
 0xf57   : > { %v2137_v24 = vadd.f32 %v2136_v15, %v2135_v35  ;;  %v2146_v10 = vadd.f32 %v2145_v5, %v2144_v52  ;;  %v2229_v1 = vadd.f32 %v2222_v21, %v2221_v12 }
 0xf58   : > { %v2208_v30 = vpop.permute.xlu0 %2207  ;;  %v2212_v31 = vpop.permute.xlu1 %2211 }
 0xf59   : > { %v2138_v54 = vrot.slane %v2137_v24, 2  ;;  %v2147_v45 = vrot.slane %v2146_v10, 2  ;;  %v2225_v42 = vmul.f32 %v3319_v26, %v2208_v30  ;;  %v2226_v25 = vmul.f32 %v3323_v28, %v2212_v31 }
 0xf5b   : > { %v2139_v55 = vadd.f32 %v2138_v54, %v2137_v24  ;;  %v2148_v19 = vadd.f32 %v2147_v45, %v2146_v10  ;;  %v2238_v40 = vadd.f32 %v2226_v25, %v2225_v42 }
 0xf5c   : > { %v2196_v37 = vpop.permute.xlu0 %2195  ;;  %v2216_v27 = vpop.permute.xlu1 %2215 }
 0xf5d   : > { %v2140_v44 = vrot.slane %v2139_v55, 1  ;;  %v2149_v33 = vrot.slane %v2148_v19, 1  ;;  %v2223_v16 = vmul.f32 %v3329_v50, %v2196_v37  ;;  %v2227_v61 = vmul.f32 %v3329_v50, %v2216_v27 }
 0xf5f   : > { %v2141_v20 = vadd.f32 %v2140_v44, %v2139_v55  ;;  %v2150_v41 = vadd.f32 %v2149_v33, %v2148_v19  ;;  %v2230_v43 = vadd.f32 %v2229_v1, %v2223_v16  ;;  %v2239_v53 = vadd.f32 %v2238_v40, %v2227_v61 }
 0xf60   : > { %v2200_v49 = vpop.permute.xlu0 %2199  ;;  %v2220_v29 = vpop.permute.xlu1 %2219  ;;  %v2162_v44 = vrot.slane %v3433_v13, 6 }
 0xf61   : > { %v2153_v26 = vsel %vm808_vm3, %v2150_v41, %v2141_v20  ;;  %v2224_v28 = vmul.f32 %v3335_v7, %v2200_v49  ;;  %v2228_v59 = vmul.f32 %v3335_v7, %v2220_v29  ;;  %v2084_v7 = vld [vmem:[#allocation3 + $0x8] sm:$0x3]  ;;  %v2258_v20 = vrot.slane %v3438_v23, 2 }
 0xf62   : > { %v2155_v17 = vadd.f32 %v2153_v26, %v2083_v6 }
 0xf63   : > { %v2231_v57 = vadd.f32 %v2230_v43, %v2224_v28  ;;  %v2240_v60 = vadd.f32 %v2239_v53, %v2228_v59 }
 0xf64   : > { %2706 = vtanh.f32 %v2155_v17  ;;  %v2156_v30 = vmul.f32 0.5, %v2155_v17 }
 0xf65   : > { %v2232_v50 = vrot.slane %v2231_v57, 4  ;;  %v2241_v62 = vrot.slane %v2240_v60, 4 }
 0xf67   : > { %v2233_v2 = vadd.f32 %v2232_v50, %v2231_v57  ;;  %v2242_v3 = vadd.f32 %v2241_v62, %v2240_v60 }
 0xf69   : > { %v2234_v32 = vrot.slane %v2233_v2, 2  ;;  %v2243_v4 = vrot.slane %v2242_v3, 2 }
 0xf6b   : > { %v2235_v63 = vadd.f32 %v2234_v32, %v2233_v2  ;;  %v2244_v8 = vadd.f32 %v2243_v4, %v2242_v3 }
 0xf6d   : > { %v2236_v35 = vrot.slane %v2235_v63, 1  ;;  %v2245_v52 = vrot.slane %v2244_v8, 1 }
 0xf6e   : > { %v2707_v14 = vpop.eup %2706 }
 0xf6f   : > { %v2237_v56 = vadd.f32 %v2236_v35, %v2235_v63  ;;  %v2246_v15 = vadd.f32 %v2245_v52, %v2244_v8  ;;  %2166 = vrot.lane.b32.xlu0 %v2707_v14, %s2849_s29 }
 0xf71   : > { %v2249_v5 = vsel %vm712_vm2, %v2246_v15, %v2237_v56 }
 0xf72   : > { %v2251_v24 = vadd.f32 %v2249_v5, %v2084_v7 }
 0xf74   : > { %2708 = vtanh.f32 %v2251_v24  ;;  %v2252_v54 = vmul.f32 0.5, %v2251_v24 }
 0xf75   : > { %2710 = vtanh.f32 %v2156_v30 }
 0xf76   : > { %2712 = vtanh.f32 %v2252_v54 }
 0xf7e   : > { %v2709_v10 = vpop.eup %2708 }
 0xf7f   : > { %2262 = vrot.lane.b32.xlu1 %v2709_v10, %s2849_s29  ;;  %v2711_v31 = vpop.eup %2710 }
 0xf80   : > { %v2158_v45 = vadd.f32 1.0, %v2711_v31  ;;  %v2713_v19 = vpop.eup %2712 }
 0xf81   : > { %v2254_v42 = vadd.f32 1.0, %v2713_v19 }
 0xf82   : > { %v2159_v12 = vmul.f32 0.5, %v2158_v45 }
 0xf83   : > { %v2255_v25 = vmul.f32 0.5, %v2254_v42 }
 0xf84   : > { %v2164_v33 = vmul.f32 %v2162_v44, %v2159_v12 }
 0xf85   : > { %v2260_v41 = vmul.f32 %v2258_v20, %v2255_v25 }
 0xfe1   : > { %v2167_v21 = vpop.permute.xlu0 %2166 }
 0xfe2   : > { %v2169_v55 = vmul.f32 %v2167_v21, %v2159_v12 }
 0xfe4   : > { %2171 = vrot.lane.b32.xlu0 %v2169_v55, %s2849_s29 }
 0xff1   : > { %v2263_v37 = vpop.permute.xlu1 %2262 }
 0xff2   : > { %v2265_v27 = vmul.f32 %v2263_v37, %v2255_v25 }
 0xff4   : > { %2267 = vrot.lane.b32.xlu1 %v2265_v27, %s2849_s29 }
0x1056   : > { %v2172_v16 = vpop.permute.xlu0 %2171 }
0x1057   : > { %v2174_v61 = vadd.f32 %v2172_v16, %v2164_v33 }
0x1059   : > { %2714 = vtanh.f32 %v2174_v61 }
0x1063   : > { %v2715_v1 = vpop.eup %2714 }
0x1064   : > { %2177 = vrot.lane.b32.xlu0 %v2715_v1, %s2849_s29 }
0x1066   : > { %v2268_v40 = vpop.permute.xlu1 %2267 }
0x1067   : > { %v2270_v43 = vadd.f32 %v2268_v40, %v2260_v41 }
0x1068   : > { %840 = vrot.lane.b32.xlu0 %v3136_v39, %s2850_s11 }
0x1069   : > { %2716 = vtanh.f32 %v2270_v43 }
0x106c   : > { %1048 = vrot.lane.b32.xlu0 %v3189_v58, %s2850_s11 }
0x1070   : > { %1254 = vrot.lane.b32.xlu0 %v3242_v11, %s2850_s11 }
0x1073   : > { %v2717_v13 = vpop.eup %2716 }
0x1074   : > { %1460 = vrot.lane.b32.xlu0 %v3286_v36, %s2850_s11  ;;  %2273 = vrot.lane.b32.xlu1 %v2717_v13, %s2849_s29 }
0x1078   : > { %1666 = vrot.lane.b32.xlu0 %v3354_v18, %s2850_s11  ;;  %846 = vrot.lane.b32.xlu1 %v3145_v47, %s2851_s18 }
0x107c   : > { %1870 = vrot.lane.b32.xlu0 %v3398_v51, %s2850_s11  ;;  %1054 = vrot.lane.b32.xlu1 %v3201_v0, %s2851_s18 }
0x1080   : > { %2074 = vrot.lane.b32.xlu0 %v3442_v46, %s2850_s11  ;;  %1260 = vrot.lane.b32.xlu1 %v3248_v22, %s2851_s18 }
0x1084   : > { %1466 = vrot.lane.b32.xlu1 %v3292_v38, %s2851_s18 }
0x1088   : > { %1671 = vrot.lane.b32.xlu1 %v3360_v9, %s2851_s18 }
0x108c   : > { %1875 = vrot.lane.b32.xlu1 %v3404_v34, %s2851_s18 }
0x1090   : > { %2079 = vrot.lane.b32.xlu1 %v3448_v48, %s2851_s18 }
0x10d6   : > { %v2178_v39 = vpop.permute.xlu0 %2177 }
0x10d7   : > { %v2180_v47 = vmul.f32 %v2178_v39, %v2159_v12 }
0x10d9   : > { %2278 = vrot.lane.b32.xlu0 %v2180_v47, %s2850_s11 }
0x10da   : > { %v841_v58 = vpop.permute.xlu0 %840 }
0x10db   : > { %844 = vst.msk [vmem:[#allocation2] sm:$0x3] %vm843_vm6, %v841_v58 }
0x10de   : > { %v1049_v0 = vpop.permute.xlu0 %1048 }
0x10df   : > { %1052 = vst.msk [vmem:[#allocation2] sm:$0xc] %vm1051_vm7, %v1049_v0 }
0x10e2   : > { %v1255_v11 = vpop.permute.xlu0 %1254 }
0x10e3   : > { %1258 = vst.msk [vmem:[#allocation2] sm:$0x30] %vm1257_vm8, %v1255_v11 }
0x10e6   : > { %v1461_v22 = vpop.permute.xlu0 %1460  ;;  %v2274_v36 = vpop.permute.xlu1 %2273 }
0x10e7   : > { %1464 = vst.msk [vmem:[#allocation2] sm:$0xc0] %vm1463_vm9, %v1461_v22  ;;  %v2276_v38 = vmul.f32 %v2274_v36, %v2255_v25 }
0x10e9   : > { %2288 = vrot.lane.b32.xlu0 %v2276_v38, %s2850_s11  ;;  %2283 = vrot.lane.b32.xlu1 %v2276_v38, %s2851_s18 }
0x10ea   : > { %v1667_v18 = vpop.permute.xlu0 %1666  ;;  %v847_v9 = vpop.permute.xlu1 %846 }
0x10eb   : > { %850 = vst.msk [vmem:[#allocation2 + $0x8] sm:$0xc0] %vm849_vm10, %v847_v9 }
0x10ed   : > { %2299 = vrot.lane.b32.xlu0 %v2270_v43, %s2851_s18  ;;  %2294 = vrot.lane.b32.xlu1 %v2174_v61, %s2851_s18 }
0x10ee   : > { %v1871_v51 = vpop.permute.xlu0 %1870  ;;  %v1055_v34 = vpop.permute.xlu1 %1054 }
0x10ef   : > { %1058 = vst.msk [vmem:[#allocation2 + $0x8] sm:$0x30] %vm1057_vm11, %v1055_v34 }
0x10f2   : > { %v2075_v23 = vpop.permute.xlu0 %2074  ;;  %v1261_v46 = vpop.permute.xlu1 %1260 }
0x10f3   : > { %2077 = vst.msk [vmem:[#allocation2 + $0x8] sm:$0x30] %vm1257_vm8, %v2075_v23 }
0x10f4   : > { %1264 = vst.msk [vmem:[#allocation2 + $0x8] sm:$0xc] %vm1263_vm12, %v1261_v46 }
0x10f5   : > { %1873 = vst.msk [vmem:[#allocation2 + $0x8] sm:$0xc] %vm1051_vm7, %v1871_v51 }
0x10f6   : > { %v1467_v48 = vpop.permute.xlu1 %1466 }
0x10f7   : > { %1470 = vst.msk [vmem:[#allocation2 + $0x8] sm:$0x3] %vm1469_vm13, %v1467_v48 }
0x10f8   : > { %1669 = vst.msk [vmem:[#allocation2 + $0x8] sm:$0x3] %vm843_vm6, %v1667_v18 }
0x10fa   : > { %v1672_v49 = vpop.permute.xlu1 %1671 }
0x10fb   : > { %1674 = vst.msk [vmem:[#allocation2] sm:$0xc0] %vm849_vm10, %v1672_v49 }
0x10fe   : > { %v1876_v29 = vpop.permute.xlu1 %1875 }
0x10ff   : > { %1878 = vst.msk [vmem:[#allocation2] sm:$0x30] %vm1057_vm11, %v1876_v29 }
0x1102   : > { %v2080_v6 = vpop.permute.xlu1 %2079 }
0x1103   : > { %2082 = vst.msk [vmem:[#allocation2] sm:$0xc] %vm1263_vm12, %v2080_v6 }
0x114b   : > { %v2279_v26 = vpop.permute.xlu0 %2278 }
0x114c   : > { %2281 = vst.msk [vmem:[#allocation2 + $0x8] sm:$0xc0] %vm1463_vm9, %v2279_v26  ;;  %2287 = vst.msk [vmem:[%s2980_s25 - $0x6] sm:$0xc0] %vm1463_vm9, %v2279_v26 }
0x1153   : > { %v2309_v60 = vld [vmem:[#allocation2 + $0x8] sm:$0xff] (!%p2539_p12) }
0x1154   : > { %2311 = vst.msk [vmem:[#allocation4 + $0x8] sm:$0xff] (!%p2539_p12), %vm469_vm1, %v2309_v60 }
0x115b   : > { %v2289_v53 = vpop.permute.xlu0 %2288  ;;  %v2284_v28 = vpop.permute.xlu1 %2283  ;;  %2307 = sbr.rel (%p2539_p12) target bundleno = 4454 (0x1166), region = 52 }
0x115c   : > { %2537 = vst.msk [vmem:[%s2980_s25 + $0x2] sm:$0x3] %vm843_vm6, %v2289_v53 }
0x115d   : > { %2286 = vst.msk [vmem:[#allocation2] sm:$0x3] %vm1469_vm13, %v2284_v28 }
0x115f   : > { %v2300_v59 = vpop.permute.xlu0 %2299  ;;  %v2295_v17 = vpop.permute.xlu1 %2294 }
0x1160   : > { %2538 = vst.msk [vmem:[%s2982_s21 + $0x2] sm:$0x3] %vm843_vm6, %v2300_v59 }
0x1161   : > { %2297 = vst.msk [vmem:[%s2982_s21 - $0x6] sm:$0xc0] %vm1463_vm9, %v2295_v17 }
0x1164   : > { %v2308_v57 = vld [vmem:[#allocation2] sm:$0xff] }
0x1165   : > { %2310 = vst.msk [vmem:[#allocation4] sm:$0xff] %vm469_vm1, %v2308_v57 }
0x1166 PF: > { %s2312_s24 = sand.u32 1, %s2922_s9   ;;  %s2554_s26 = sshll.u32 %s2922_s9, 6 }
0x1167   : > { %s3543_s13 = scalar_lea.hbm %s3655_s7, %s2554_s26  ;;  %s2344_s17 = sshll.u32 %s2980_s25, 4  ;;  %s3546_s17 = int_to_ptr.vmem [resolvable:$true] %s2344_s17 }
0x1168   : > { %s3551_s23 = scalar_lea.hbm %s3656_s8, %s2554_s26  ;;  %s3553_s10 = scalar_lea.sflag [#allocation7], %s2312_s24 }
0x1169   : > { %s2726_s14 = scalar_lea.vmem %s3546_s17, 64  ;;  %s2852_s28 = smov [#allocation6]  }
0x116a   : > { %p2727_p13 = scmp.ne.s32.totalorder %s3546_s17, %s2726_s14  ;;  %s2730_s19 = sshll.u32 %s2852_s28, 4  ;;  %s2731_s19 = int_to_ptr.vmem [resolvable:$false] %s2730_s19 }
0x116b   : > { %s2732_s25 = scalar_lea.vmem %s2731_s19, 128  ;;  %p2733_p3 = scmp.lt.s32.totalorder %s3546_s17, %s2731_s19 }
0x116c   : > { %p2728_p0 = pnand %p2727_p13, %p2942_p5  ;;  %p2734_p4 = scmp.lt.s32.totalorder %s2732_s25, %s2726_s14 }
0x116e   : > { %p2729_p1 = pneg %p2728_p0  ;;  %p2735_p7 = por %p2734_p4, %p2733_p3 }
0x1170   : > { %p2736_p8 = pnand %p2735_p7, %p2729_p1 }
0x1172   : > { %2739 = shalt.err (!%p2736_p8)
}
0x1173   : > { %s2740_s11 = scalar_lea.hbm %s3543_s13, 64  ;;  %s2744_s26 = scalar_lea.hbm %s3655_s7, 128 }
0x1174   : > { %p2741_p9 = scmp.ne.s32.totalorder %s3543_s13, %s2740_s11  ;;  %p2745_p12 = scmp.lt.u32.totalorder %s3543_s13, %s3655_s7 }
0x1175   : > { %p2746_p13 = scmp.lt.u32.totalorder %s2744_s26, %s2740_s11  ;;  %p2748_p1 = scmp.lt.u32.totalorder %s2740_s11, %s3543_s13 }
0x1176   : > { %p2742_p10 = pnand %p2741_p9, %p2942_p5 }
0x1177   : > { %p2747_p0 = por %p2746_p13, %p2745_p12 }
0x1178   : > { %p2743_p11 = pneg %p2742_p10 }
0x1179   : > { %p2749_p3 = por %p2748_p1, %p2747_p0 }
0x117b   : > { %p2750_p4 = pnand %p2749_p3, %p2743_p11 }
0x117d   : > { %2753 = shalt.err (!%p2750_p4)
}
0x117e   : > { %s2853_s22 = smov 2   ;;  %s2854_s20 = smov [#allocation4]  }
0x117f   : > { %2566 = dma.vmem_to_hbm [thread:$0]  (%p2942_p5), %s3546_s17, 64, %s3543_s13, %s3553_s10, %s2849_s29, %s2849_s29, %s2853_s22  }
0x1180   : > { %s2328_s14 = sshll.u32 %s2854_s20, 4  ;;  %s2360_s28 = sshll.u32 %s2982_s21, 4  ;;  %s2329_s14 = int_to_ptr.vmem [resolvable:$true] %s2328_s14  ;;  %s3599_s28 = int_to_ptr.vmem [resolvable:$true] %s2360_s28 }
0x1181   : > { %s2754_s19 = scalar_lea.vmem %s2329_s14, 256  ;;  %p2761_p10 = scmp.lt.s32.totalorder %s2329_s14, %s2329_s14 }
0x1182   : > { %p2755_p7 = scmp.ne.s32.totalorder %s2329_s14, %s2754_s19  ;;  %p2762_p11 = scmp.lt.s32.totalorder %s2754_s19, %s2754_s19 }
0x1184   : > { %p2756_p8 = pnand %p2755_p7, %p213_p2  ;;  %p2763_p12 = por %p2762_p11, %p2761_p10 }
0x1186   : > { %p2757_p9 = pneg %p2756_p8 }
0x1188   : > { %p2764_p13 = pnand %p2763_p12, %p2757_p9 }
0x118a   : > { %2767 = shalt.err (!%p2764_p13)
}
0x118b   : > { %s2768_s18 = scalar_lea.hbm %s3654_s6, 256 }
0x118c   : > { %p2769_p0 = scmp.ne.s32.totalorder %s3654_s6, %s2768_s18  ;;  %p2774_p4 = scmp.lt.u32.totalorder %s2768_s18, %s3654_s6 }
0x118e   : > { %p2770_p1 = pnand %p2769_p0, %p213_p2 }
0x1190   : > { %p2771_p3 = pneg %p2770_p1 }
0x1192   : > { %p2776_p7 = pnand %p2774_p4, %p2771_p3 }
0x1194   : > { %2779 = shalt.err (!%p2776_p7)
}
0x1195   : > { %s2855_s26 = smov 128   ;;  %s2856_s27 = smov 8  }
0x1196   : > { %2565 = dma.vmem_to_hbm [thread:$0]  (%p213_p2), %s2329_s14, 256, %s3654_s6, [#allocation5], %s2855_s26, %s2855_s26, %s2856_s27  }
0x1197   : > { %s2780_s19 = scalar_lea.vmem %s3599_s28, 64  ;;  %s2857_s25 = smov [#allocation8]  }
0x1198   : > { %p2781_p8 = scmp.ne.s32.totalorder %s3599_s28, %s2780_s19  ;;  %s2784_s11 = sshll.u32 %s2857_s25, 4  ;;  %s2785_s11 = int_to_ptr.vmem [resolvable:$false] %s2784_s11 }
0x1199   : > { %s2786_s18 = scalar_lea.vmem %s2785_s11, 128  ;;  %p2787_p11 = scmp.lt.s32.totalorder %s3599_s28, %s2785_s11 }
0x119a   : > { %p2782_p9 = pnand %p2781_p8, %p2942_p5  ;;  %p2788_p12 = scmp.lt.s32.totalorder %s2786_s18, %s2780_s19 }
0x119c   : > { %p2783_p10 = pneg %p2782_p9  ;;  %p2789_p13 = por %p2788_p12, %p2787_p11 }
0x119e   : > { %p2790_p0 = pnand %p2789_p13, %p2783_p10 }
0x11a0   : > { %2793 = shalt.err (!%p2790_p0)
}
0x11a1   : > { %s2794_s14 = scalar_lea.hbm %s3551_s23, 64  ;;  %s2798_s21 = scalar_lea.hbm %s3656_s8, 128 }
0x11a2   : > { %p2795_p1 = scmp.ne.s32.totalorder %s3551_s23, %s2794_s14  ;;  %p2799_p7 = scmp.lt.u32.totalorder %s3551_s23, %s3656_s8 }
0x11a3   : > { %p2800_p8 = scmp.lt.u32.totalorder %s2798_s21, %s2794_s14  ;;  %p2802_p10 = scmp.lt.u32.totalorder %s2794_s14, %s3551_s23 }
0x11a4   : > { %p2796_p3 = pnand %p2795_p1, %p2942_p5 }
0x11a5   : > { %p2801_p9 = por %p2800_p8, %p2799_p7 }
0x11a6   : > { %p2797_p4 = pneg %p2796_p3 }
0x11a7   : > { %p2803_p11 = por %p2802_p10, %p2801_p9 }
0x11a9   : > { %p2804_p12 = pnand %p2803_p11, %p2797_p4 }
0x11ab   : > { %2807 = shalt.err (!%p2804_p12)
}
0x11ac   : > { %2567 = dma.vmem_to_hbm [thread:$0]  (%p2942_p5), %s3599_s28, 64, %s3551_s23, %s3553_s10, %s2849_s29, %s2849_s29, %s2853_s22  }
0x11ad   : > { %2825 = dma.done.wait (%p213_p2), [#allocation5], 256  }
0x11ae   : > { %2827 = vsyncadd (%p213_p2), [#allocation5], 4294967040 }
0x11af PF: > { %p2581_p13 = scmp.ge.s32.totalorder %s2846_s30, 2  ;;  %s3668_s27 = sadd.s32 4294967294, %s2846_s30  }
0x11b0   : > { %s2379_s15 = sand.u32 1, %s3668_s27  }
0x11b1   : > { %p2573_p0 = pnand %p2581_p13, %p2946_p6  ;;  %s2380_s12 = scalar_lea.sflag [#allocation7], %s2379_s15 }
0x11b3   : > { %2829 = dma.done.wait (!%p2573_p0), %s2380_s12, 128  }
0x11b4   : > { %2831 = vsyncadd (!%p2573_p0), %s2380_s12, 4294967168  ;;  %s3669_s30 = sld [smem:[#allocation13_spill]]  ;;  %s3670_s27 = sld [smem:[#allocation11_spill]] }
0x11b5   : > { %s3671_s28 = sld [smem:[#allocation12_spill]]  ;;  %s3672_s29 = sld [smem:[#allocation14_spill]] }
0x11ba   : > { %p20_p5 = scmp.ge.s32.totalorder %s3669_s30, 4  }
0x11bc   :  { %22 = sbr.rel (!%p20_p5) target bundleno = 4 (0x4), region = 128 }
0x11c3   :  { %2394 = vsyncpa [#allocation5], 1 }
0x11c4   :  { %2396 = vsyncpa [#allocation5 + $0x1], 1 }
0x11c5   :  { %2397 = vsyncpa [#allocation7], 1 }
0x11c6   :  { %2399 = vsyncpa [#allocation7 + $0x1], 1 }

</bundles_post_ra>
